<compile_context>
chip_gen: v5e
topology: v5e:2x2
jax: 0.10.0
libtpu: 0.0.40
codegen_flags: <defaults>
</compile_context>

<pallas_src>
import jax
import jax.numpy as jnp
from jax import lax
from jax.experimental import pallas as pl
from jax.experimental.pallas import tpu as pltpu

HIDDEN = 128                 # EnhancedGCN out_channels
HEADS = 3
GCN_OUT = 2 * HIDDEN         # 256  (GCNConv output width)
GAT_OUT = HIDDEN             # 128  per head
NODE_OUT = HEADS * GAT_OUT   # 384  (concat of heads)
NEG = -1e30


# --------------------------------------------------------------------------- #
# Kernel A: GCNConv + ReLU (+ eval-mode dropout = identity) + GAT linear
#           projection (h2 = h1 @ W2) + per-head attention scores.
# grid = (row_tiles, col_tiles); col axis accumulates a_norm @ xw.
# --------------------------------------------------------------------------- #
def gcn_project_kernel(anorm_ref, xw_ref, b1_ref, w2_ref, wsrc_t_ref, wdst_t_ref,
                       h2_ref, asrc_t_ref, adst_ref, acc_ref):
    k = pl.program_id(1)

    @pl.when(k == 0)
    def _():
        acc_ref[...] = jnp.zeros_like(acc_ref)

    # bf16 operands, f32 accumulation on the MXU.
    acc_ref[...] += jnp.dot(anorm_ref[...], xw_ref[...],
                            preferred_element_type=jnp.float32)

    @pl.when(k == pl.num_programs(1) - 1)
    def _():
        h1 = jnp.maximum(acc_ref[...] + b1_ref[...], 0.0)
        # F.dropout in eval mode is the identity (training-mode dropout omitted).
        h1_bf = h1.astype(jnp.bfloat16)
        h2 = jnp.dot(h1_bf, w2_ref[...], preferred_element_type=jnp.float32)
        h2_bf = h2.astype(jnp.bfloat16)
        h2_ref[...] = h2_bf
        # Per-head scores via block-diagonal attention matrices (MXU, no XLU reduce,
        # no transpose): a_src stored already transposed [HEADS, tile].
        asrc_t_ref[...] = lax.dot_general(
            wsrc_t_ref[...], h2_bf, (((1,), (1,)), ((), ())),
            preferred_element_type=jnp.float32)
        adst_ref[...] = lax.dot_general(
            h2_bf, wdst_t_ref[...], (((1,), (1,)), ((), ())),
            preferred_element_type=jnp.float32)


# --------------------------------------------------------------------------- #
# Kernel B: GATConv attention (heads=3, concat) with online softmax over the
#           neighbor-column tiles, + bias + final ReLU of EnhancedGCN.
# --------------------------------------------------------------------------- #
def gat_kernel(anorm_ref, h2_ref, asrc_t_ref, adst_ref, b2_ref,
               out_ref, m_scr, l_scr, acc_scr):
    k = pl.program_id(1)

    @pl.when(k == 0)
    def _():
        m_scr[...] = jnp.full_like(m_scr, NEG)
        l_scr[...] = jnp.zeros_like(l_scr)
        acc_scr[...] = jnp.zeros_like(acc_scr)

    # Mask derived from a_norm's nonzero pattern (includes self loops).
    mask = anorm_ref[...] > 0.0                          # [tq, tk]
    h2_k = h2_ref[...]                                   # [tk, 384] bf16

    for h in range(HEADS):
        lo = h * GAT_OUT
        a_d = adst_ref[:, h:h + 1]                       # [tq, 1]
        a_s = asrc_t_ref[h:h + 1, :]                     # [1, tk] (no transpose)
        e = a_d + a_s
        e = jnp.where(e >= 0.0, e, 0.2 * e)              # LeakyReLU(0.2)
        e = jnp.where(mask, e, NEG)

        m_prev = m_scr[:, h:h + 1]
        m_new = jnp.maximum(m_prev, jnp.max(e, axis=-1, keepdims=True))
        corr = jnp.exp(m_prev - m_new)
        p = jnp.where(mask, jnp.exp(e - m_new), 0.0)     # safe for all-masked tiles

        l_scr[:, h:h + 1] = corr * l_scr[:, h:h + 1] + jnp.sum(p, axis=-1,
                                                               keepdims=True)
        acc_scr[:, lo:lo + GAT_OUT] = (
            corr * acc_scr[:, lo:lo + GAT_OUT]
            + jnp.dot(p.astype(jnp.bfloat16), h2_k[:, lo:lo + GAT_OUT],
                      preferred_element_type=jnp.float32))
        m_scr[:, h:h + 1] = m_new

    @pl.when(k == pl.num_programs(1) - 1)
    def _():
        b2 = b2_ref[...]
        for h in range(HEADS):
            lo = h * GAT_OUT
            inv_l = pl.reciprocal(l_scr[:, h:h + 1], approx=True)  # deferred softmax norm
            out_ref[:, lo:lo + GAT_OUT] = jnp.maximum(
                acc_scr[:, lo:lo + GAT_OUT] * inv_l + b2[:, lo:lo + GAT_OUT], 0.0)


# --------------------------------------------------------------------------- #
# Kernel C: global_mean_pool + fc, accumulated over node-column tiles.
# --------------------------------------------------------------------------- #
def pool_fc_kernel(pool_ref, node_ref, wfc_ref, bfc_ref, out_ref, g_acc):
    k = pl.program_id(0)

    @pl.when(k == 0)
    def _():
        g_acc[...] = jnp.zeros_like(g_acc)

    g_acc[...] += jnp.dot(pool_ref[...], node_ref[...],
                          preferred_element_type=jnp.float32)

    @pl.when(k == pl.num_programs(0) - 1)
    def _():
        out_ref[...] = jnp.dot(g_acc[...], wfc_ref[...],
                               preferred_element_type=jnp.float32) + bfc_ref[...]


# --------------------------------------------------------------------------- #
# Glue (plain JAX): padded dense adjacency / GCN norm / pooling matrices.
# Padded nodes carry only a self loop and belong to no graph, so they never
# influence real rows or the pooled result.
# --------------------------------------------------------------------------- #
def build_dense(edge_index, batch, num_nodes, num_graphs, n_pad):
    src, dst = edge_index[0], edge_index[1]
    a = jnp.zeros((n_pad, n_pad), jnp.float32).at[dst, src].add(1.0)
    a = jnp.clip(a, 0.0, 1.0)
    a_loop = jnp.clip(a + jnp.eye(n_pad, dtype=jnp.float32), 0.0, 1.0)
    deg = jnp.sum(a_loop, axis=1)                        # >= 1 (self loops)
    dinv = lax.rsqrt(deg)
    a_norm = a_loop * dinv[:, None] * dinv[None, :]      # nonzero iff edge/self-loop
    batch_pad = jnp.full((n_pad,), -1, jnp.int32).at[:num_nodes].set(batch)
    onehot = (batch_pad[None, :] == jnp.arange(num_graphs)[:, None]).astype(jnp.float32)
    counts = jnp.maximum(jnp.sum(onehot, axis=1, keepdims=True), 1.0)
    pool = onehot / counts
    return a_norm, pool


def graph_bot_detector(x, edge_index, batch, params, num_graphs, *, tile=256):
    n_real, feat = x.shape
    num_classes = params["wfc"].shape[1]
    n_pad = ((n_real + tile - 1) // tile) * tile
    nq = n_pad // tile
    nk = n_pad // tile

    a_norm, pool = build_dense(edge_index, batch, n_real, num_graphs, n_pad)
    a_norm_bf = a_norm.astype(jnp.bfloat16)              # halves the N^2 HBM traffic

    x_pad = jnp.zeros((n_pad, feat), jnp.float32).at[:n_real].set(x)
    xw = (x_pad @ params["w1"]).astype(jnp.bfloat16)     # K = feature_dim tiny -> XLA
    w2_bf = params["w2"].astype(jnp.bfloat16)

    # Block-diagonal per-head attention vectors -> score_h = h2 . w_t[h] on the MXU.
    wsrc_t = jnp.zeros((HEADS, NODE_OUT), jnp.float32)
    wdst_t = jnp.zeros((HEADS, NODE_OUT), jnp.float32)
    for h in range(HEADS):
        wsrc_t = wsrc_t.at[h, h * GAT_OUT:(h + 1) * GAT_OUT].set(params["att_src"][h])
        wdst_t = wdst_t.at[h, h * GAT_OUT:(h + 1) * GAT_OUT].set(params["att_dst"][h])
    wsrc_t = wsrc_t.astype(jnp.bfloat16)
    wdst_t = wdst_t.astype(jnp.bfloat16)

    vmem_limit = 32 * 1024 * 1024  # far above actual use; raises the v5e default

    # ---- kernel A: GCN + projection + scores --------------------------------
    h2, asrc_t, adst = pl.pallas_call(
        gcn_project_kernel,
        out_shape=(jax.ShapeDtypeStruct((n_pad, NODE_OUT), jnp.bfloat16),
                   jax.ShapeDtypeStruct((HEADS, n_pad), jnp.float32),
                   jax.ShapeDtypeStruct((n_pad, HEADS), jnp.float32)),
        grid_spec=pltpu.PrefetchScalarGridSpec(
            num_scalar_prefetch=0,
            grid=(nq, nk),
            in_specs=[
                pl.BlockSpec((tile, tile), lambda i, k: (i, k)),         # a_norm
                pl.BlockSpec((tile, GCN_OUT), lambda i, k: (k, 0)),      # xw
                pl.BlockSpec((1, GCN_OUT), lambda i, k: (0, 0)),         # b1
                pl.BlockSpec((GCN_OUT, NODE_OUT), lambda i, k: (0, 0)),  # w2
                pl.BlockSpec((HEADS, NODE_OUT), lambda i, k: (0, 0)),    # wsrc_t
                pl.BlockSpec((HEADS, NODE_OUT), lambda i, k: (0, 0)),    # wdst_t
            ],
            out_specs=[
                pl.BlockSpec((tile, NODE_OUT), lambda i, k: (i, 0)),     # h2
                pl.BlockSpec((HEADS, tile), lambda i, k: (0, i)),        # a_src^T
                pl.BlockSpec((tile, HEADS), lambda i, k: (i, 0)),        # a_dst
            ],
            scratch_shapes=[pltpu.VMEM((tile, GCN_OUT), jnp.float32)]),
        compiler_params=pltpu.CompilerParams(
            dimension_semantics=("parallel", "arbitrary"),
            vmem_limit_bytes=vmem_limit),
        cost_estimate=pl.CostEstimate(
            flops=int(2 * n_pad * n_pad * GCN_OUT + 2 * n_pad * GCN_OUT * NODE_OUT
                      + 4 * n_pad * NODE_OUT * HEADS),
            transcendentals=0,
            bytes_accessed=int(2 * n_pad * n_pad + 2 * n_pad * GCN_OUT
                               + 2 * n_pad * NODE_OUT + 8 * n_pad * HEADS)),
    )(a_norm_bf, xw, params["b1"], w2_bf, wsrc_t, wdst_t)

    # ---- kernel B: GAT with online softmax ----------------------------------
    node_out = pl.pallas_call(
        gat_kernel,
        out_shape=jax.ShapeDtypeStruct((n_pad, NODE_OUT), jnp.float32),
        grid_spec=pltpu.PrefetchScalarGridSpec(
            num_scalar_prefetch=0,
            grid=(nq, nk),
            in_specs=[
                pl.BlockSpec((tile, tile), lambda i, k: (i, k)),      # a_norm (mask)
                pl.BlockSpec((tile, NODE_OUT), lambda i, k: (k, 0)),  # h2 neighbors
                pl.BlockSpec((HEADS, tile), lambda i, k: (0, k)),     # a_src^T scores
                pl.BlockSpec((tile, HEADS), lambda i, k: (i, 0)),     # a_dst scores
                pl.BlockSpec((1, NODE_OUT), lambda i, k: (0, 0)),     # b2
            ],
            out_specs=pl.BlockSpec((tile, NODE_OUT), lambda i, k: (i, 0)),
            scratch_shapes=[pltpu.VMEM((tile, HEADS), jnp.float32),       # running max
                            pltpu.VMEM((tile, HEADS), jnp.float32),       # running sum
                            pltpu.VMEM((tile, NODE_OUT), jnp.float32)]),  # acc slab
        compiler_params=pltpu.CompilerParams(
            dimension_semantics=("parallel", "arbitrary"),
            vmem_limit_bytes=vmem_limit),
        cost_estimate=pl.CostEstimate(
            flops=int(2 * HEADS * n_pad * n_pad * GAT_OUT + 8 * HEADS * n_pad * n_pad),
            transcendentals=int(HEADS * n_pad * n_pad),
            bytes_accessed=int(2 * n_pad * n_pad + 6 * n_pad * NODE_OUT
                               + 8 * n_pad * HEADS)),
    )(a_norm_bf, h2, asrc_t, adst, params["b2"])

    # ---- kernel C: global_mean_pool + fc -------------------------------------
    # Note: output lane width = num_classes (<128) -> masked stores; negligible here.
    out = pl.pallas_call(
        pool_fc_kernel,
        out_shape=jax.ShapeDtypeStruct((num_graphs, num_classes), jnp.float32),
        grid_spec=pltpu.PrefetchScalarGridSpec(
            num_scalar_prefetch=0,
            grid=(nk,),
            in_specs=[
                pl.BlockSpec((num_graphs, tile), lambda k: (0, k)),
                pl.BlockSpec((tile, NODE_OUT), lambda k: (k, 0)),
                pl.BlockSpec((NODE_OUT, num_classes), lambda k: (0, 0)),
                pl.BlockSpec((1, num_classes), lambda k: (0, 0)),
            ],
            out_specs=pl.BlockSpec((num_graphs, num_classes), lambda k: (0, 0)),
            scratch_shapes=[pltpu.VMEM((num_graphs, NODE_OUT), jnp.float32)]),
        compiler_params=pltpu.CompilerParams(
            dimension_semantics=("arbitrary",),
            vmem_limit_bytes=vmem_limit),
        cost_estimate=pl.CostEstimate(
            flops=int(2 * num_graphs * n_pad * NODE_OUT
                      + 2 * num_graphs * NODE_OUT * num_classes),
            transcendentals=0,
            bytes_accessed=int(4 * num_graphs * n_pad + 4 * n_pad * NODE_OUT
                               + 4 * NODE_OUT * num_classes)),
    )(pool, node_out, params["wfc"], params["bfc"])

    return out


# --------------------------------------------------------------------------- #
# Pure-JAX f32 reference (identical math, un-padded) for a correctness check.
# --------------------------------------------------------------------------- #
def reference_forward(x, edge_index, batch, params, num_graphs):
    n = x.shape[0]
    src, dst = edge_index[0], edge_index[1]
    a = jnp.clip(jnp.zeros((n, n), jnp.float32).at[dst, src].add(1.0), 0.0, 1.0)
    a_loop = jnp.clip(a + jnp.eye(n, dtype=jnp.float32), 0.0, 1.0)
    dinv = 1.0 / jnp.sqrt(jnp.sum(a_loop, axis=1))
    a_norm = a_loop * dinv[:, None] * dinv[None, :]
    onehot = (batch[None, :] == jnp.arange(num_graphs)[:, None]).astype(jnp.float32)
    pool = onehot / jnp.maximum(jnp.sum(onehot, axis=1, keepdims=True), 1.0)

    h1 = jnp.maximum(a_norm @ (x @ params["w1"]) + params["b1"], 0.0)
    h2 = h1 @ params["w2"]
    mask = a_norm > 0
    outs = []
    for h in range(HEADS):
        hh = h2[:, h * GAT_OUT:(h + 1) * GAT_OUT]
        a_s = (hh * params["att_src"][h]).sum(-1)
        a_d = (hh * params["att_dst"][h]).sum(-1)
        e = a_d[:, None] + a_s[None, :]
        e = jnp.where(e >= 0, e, 0.2 * e)
        e = jnp.where(mask, e, NEG)
        e = e - e.max(-1, keepdims=True)
        p = jnp.exp(e)
        outs.append((p / p.sum(-1, keepdims=True)) @ hh)
    node_out = jnp.maximum(jnp.concatenate(outs, -1) + params["b2"], 0.0)
    return pool @ node_out @ params["wfc"] + params["bfc"]


def init_params(key, feature_dim, num_classes):
    ks = jax.random.split(key, 8)
    return {
        "w1": 0.1 * jax.random.normal(ks[0], (feature_dim, GCN_OUT), jnp.float32),
        "b1": 0.01 * jax.random.normal(ks[1], (1, GCN_OUT), jnp.float32),
        "w2": 0.1 * jax.random.normal(ks[2], (GCN_OUT, NODE_OUT), jnp.float32),
        "b2": 0.01 * jax.random.normal(ks[3], (1, NODE_OUT), jnp.float32),
        "att_src": 0.1 * jax.random.normal(ks[4], (HEADS, GAT_OUT), jnp.float32),
        "att_dst": 0.1 * jax.random.normal(ks[5], (HEADS, GAT_OUT), jnp.float32),
        "wfc": 0.1 * jax.random.normal(ks[6], (NODE_OUT, num_classes), jnp.float32),
        "bfc": 0.01 * jax.random.normal(ks[7], (1, num_classes), jnp.float32),
    }


if __name__ == "__main__":
    feature_dim = 16
    num_classes = 2
    num_graphs = 2
    nodes_per_graph = 8
    N = num_graphs * nodes_per_graph

    key = jax.random.PRNGKey(0)
    k_x, k_p = jax.random.split(key)
    x = jax.random.normal(k_x, (N, feature_dim), jnp.float32)

    # Deterministic graph: a symmetric ring inside each graph.
    edges = []
    for g in range(num_graphs):
        base = g * nodes_per_graph
        for i in range(nodes_per_graph):
            j = (i + 1) % nodes_per_graph
            edges.append((base + i, base + j))
            edges.append((base + j, base + i))
    edge_index = jnp.array(edges, dtype=jnp.int32).T          # [2, E]
    batch = jnp.repeat(jnp.arange(num_graphs, dtype=jnp.int32), nodes_per_graph)

    params = init_params(k_p, feature_dim, num_classes)

    out = graph_bot_detector(x, edge_index, batch, params, num_graphs)
    out = jax.block_until_ready(out)

    ref = jax.block_until_ready(
        reference_forward(x, edge_index, batch, params, num_graphs))
    assert out.shape == (num_graphs, num_classes)
    # bf16 MXU operands + approx reciprocal -> slightly looser tolerance than f32.
    assert jnp.allclose(out, ref, atol=5e-2, rtol=5e-2), (out, ref)

    print("KERNEL_OK")
</pallas_src>

<mosaic_0001>
module attributes {stable_mosaic.version = 11 : i64} {
  func.func @gcn_project_kernel(%arg0: i32, %arg1: i32, %arg2: memref<256x256xbf16, #tpu.memory_space<vmem>>, %arg3: memref<256x256xbf16, #tpu.memory_space<vmem>>, %arg4: memref<1x256xf32, #tpu.memory_space<vmem>>, %arg5: memref<256x384xbf16, #tpu.memory_space<vmem>>, %arg6: memref<3x384xbf16, #tpu.memory_space<vmem>>, %arg7: memref<3x384xbf16, #tpu.memory_space<vmem>>, %arg8: memref<256x384xbf16, #tpu.memory_space<vmem>>, %arg9: memref<3x256xf32, #tpu.memory_space<vmem>>, %arg10: memref<256x3xf32, #tpu.memory_space<vmem>>, %arg11: memref<256x256xf32, #tpu.memory_space<vmem>>) attributes {dimension_semantics = [#tpu.dimension_semantics<parallel>, #tpu.dimension_semantics<arbitrary>], iteration_bounds = array<i64: 1, 1>, scalar_prefetch = 0 : i64, scratch_operands = 1 : i64, tpu.core_type = #tpu.core_type<tc>, window_params = [{transform_indices = @transform_0, window_bounds = array<i64: 256, 256>}, {transform_indices = @transform_1, window_bounds = array<i64: 256, 256>}, {pipeline_mode = #tpu.pipeline_mode<synchronous>, transform_indices = @transform_2, window_bounds = array<i64: 1, 256>}, {pipeline_mode = #tpu.pipeline_mode<synchronous>, transform_indices = @transform_3, window_bounds = array<i64: 256, 384>}, {pipeline_mode = #tpu.pipeline_mode<synchronous>, transform_indices = @transform_4, window_bounds = array<i64: 3, 384>}, {pipeline_mode = #tpu.pipeline_mode<synchronous>, transform_indices = @transform_5, window_bounds = array<i64: 3, 384>}, {transform_indices = @transform_6, window_bounds = array<i64: 256, 384>}, {transform_indices = @transform_7, window_bounds = array<i64: 3, 256>}, {transform_indices = @transform_8, window_bounds = array<i64: 256, 3>}]} {
    %c0_i32 = arith.constant 0 : i32
    %0 = arith.cmpi eq, %arg1, %c0_i32 : i32
    %1 = arith.extui %0 : i1 to i32
    %c0_i32_0 = arith.constant 0 : i32
    %2 = arith.cmpi ne, %1, %c0_i32_0 : i32
    scf.if %2 {
      %cst_10 = arith.constant 0.000000e+00 : f32
      %12 = vector.broadcast %cst_10 : f32 to vector<256x256xf32>
      %c0_11 = arith.constant 0 : index
      %c0_12 = arith.constant 0 : index
      %13 = vector.load %arg11[%c0_11, %c0_12] : memref<256x256xf32, #tpu.memory_space<vmem>>, vector<256x256xf32>
      tpu.vector_store %arg11[%c0_11, %c0_12], %12 {strides = array<i32>} : memref<256x256xf32, #tpu.memory_space<vmem>>, vector<256x256xf32>,
    } else {
    }
    %c0 = arith.constant 0 : index
    %c0_1 = arith.constant 0 : index
    %3 = vector.load %arg11[%c0, %c0_1] : memref<256x256xf32, #tpu.memory_space<vmem>>, vector<256x256xf32>
    %c0_2 = arith.constant 0 : index
    %c0_3 = arith.constant 0 : index
    %4 = vector.load %arg2[%c0_2, %c0_3] : memref<256x256xbf16, #tpu.memory_space<vmem>>, vector<256x256xbf16>
    %c0_4 = arith.constant 0 : index
    %c0_5 = arith.constant 0 : index
    %5 = vector.load %arg3[%c0_4, %c0_5] : memref<256x256xbf16, #tpu.memory_space<vmem>>, vector<256x256xbf16>
    %cst = arith.constant dense<0.000000e+00> : vector<256x256xf32>
    %6 = tpu.matmul %4, %5, %cst {dimension_numbers = #tpu.dot_dimension_numbers<[1], [0], [0], [1], [0, 0, 1, 1], [], []>} : vector<256x256xbf16>, vector<256x256xbf16>, vector<256x256xf32> -> vector<256x256xf32>
    %7 = arith.addf %3, %6 : vector<256x256xf32>
    %c0_6 = arith.constant 0 : index
    %c0_7 = arith.constant 0 : index
    %8 = vector.load %arg11[%c0_6, %c0_7] : memref<256x256xf32, #tpu.memory_space<vmem>>, vector<256x256xf32>
    tpu.vector_store %arg11[%c0_6, %c0_7], %7 {strides = array<i32>} : memref<256x256xf32, #tpu.memory_space<vmem>>, vector<256x256xf32>,
    %c0_i32_8 = arith.constant 0 : i32
    %9 = arith.cmpi eq, %arg1, %c0_i32_8 : i32
    %10 = arith.extui %9 : i1 to i32
    %c0_i32_9 = arith.constant 0 : i32
    %11 = arith.cmpi ne, %10, %c0_i32_9 : i32
    scf.if %11 {
      %c0_10 = arith.constant 0 : index
      %c0_11 = arith.constant 0 : index
      %12 = vector.load %arg11[%c0_10, %c0_11] : memref<256x256xf32, #tpu.memory_space<vmem>>, vector<256x256xf32>
      %c0_12 = arith.constant 0 : index
      %c0_13 = arith.constant 0 : index
      %13 = vector.load %arg4[%c0_12, %c0_13] : memref<1x256xf32, #tpu.memory_space<vmem>>, vector<1x256xf32>
      %14 = vector.broadcast %13 : vector<1x256xf32> to vector<256x256xf32>
      %15 = arith.addf %12, %14 : vector<256x256xf32>
      %cst_14 = arith.constant 0.000000e+00 : f32
      %16 = vector.broadcast %cst_14 : f32 to vector<256x256xf32>
      %17 = arith.maximumf %15, %16 : vector<256x256xf32>
      %18 = arith.truncf %17 : vector<256x256xf32> to vector<256x256xbf16>
      %c0_15 = arith.constant 0 : index
      %c0_16 = arith.constant 0 : index
      %19 = vector.load %arg5[%c0_15, %c0_16] : memref<256x384xbf16, #tpu.memory_space<vmem>>, vector<256x384xbf16>
      %cst_17 = arith.constant dense<0.000000e+00> : vector<256x384xf32>
      %20 = tpu.matmul %18, %19, %cst_17 {dimension_numbers = #tpu.dot_dimension_numbers<[1], [0], [0], [1], [0, 0, 1, 1], [], []>} : vector<256x256xbf16>, vector<256x384xbf16>, vector<256x384xf32> -> vector<256x384xf32>
      %21 = arith.truncf %20 : vector<256x384xf32> to vector<256x384xbf16>
      %c0_18 = arith.constant 0 : index
      %c0_19 = arith.constant 0 : index
      %22 = vector.load %arg8[%c0_18, %c0_19] : memref<256x384xbf16, #tpu.memory_space<vmem>>, vector<256x384xbf16>
      tpu.vector_store %arg8[%c0_18, %c0_19], %21 {strides = array<i32>} : memref<256x384xbf16, #tpu.memory_space<vmem>>, vector<256x384xbf16>,
      %c0_20 = arith.constant 0 : index
      %c0_21 = arith.constant 0 : index
      %23 = vector.load %arg6[%c0_20, %c0_21] : memref<3x384xbf16, #tpu.memory_space<vmem>>, vector<3x384xbf16>
      %cst_22 = arith.constant dense<0.000000e+00> : vector<3x256xf32>
      %24 = tpu.matmul %23, %21, %cst_22 {dimension_numbers = #tpu.dot_dimension_numbers<[1], [1], [0], [0], [0, 0, 1, 0], [], []>} : vector<3x384xbf16>, vector<256x384xbf16>, vector<3x256xf32> -> vector<3x256xf32>
      %c0_23 = arith.constant 0 : index
      %c0_24 = arith.constant 0 : index
      %25 = vector.load %arg9[%c0_23, %c0_24] : memref<3x256xf32, #tpu.memory_space<vmem>>, vector<3x256xf32>
      tpu.vector_store %arg9[%c0_23, %c0_24], %24 {strides = array<i32>} : memref<3x256xf32, #tpu.memory_space<vmem>>, vector<3x256xf32>,
      %c0_25 = arith.constant 0 : index
      %c0_26 = arith.constant 0 : index
      %26 = vector.load %arg7[%c0_25, %c0_26] : memref<3x384xbf16, #tpu.memory_space<vmem>>, vector<3x384xbf16>
      %cst_27 = arith.constant dense<0.000000e+00> : vector<256x3xf32>
      %27 = tpu.matmul %21, %26, %cst_27 {dimension_numbers = #tpu.dot_dimension_numbers<[1], [1], [0], [0], [0, 0, 1, 0], [], []>} : vector<256x384xbf16>, vector<3x384xbf16>, vector<256x3xf32> -> vector<256x3xf32>
      %c0_28 = arith.constant 0 : index
      %c0_29 = arith.constant 0 : index
      %28 = vector.load %arg10[%c0_28, %c0_29] : memref<256x3xf32, #tpu.memory_space<vmem>>, vector<256x3xf32>
      tpu.vector_store %arg10[%c0_28, %c0_29], %27 {strides = array<i32>} : memref<256x3xf32, #tpu.memory_space<vmem>>, vector<256x3xf32>,
    } else {
    }
    return
  }
  func.func @transform_0(%arg0: i32, %arg1: i32) -> (i32, i32) {
    %c0_i32 = arith.constant 0 : i32
    return %arg0, %arg1 : i32, i32
  }
  func.func @transform_1(%arg0: i32, %arg1: i32) -> (i32, i32) {
    %c0_i32 = arith.constant 0 : i32
    %c0_i32_0 = arith.constant 0 : i32
    return %arg1, %c0_i32 : i32, i32
  }
  func.func @transform_2(%arg0: i32, %arg1: i32) -> (i32, i32) {
    %c0_i32 = arith.constant 0 : i32
    %c0_i32_0 = arith.constant 0 : i32
    %c0_i32_1 = arith.constant 0 : i32
    return %c0_i32, %c0_i32_0 : i32, i32
  }
  func.func @transform_3(%arg0: i32, %arg1: i32) -> (i32, i32) {
    %c0_i32 = arith.constant 0 : i32
    %c0_i32_0 = arith.constant 0 : i32
    %c0_i32_1 = arith.constant 0 : i32
    return %c0_i32, %c0_i32_0 : i32, i32
  }
  func.func @transform_4(%arg0: i32, %arg1: i32) -> (i32, i32) {
    %c0_i32 = arith.constant 0 : i32
    %c0_i32_0 = arith.constant 0 : i32
    %c0_i32_1 = arith.constant 0 : i32
    return %c0_i32, %c0_i32_0 : i32, i32
  }
  func.func @transform_5(%arg0: i32, %arg1: i32) -> (i32, i32) {
    %c0_i32 = arith.constant 0 : i32
    %c0_i32_0 = arith.constant 0 : i32
    %c0_i32_1 = arith.constant 0 : i32
    return %c0_i32, %c0_i32_0 : i32, i32
  }
  func.func @transform_6(%arg0: i32, %arg1: i32) -> (i32, i32) {
    %c0_i32 = arith.constant 0 : i32
    %c0_i32_0 = arith.constant 0 : i32
    return %arg0, %c0_i32 : i32, i32
  }
  func.func @transform_7(%arg0: i32, %arg1: i32) -> (i32, i32) {
    %c0_i32 = arith.constant 0 : i32
    %c0_i32_0 = arith.constant 0 : i32
    return %c0_i32, %arg0 : i32, i32
  }
  func.func @transform_8(%arg0: i32, %arg1: i32) -> (i32, i32) {
    %c0_i32 = arith.constant 0 : i32
    %c0_i32_0 = arith.constant 0 : i32
    return %arg0, %c0_i32 : i32, i32
  }
}

</mosaic_0001>

<bundles_post_ra>
// kernel: tpu_custom_call.1
= control target key start
LH: loop header
LB: loop body
LE: loop exit
PB: predicated region body
PF: predicated region fallthrough
CT: control target
= control target key end

     0   :  { %14 = vsyncpa [#allocation4], 0  ;;  %s5079_s0 = inlined_call_operand.hbm [shape: bf16[256,256], index: 0, kind: input, shape index: {}]   ;;  %s5080_s1 = inlined_call_operand.hbm [shape: bf16[256,256], index: 1, kind: input, shape index: {}]   ;;  %s5081_s2 = inlined_call_operand.hbm [shape: f32[1,256], index: 2, kind: input, shape index: {}]   ;;  %s5082_s3 = inlined_call_operand.hbm [shape: bf16[256,384], index: 3, kind: input, shape index: {}]   ;;  %s5083_s4 = inlined_call_operand.hbm [shape: bf16[3,384], index: 4, kind: input, shape index: {}]   ;;  %s5084_s5 = inlined_call_operand.hbm [shape: bf16[3,384], index: 5, kind: input, shape index: {}]   ;;  %s5085_s6 = inlined_call_operand.hbm [shape: bf16[256,384], index: 6, kind: output, shape index: {0}]   ;;  %s5086_s7 = inlined_call_operand.hbm [shape: f32[3,256], index: 7, kind: output, shape index: {1}]   ;;  %s5087_s8 = inlined_call_operand.vmem [shape: f32[256,3], index: 8, kind: output, shape index: {2}]  }
   0x1   :  { %15 = vsyncpa [#allocation7], 0 }
   0x2   :  { %16 = vsyncpa [#allocation10], 0 }
   0x3   :  { %17 = vsyncpa [#allocation13], 0 }
   0x4   :  { %18 = vsyncpa [#allocation5], 0 }
   0x5   :  { %19 = vsyncpa [#allocation16], 0  ;;  %s37_s29 = sshll.u32 %s5080_s1, 4  ;;  %s3817_s30 = smov [#allocation6]   ;;  %s38_s29 = int_to_ptr.hbm [resolvable:$true] %s37_s29 }
   0x6   :  { %s39_s9 = sshll.u32 %s3817_s30, 4  ;;  %s61_s12 = sshll.u32 %s5082_s3, 4  ;;  %s40_s9 = int_to_ptr.vmem [resolvable:$true] %s39_s9  ;;  %s62_s12 = int_to_ptr.hbm [resolvable:$true] %s61_s12 }
   0x7   :  { %s3818_s13 = smov 128   ;;  %s3819_s14 = smov 8  }
   0x8   :  { %45 = dma.hbm_to_vmem [thread:$0]  %s38_s29, 4096, %s40_s9, [#allocation7], %s3818_s13, %s3818_s13, %s3819_s14  }
   0x9   :  { %s3820_s15 = smov [#allocation9]   ;;  %s3821_s17 = smov 192  }
   0xa   :  { %s63_s16 = sshll.u32 %s3820_s15, 4  ;;  %s3822_s18 = smov 12   ;;  %s64_s16 = int_to_ptr.vmem [resolvable:$true] %s63_s16 }
   0xb   :  { %69 = dma.hbm_to_vmem [thread:$0]  %s62_s12, 6144, %s64_s16, [#allocation10], %s3821_s17, %s3821_s17, %s3822_s18  }
   0xc   :  { %s24_s20 = sshll.u32 %s5079_s0, 4  ;;  %s3823_s21 = smov [#allocation3]   ;;  %s25_s20 = int_to_ptr.hbm [resolvable:$true] %s24_s20 }
   0xd   :  { %s26_s3 = sshll.u32 %s3823_s21, 4  ;;  %s51_s24 = sshll.u32 %s5081_s2, 4  ;;  %s27_s3 = int_to_ptr.vmem [resolvable:$true] %s26_s3  ;;  %s52_s24 = int_to_ptr.hbm [resolvable:$true] %s51_s24 }
   0xe   :  { %32 = dma.hbm_to_vmem [thread:$0]  %s25_s20, 4096, %s27_s3, [#allocation4], %s3818_s13, %s3818_s13, %s3819_s14  }
   0xf   :  { %s3824_s25 = smov [#allocation8]   ;;  %s75_s29 = sshll.u32 %s5083_s4, 4  ;;  %s76_s29 = int_to_ptr.hbm [resolvable:$true] %s75_s29 }
  0x10   :  { %s53_s26 = sshll.u32 %s3824_s25, 4  ;;  %s86_s9 = sshll.u32 %s5084_s5, 4  ;;  %s54_s26 = int_to_ptr.vmem [resolvable:$true] %s53_s26  ;;  %s87_s9 = int_to_ptr.hbm [resolvable:$true] %s86_s9 }
  0x11   :  { %56 = dma.hbm_to_vmem [thread:$0]  %s52_s24, 32, %s54_s26, [#allocation7]  }
  0x12   :  { %s3825_s10 = smov [#allocation11]   ;;  %s3826_s2 = smov [#allocation12]  }
  0x13   :  { %s77_s11 = sshll.u32 %s3825_s10, 4  ;;  %s88_s12 = sshll.u32 %s3826_s2, 4  ;;  %s78_s11 = int_to_ptr.vmem [resolvable:$true] %s77_s11  ;;  %s89_s12 = int_to_ptr.vmem [resolvable:$true] %s88_s12 }
  0x14   :  { %80 = dma.hbm_to_vmem [thread:$0]  %s76_s29, 96, %s78_s11, [#allocation10]  }
  0x15   :  { %91 = dma.hbm_to_vmem [thread:$0]  %s87_s9, 96, %s89_s12, [#allocation13]  }
  0x16   :  { %3805 = dma.done.wait [#allocation4], 4096  }
  0x17   :  { %3806 = vsyncadd [#allocation4], 4294963200 }
  0x18   :  { %3807 = dma.done.wait [#allocation7], 4128  }
  0x19   :  { %3808 = vsyncadd [#allocation7], 4294963168 }
  0x1a   :  { %3809 = dma.done.wait [#allocation10], 6240  }
  0x1b   :  { %3810 = vsyncadd [#allocation10], 4294961056 }
  0x1c   :  { %3811 = dma.done.wait [#allocation13], 96  }
  0x1d   :  { %3812 = vsyncadd [#allocation13], 4294967200  ;;  %v3219_v0 = vld [vmem:[#allocation6 + $0x70] sm:$0xf]  ;;  %v3528_v1 = vld [vmem:[#allocation6 + $0x74] sm:$0xf0] }
  0x1e   :  { %v3527_v2 = vld [vmem:[#allocation6 + $0x74] sm:$0xf]  ;;  %v3220_v3 = vor.u32 %v3528_v1, %v3219_v0  ;;  %v3221_v4 = vld [vmem:[#allocation6 + $0x78] sm:$0xf0]  ;;  %v3211_v9 = vld [vmem:[#allocation6 + $0x60] sm:$0xf] }
  0x1f   :  { %v3543_v5 = vld [vmem:[#allocation6 + $0xf4] sm:$0xf]  ;;  %v3285_v6 = vld [vmem:[#allocation6 + $0xf8] sm:$0xf0]  ;;  %v3224_v7 = vor.u32 %v3527_v2, %v3221_v4  ;;  %v3526_v10 = vld [vmem:[#allocation6 + $0x64] sm:$0xf0] }
  0x20   :  { %v3288_v8 = vor.u32 %v3543_v5, %v3285_v6  ;;  %v3525_v11 = vld [vmem:[#allocation6 + $0x64] sm:$0xf]  ;;  %3593 = vmatpush.bf16.msra.mxu1 %v3220_v3  ;;  %v3212_v12 = vor.u32 %v3526_v10, %v3211_v9  ;;  %v3213_v13 = vld [vmem:[#allocation6 + $0x68] sm:$0xf0]  ;;  %633 = vmatpush.bf16.msra.mxu0 %v3220_v3  ;;  %v3203_v18 = vld [vmem:[#allocation6 + $0x50] sm:$0xf] }
  0x21   :  { %v3541_v14 = vld [vmem:[#allocation6 + $0xe4] sm:$0xf]  ;;  %v3277_v15 = vld [vmem:[#allocation6 + $0xe8] sm:$0xf0]  ;;  %811 = vmatpush.bf16.msra.mxu2 %v3224_v7  ;;  %v3216_v16 = vor.u32 %v3525_v11, %v3213_v13  ;;  %v3524_v19 = vld [vmem:[#allocation6 + $0x54] sm:$0xf0] }
  0x22   :  { %900 = vmatpush.bf16.msra.mxu3 %v3288_v8  ;;  %v3280_v17 = vor.u32 %v3541_v14, %v3277_v15  ;;  %v3523_v20 = vld [vmem:[#allocation6 + $0x54] sm:$0xf]  ;;  %v3205_v21 = vld [vmem:[#allocation6 + $0x58] sm:$0xf0]  ;;  %v3204_v24 = vor.u32 %v3524_v19, %v3203_v18  ;;  %v3195_v27 = vld [vmem:[#allocation6 + $0x40] sm:$0xf] }
  0x23   :  { %v3539_v22 = vld [vmem:[#allocation6 + $0xd4] sm:$0xf]  ;;  %v3269_v23 = vld [vmem:[#allocation6 + $0xd8] sm:$0xf0]  ;;  %v3208_v25 = vor.u32 %v3523_v20, %v3205_v21  ;;  %v3522_v28 = vld [vmem:[#allocation6 + $0x44] sm:$0xf0] }
  0x24   :  { %3594 = vmatpush.bf16.msra.mxu1 %v3212_v12  ;;  %634 = vmatpush.bf16.msra.mxu0 %v3212_v12  ;;  %v3272_v26 = vor.u32 %v3539_v22, %v3269_v23  ;;  %v3521_v29 = vld [vmem:[#allocation6 + $0x44] sm:$0xf]  ;;  %v3197_v30 = vld [vmem:[#allocation6 + $0x48] sm:$0xf0]  ;;  %v3196_v33 = vor.u32 %v3522_v28, %v3195_v27  ;;  %v3187_v36 = vld [vmem:[#allocation6 + $0x30] sm:$0xf] }
  0x25   :  { %812 = vmatpush.bf16.msra.mxu2 %v3216_v16  ;;  %v3537_v31 = vld [vmem:[#allocation6 + $0xc4] sm:$0xf]  ;;  %v3261_v32 = vld [vmem:[#allocation6 + $0xc8] sm:$0xf0]  ;;  %v3200_v34 = vor.u32 %v3521_v29, %v3197_v30  ;;  %v3520_v37 = vld [vmem:[#allocation6 + $0x34] sm:$0xf0] }
  0x26   :  { %901 = vmatpush.bf16.msra.mxu3 %v3280_v17  ;;  %v3264_v35 = vor.u32 %v3537_v31, %v3261_v32  ;;  %v3519_v38 = vld [vmem:[#allocation6 + $0x34] sm:$0xf]  ;;  %v3189_v39 = vld [vmem:[#allocation6 + $0x38] sm:$0xf0]  ;;  %v3188_v42 = vor.u32 %v3520_v37, %v3187_v36  ;;  %v3179_v45 = vld [vmem:[#allocation6 + $0x20] sm:$0xf] }
  0x27   :  { %v3535_v40 = vld [vmem:[#allocation6 + $0xb4] sm:$0xf]  ;;  %v3253_v41 = vld [vmem:[#allocation6 + $0xb8] sm:$0xf0]  ;;  %v3192_v43 = vor.u32 %v3519_v38, %v3189_v39  ;;  %v3518_v46 = vld [vmem:[#allocation6 + $0x24] sm:$0xf0] }
  0x28   :  { %3595 = vmatpush.bf16.msra.mxu1 %v3204_v24  ;;  %635 = vmatpush.bf16.msra.mxu0 %v3204_v24  ;;  %v3256_v44 = vor.u32 %v3535_v40, %v3253_v41  ;;  %v3517_v47 = vld [vmem:[#allocation6 + $0x24] sm:$0xf]  ;;  %v3181_v48 = vld [vmem:[#allocation6 + $0x28] sm:$0xf0]  ;;  %v3180_v51 = vor.u32 %v3518_v46, %v3179_v45  ;;  %v3171_v54 = vld [vmem:[#allocation6 + $0x10] sm:$0xf] }
  0x29   :  { %813 = vmatpush.bf16.msra.mxu2 %v3208_v25  ;;  %v3533_v49 = vld [vmem:[#allocation6 + $0xa4] sm:$0xf]  ;;  %v3245_v50 = vld [vmem:[#allocation6 + $0xa8] sm:$0xf0]  ;;  %v3184_v52 = vor.u32 %v3517_v47, %v3181_v48  ;;  %v3516_v55 = vld [vmem:[#allocation6 + $0x14] sm:$0xf0] }
  0x2a   :  { %902 = vmatpush.bf16.msra.mxu3 %v3272_v26  ;;  %v3248_v53 = vor.u32 %v3533_v49, %v3245_v50  ;;  %v3515_v56 = vld [vmem:[#allocation6 + $0x14] sm:$0xf]  ;;  %v3173_v57 = vld [vmem:[#allocation6 + $0x18] sm:$0xf0]  ;;  %v3172_v60 = vor.u32 %v3516_v55, %v3171_v54  ;;  %v3163_v63 = vld [vmem:[#allocation6] sm:$0xf] }
  0x2b   :  { %v3531_v58 = vld [vmem:[#allocation6 + $0x94] sm:$0xf]  ;;  %v3237_v59 = vld [vmem:[#allocation6 + $0x98] sm:$0xf0]  ;;  %v3176_v61 = vor.u32 %v3515_v56, %v3173_v57  ;;  %v3514_v0 = vld [vmem:[#allocation6 + $0x4] sm:$0xf0] }
  0x2c   :  { %3596 = vmatpush.bf16.msra.mxu1 %v3196_v33  ;;  %636 = vmatpush.bf16.msra.mxu0 %v3196_v33  ;;  %v3240_v62 = vor.u32 %v3531_v58, %v3237_v59  ;;  %v3513_v1 = vld [vmem:[#allocation6 + $0x4] sm:$0xf]  ;;  %v3165_v2 = vld [vmem:[#allocation6 + $0x8] sm:$0xf0]  ;;  %v3283_v5 = vld [vmem:[#allocation6 + $0xf0] sm:$0xf]  ;;  %v3164_v7 = vor.u32 %v3514_v0, %v3163_v63 }
  0x2d   :  { %814 = vmatpush.bf16.msra.mxu2 %v3200_v34  ;;  %v3529_v3 = vld [vmem:[#allocation6 + $0x84] sm:$0xf]  ;;  %v3229_v4 = vld [vmem:[#allocation6 + $0x88] sm:$0xf0]  ;;  %v3544_v6 = vld [vmem:[#allocation6 + $0xf4] sm:$0xf0]  ;;  %v3168_v11 = vor.u32 %v3513_v1, %v3165_v2 }
  0x2e   :  { %903 = vmatpush.bf16.msra.mxu3 %v3264_v35  ;;  %v3107_v8 = vld [vmem:[#allocation3 + $0x90] sm:$0xf]  ;;  %v3500_v9 = vld [vmem:[#allocation3 + $0x94] sm:$0xf0]  ;;  %v3035_v10 = vld [vmem:[#allocation3] sm:$0xf]  ;;  %v3232_v12 = vor.u32 %v3529_v3, %v3229_v4  ;;  %v3284_v16 = vor.u32 %v3544_v6, %v3283_v5 }
  0x2f   :  { %v3482_v13 = vld [vmem:[#allocation3 + $0x4] sm:$0xf0]  ;;  %v3481_v14 = vld [vmem:[#allocation3 + $0x4] sm:$0xf]  ;;  %v3037_v15 = vld [vmem:[#allocation3 + $0x8] sm:$0xf0]  ;;  %v3895_v17 = vor.u32 %v3500_v9, %v3107_v8 }
  0x30   :  { %3597 = vmatpush.bf16.msra.mxu1 %v3188_v42  ;;  %637 = vmatpush.bf16.msra.mxu0 %v3188_v42  ;;  %v3275_v18 = vld [vmem:[#allocation6 + $0xe0] sm:$0xf]  ;;  %v3542_v19 = vld [vmem:[#allocation6 + $0xe4] sm:$0xf0]  ;;  %v3036_v20 = vor.u32 %v3482_v13, %v3035_v10  ;;  %v3897_v21 = vor.u32 %v3481_v14, %v3037_v15  ;;  %v3267_v23 = vld [vmem:[#allocation6 + $0xd0] sm:$0xf] }
  0x31   :  { %815 = vmatpush.bf16.msra.mxu2 %v3192_v43  ;;  %v3276_v22 = vor.u32 %v3542_v19, %v3275_v18  ;;  %v3540_v24 = vld [vmem:[#allocation6 + $0xd4] sm:$0xf0]  ;;  %v3259_v26 = vld [vmem:[#allocation6 + $0xc0] sm:$0xf]  ;;  %v3538_v27 = vld [vmem:[#allocation6 + $0xc4] sm:$0xf0] }
  0x32   :  { %904 = vmatpush.bf16.msra.mxu3 %v3256_v44  ;;  %v3268_v25 = vor.u32 %v3540_v24, %v3267_v23  ;;  %v3260_v28 = vor.u32 %v3538_v27, %v3259_v26  ;;  %v3115_v29 = vld [vmem:[#allocation3 + $0xa0] sm:$0xf]  ;;  %v3502_v30 = vld [vmem:[#allocation3 + $0xa4] sm:$0xf0]  ;;  %v3043_v31 = vld [vmem:[#allocation3 + $0x10] sm:$0xf] }
  0x33   :  { %v3484_v32 = vld [vmem:[#allocation3 + $0x14] sm:$0xf0]  ;;  %v3483_v33 = vld [vmem:[#allocation3 + $0x14] sm:$0xf]  ;;  %v3045_v34 = vld [vmem:[#allocation3 + $0x18] sm:$0xf0]  ;;  %v3901_v35 = vor.u32 %v3502_v30, %v3115_v29 }
  0x34   :  { %3598 = vmatpush.bf16.msra.mxu1 %v3180_v51  ;;  %638 = vmatpush.bf16.msra.mxu0 %v3180_v51  ;;  %v3044_v36 = vor.u32 %v3484_v32, %v3043_v31  ;;  %v3903_v37 = vor.u32 %v3483_v33, %v3045_v34  ;;  %v3251_v38 = vld [vmem:[#allocation6 + $0xb0] sm:$0xf]  ;;  %v3536_v39 = vld [vmem:[#allocation6 + $0xb4] sm:$0xf0]  ;;  %v3051_v43 = vld [vmem:[#allocation3 + $0x20] sm:$0xf] }
  0x35   :  { %816 = vmatpush.bf16.msra.mxu2 %v3184_v52  ;;  %v3252_v40 = vor.u32 %v3536_v39, %v3251_v38  ;;  %v3123_v41 = vld [vmem:[#allocation3 + $0xb0] sm:$0xf]  ;;  %v3504_v42 = vld [vmem:[#allocation3 + $0xb4] sm:$0xf0]  ;;  %v3486_v44 = vld [vmem:[#allocation3 + $0x24] sm:$0xf0] }
  0x36   :  { %905 = vmatpush.bf16.msra.mxu3 %v3248_v53  ;;  %v3485_v45 = vld [vmem:[#allocation3 + $0x24] sm:$0xf]  ;;  %v3053_v46 = vld [vmem:[#allocation3 + $0x28] sm:$0xf0]  ;;  %v3907_v47 = vor.u32 %v3504_v42, %v3123_v41  ;;  %v3052_v48 = vor.u32 %v3486_v44, %v3051_v43  ;;  %v3243_v50 = vld [vmem:[#allocation6 + $0xa0] sm:$0xf] }
  0x37   :  { %v3909_v49 = vor.u32 %v3485_v45, %v3053_v46  ;;  %v3534_v51 = vld [vmem:[#allocation6 + $0xa4] sm:$0xf0]  ;;  %v3131_v53 = vld [vmem:[#allocation3 + $0xc0] sm:$0xf]  ;;  %v3059_v55 = vld [vmem:[#allocation3 + $0x30] sm:$0xf] }
  0x38   :  { %3599 = vmatpush.bf16.msra.mxu1 %v3172_v60  ;;  %639 = vmatpush.bf16.msra.mxu0 %v3172_v60  ;;  %v3244_v52 = vor.u32 %v3534_v51, %v3243_v50  ;;  %v3506_v54 = vld [vmem:[#allocation3 + $0xc4] sm:$0xf0]  ;;  %v3488_v56 = vld [vmem:[#allocation3 + $0x34] sm:$0xf0]  ;;  %v3487_v57 = vld [vmem:[#allocation3 + $0x34] sm:$0xf] }
  0x39   :  { %817 = vmatpush.bf16.msra.mxu2 %v3176_v61  ;;  %v3061_v58 = vld [vmem:[#allocation3 + $0x38] sm:$0xf0]  ;;  %v3913_v59 = vor.u32 %v3506_v54, %v3131_v53  ;;  %v3060_v60 = vor.u32 %v3488_v56, %v3059_v55  ;;  %v3532_v63 = vld [vmem:[#allocation6 + $0x94] sm:$0xf0]  ;;  %v3139_v1 = vld [vmem:[#allocation3 + $0xd0] sm:$0xf] }
  0x3a   :  { %906 = vmatpush.bf16.msra.mxu3 %v3240_v62  ;;  %v3915_v61 = vor.u32 %v3487_v57, %v3061_v58  ;;  %v3235_v62 = vld [vmem:[#allocation6 + $0x90] sm:$0xf]  ;;  %v3508_v2 = vld [vmem:[#allocation3 + $0xd4] sm:$0xf0]  ;;  %v3067_v3 = vld [vmem:[#allocation3 + $0x40] sm:$0xf] }
  0x3b   :  { %v3236_v0 = vor.u32 %v3532_v63, %v3235_v62  ;;  %v3490_v4 = vld [vmem:[#allocation3 + $0x44] sm:$0xf0]  ;;  %v3489_v5 = vld [vmem:[#allocation3 + $0x44] sm:$0xf]  ;;  %v3069_v6 = vld [vmem:[#allocation3 + $0x48] sm:$0xf0] }
  0x3c   :  { %3600 = vmatpush.bf16.msra.mxu1 %v3164_v7  ;;  %640 = vmatpush.bf16.msra.mxu0 %v3164_v7  ;;  %v3919_v7 = vor.u32 %v3508_v2, %v3139_v1  ;;  %v3068_v8 = vor.u32 %v3490_v4, %v3067_v3  ;;  %v3921_v9 = vor.u32 %v3489_v5, %v3069_v6  ;;  %v3227_v10 = vld [vmem:[#allocation6 + $0x80] sm:$0xf]  ;;  %v3510_v14 = vld [vmem:[#allocation3 + $0xe4] sm:$0xf0]  ;;  %v3075_v15 = vld [vmem:[#allocation3 + $0x50] sm:$0xf] }
  0x3d   :  { %818 = vmatpush.bf16.msra.mxu2 %v3168_v11  ;;  %v3530_v11 = vld [vmem:[#allocation6 + $0x84] sm:$0xf0]  ;;  %v3147_v13 = vld [vmem:[#allocation3 + $0xe0] sm:$0xf]  ;;  %v3491_v18 = vld [vmem:[#allocation3 + $0x54] sm:$0xf] }
  0x3e   :  { %907 = vmatpush.bf16.msra.mxu3 %v3232_v12  ;;  %v3228_v12 = vor.u32 %v3530_v11, %v3227_v10  ;;  %v3077_v19 = vld [vmem:[#allocation3 + $0x58] sm:$0xf0]  ;;  %v3471_v24 = vld [vmem:[#allocation9 + $0x168] sm:$0xf]  ;;  %v3155_v27 = vld [vmem:[#allocation3 + $0xf0] sm:$0xf] }
  0x3f   :  { %686 = vmatmul.bf16.vlgmr.msra.gmra.mxu1 %v3895_v17  ;;  %641 = vmatmul.bf16.vlgmr.msra.gmra.mxu0 %v3036_v20  ;;  %v3927_v23 = vor.u32 %v3491_v18, %v3077_v19  ;;  %v3083_v29 = vld [vmem:[#allocation3 + $0x60] sm:$0xf]  ;;  %v3494_v30 = vld [vmem:[#allocation3 + $0x64] sm:$0xf0]  ;;  %v3493_v31 = vld [vmem:[#allocation3 + $0x64] sm:$0xf] }
  0x40   :  { %722 = vmatpush.bf16.msrb.mxu1 %v3284_v16  ;;  %819 = vmatmul.bf16.vlgmr.msra.gmra.mxu2 %v3036_v20  ;;  %v3492_v16 = vld [vmem:[#allocation3 + $0x54] sm:$0xf0]  ;;  %v3925_v20 = vor.u32 %v3510_v14, %v3147_v13  ;;  %v3085_v32 = vld [vmem:[#allocation3 + $0x68] sm:$0xf0]  ;;  %v3084_v34 = vor.u32 %v3494_v30, %v3083_v29  ;;  %v3091_v38 = vld [vmem:[#allocation3 + $0x70] sm:$0xf] }
  0x41   :  { %908 = vmatmul.bf16.vlgmr.msra.gmra.mxu3 %v3897_v21  ;;  %v3496_v39 = vld [vmem:[#allocation3 + $0x74] sm:$0xf0]  ;;  %v3093_v41 = vld [vmem:[#allocation3 + $0x78] sm:$0xf0]  ;;  %v3459_v44 = vld [vmem:[#allocation9 + $0x150] sm:$0xf] }
  0x42   :  { %v3092_v42 = vor.u32 %v3496_v39, %v3091_v38  ;;  %v3588_v45 = vld [vmem:[#allocation9 + $0x158] sm:$0xf0]  ;;  %v3498_v50 = vld [vmem:[#allocation3 + $0x84] sm:$0xf0]  ;;  %v3497_v51 = vld [vmem:[#allocation3 + $0x84] sm:$0xf] }
  0x43   :  { %v3460_v46 = vor.u32 %v3588_v45, %v3459_v44  ;;  %v3499_v58 = vld [vmem:[#allocation3 + $0x94] sm:$0xf]  ;;  %v3585_v2 = vld [vmem:[#allocation9 + $0x140] sm:$0xf0]  ;;  %v3117_v10 = vld [vmem:[#allocation3 + $0xa8] sm:$0xf0] }
  0x44   :  { %723 = vmatpush.bf16.msrb.mxu1 %v3276_v22  ;;  %v3076_v22 = vor.u32 %v3492_v16, %v3075_v15  ;;  %v3503_v16 = vld [vmem:[#allocation3 + $0xb4] sm:$0xf]  ;;  %v3125_v18 = vld [vmem:[#allocation3 + $0xb8] sm:$0xf0]  ;;  %v3505_v30 = vld [vmem:[#allocation3 + $0xc4] sm:$0xf] }
  0x45   :  { %v3375_v38 = vld [vmem:[#allocation9 + $0xa8] sm:$0xf]  ;;  %v3567_v39 = vld [vmem:[#allocation9 + $0xb0] sm:$0xf0]  ;;  %v3590_v44 = vld [vmem:[#allocation9 + $0x16c] sm:$0xf] }
  0x46   :  { %vm2678_vm0 = vcmask 1043456   ;;  %vm2958_vm1 = vcmask 23552   ;;  %s3827_s15 = smov [#allocation14]   ;;  %s2997_s20 = sshll.u32 %s5085_s6, 4  ;;  %s2998_s20 = int_to_ptr.hbm [resolvable:$true] %s2997_s20 }
  0x47   :  { %s2995_s16 = sshll.u32 %s3827_s15, 4  ;;  %s3828_s22 = smov [#allocation15]   ;;  %s2996_s16 = int_to_ptr.vmem [resolvable:$true] %s2995_s16 }
  0x48   :  { %724 = vmatpush.bf16.msrb.mxu1 %v3268_v25  ;;  %v3591_v25 = vld [vmem:[#allocation9 + $0x170] sm:$0xf0]  ;;  %s3009_s23 = sshll.u32 %s3828_s22, 4  ;;  %s3011_s26 = sshll.u32 %s5086_s7, 4  ;;  %s3010_s23 = int_to_ptr.vmem [resolvable:$true] %s3009_s23  ;;  %s3012_s26 = int_to_ptr.hbm [resolvable:$true] %s3011_s26 }
  0x49   :  { %v3472_v26 = vor.u32 %v3591_v25, %v3471_v24  ;;  %v3993_v25 = vor.u32 %v3503_v16, %v3125_v18  ;;  %v3561_v16 = vld [vmem:[#allocation9 + $0x80] sm:$0xf0] }
  0x4c   :  { %725 = vmatpush.bf16.msrb.mxu1 %v3260_v28  ;;  %v3512_v28 = vld [vmem:[#allocation3 + $0xf4] sm:$0xf0] }
  0x4d   :  { %v3931_v33 = vor.u32 %v3512_v28, %v3155_v27 }
  0x4f   :  { %691 = vmatmul.bf16.gmra.mxu1 %v3901_v35  ;;  %646 = vmatmul.bf16.gmra.mxu0 %v3044_v36 }
  0x50   :  { %824 = vmatmul.bf16.gmra.mxu2 %v3044_v36  ;;  %726 = vmatpush.bf16.msrb.mxu1 %v3252_v40  ;;  %v3933_v36 = vor.u32 %v3493_v31, %v3085_v32  ;;  %v3495_v40 = vld [vmem:[#allocation3 + $0x74] sm:$0xf]  ;;  %v3133_v31 = vld [vmem:[#allocation3 + $0xc8] sm:$0xf0] }
  0x51   :  { %913 = vmatmul.bf16.gmra.mxu3 %v3903_v37  ;;  %v3937_v43 = vor.u32 %v3495_v40, %v3093_v41  ;;  %v3376_v40 = vor.u32 %v3567_v39, %v3375_v38  ;;  %v3566_v41 = vld [vmem:[#allocation9 + $0xac] sm:$0xf] }
  0x53   :  { %1670 = vmatpush.bf16.msrb.mxu0 %v3376_v40  ;;  %v3339_v40 = vld [vmem:[#allocation9 + $0x60] sm:$0xf] }
  0x54   :  { %727 = vmatpush.bf16.msrb.mxu1 %v3244_v52  ;;  %v3101_v52 = vld [vmem:[#allocation3 + $0x88] sm:$0xf0] }
  0x55   :  { %v3943_v55 = vor.u32 %v3497_v51, %v3101_v52  ;;  %v3564_v51 = vld [vmem:[#allocation9 + $0x98] sm:$0xf0] }
  0x58   :  { %728 = vmatpush.bf16.msrb.mxu1 %v3236_v0 }
  0x5c   :  { %729 = vmatpush.bf16.msrb.mxu1 %v3228_v12 }
  0x5f   :  { %696 = vmatmul.bf16.gmra.mxu1 %v3907_v47  ;;  %651 = vmatmul.bf16.gmra.mxu0 %v3052_v48 }
  0x60   :  { %829 = vmatmul.bf16.gmra.mxu2 %v3052_v48  ;;  %1759 = vmatpush.bf16.msra.mxu1 %v3472_v26  ;;  %v3099_v48 = vld [vmem:[#allocation3 + $0x80] sm:$0xf] }
  0x61   :  { %918 = vmatmul.bf16.gmra.mxu3 %v3909_v49  ;;  %v3100_v54 = vor.u32 %v3498_v50, %v3099_v48  ;;  %v3363_v50 = vld [vmem:[#allocation9 + $0x90] sm:$0xf] }
  0x62   :  { %v3364_v52 = vor.u32 %v3564_v51, %v3363_v50  ;;  %v3581_v50 = vld [vmem:[#allocation9 + $0x124] sm:$0xf] }
  0x64   :  { %1760 = vmatpush.bf16.msra.mxu1 %v3460_v46  ;;  %v3473_v46 = vld [vmem:[#allocation9 + $0x174] sm:$0xf0]  ;;  %1671 = vmatpush.bf16.msrb.mxu0 %v3364_v52 }
  0x65   :  { %v3476_v48 = vor.u32 %v3590_v44, %v3473_v46  ;;  %v3141_v44 = vld [vmem:[#allocation3 + $0xd8] sm:$0xf0]  ;;  %v3557_v46 = vld [vmem:[#allocation9 + $0x64] sm:$0xf] }
  0x67   :  { %1937 = vmatpush.bf16.msrb.mxu3 %v3476_v48  ;;  %v3341_v48 = vld [vmem:[#allocation9 + $0x6c] sm:$0xf0] }
  0x6f   :  { %701 = vmatmul.bf16.gmra.mxu1 %v3913_v59  ;;  %656 = vmatmul.bf16.gmra.mxu0 %v3060_v60 }
  0x70   :  { %834 = vmatmul.bf16.gmra.mxu2 %v3060_v60  ;;  %v3109_v60 = vld [vmem:[#allocation3 + $0x98] sm:$0xf0] }
  0x71   :  { %923 = vmatmul.bf16.gmra.mxu3 %v3915_v61  ;;  %v3959_v1 = vor.u32 %v3499_v58, %v3109_v60  ;;  %v3365_v58 = vld [vmem:[#allocation9 + $0x9c] sm:$0xf0]  ;;  %v3587_v60 = vld [vmem:[#allocation9 + $0x154] sm:$0xf] }
  0x7f   :  { %706 = vmatmul.bf16.gmra.mxu1 %v3919_v7  ;;  %661 = vmatmul.bf16.gmra.mxu0 %v3068_v8 }
  0x80   :  { %839 = vmatmul.bf16.gmra.mxu2 %v3068_v8  ;;  %v3501_v8 = vld [vmem:[#allocation3 + $0xa4] sm:$0xf] }
  0x81   :  { %928 = vmatmul.bf16.gmra.mxu3 %v3921_v9 }
  0x8f   :  { %711 = vmatmul.bf16.gmra.mxu1 %v3925_v20  ;;  %666 = vmatmul.bf16.gmra.mxu0 %v3076_v22 }
  0x90   :  { %844 = vmatmul.bf16.gmra.mxu2 %v3076_v22 }
  0x91   :  { %933 = vmatmul.bf16.gmra.mxu3 %v3927_v23 }
  0x9f   :  { %716 = vmatmul.bf16.gmra.mxu1 %v3931_v33  ;;  %671 = vmatmul.bf16.gmra.mxu0 %v3084_v34 }
  0xa0   :  { %849 = vmatmul.bf16.gmra.mxu2 %v3084_v34 }
  0xa1   :  { %938 = vmatmul.bf16.gmra.mxu3 %v3933_v36 }
  0xaf   :  { %730 = vmatmul.bf16.vlgmr.msrb.gmra.mxu1 %v3897_v21  ;;  %676 = vmatmul.bf16.gmra.mxu0 %v3092_v42 }
  0xb0   :  { %854 = vmatmul.bf16.gmra.mxu2 %v3092_v42  ;;  %v3377_v42 = vld [vmem:[#allocation9 + $0xb4] sm:$0xf0] }
  0xb1   :  { %943 = vmatmul.bf16.gmra.mxu3 %v3937_v43  ;;  %v3380_v45 = vor.u32 %v3566_v41, %v3377_v42  ;;  %v3558_v41 = vld [vmem:[#allocation9 + $0x68] sm:$0xf0]  ;;  %v3507_v42 = vld [vmem:[#allocation3 + $0xd4] sm:$0xf] }
  0xb3   :  { %1848 = vmatpush.bf16.msrb.mxu2 %v3380_v45  ;;  %v3340_v45 = vor.u32 %v3558_v41, %v3339_v40  ;;  %v3552_v40 = vld [vmem:[#allocation9 + $0x38] sm:$0xf0]  ;;  %v3423_v41 = vld [vmem:[#allocation9 + $0x108] sm:$0xf] }
  0xbc   :  { %v3941_v53 = vpop.f32.mrf.mxu1  ;;  %v4021_v39 = vpop.f32.mrf.mxu0 }
  0xbf   :  { %735 = vmatmul.bf16.gmra.mxu1 %v3903_v37  ;;  %681 = vmatmul.bf16.gmra.mxu0 %v3100_v54  ;;  %v3447_v37 = vld [vmem:[#allocation9 + $0x138] sm:$0xf] }
  0xc0   :  { %859 = vmatmul.bf16.gmra.mxu2 %v3100_v54  ;;  %v3448_v3 = vor.u32 %v3585_v2, %v3447_v37  ;;  %v3563_v54 = vld [vmem:[#allocation9 + $0x94] sm:$0xf] }
  0xc1   :  { %948 = vmatmul.bf16.gmra.mxu3 %v3943_v55 }
  0xc2   :  { %1761 = vmatpush.bf16.msra.mxu1 %v3448_v3  ;;  %v3461_v3 = vld [vmem:[#allocation9 + $0x15c] sm:$0xf0] }
  0xc3   :  { %v3947_v21 = vpop.f32.mrf.mxu2 }
  0xc4   :  { %v3949_v56 = vpop.f32.mrf.mxu3  ;;  %v3951_v57 = vpop.f32.mrf.mxu1 }
  0xcb   :  { %v3953_v62 = vpop.f32.mrf.mxu2 }
  0xcc   :  { %v3955_v63 = vpop.f32.mrf.mxu3  ;;  %v3957_v0 = vpop.f32.mrf.mxu1 }
  0xcf   :  { %740 = vmatmul.bf16.gmra.mxu1 %v3909_v49 }
  0xd0   :  { %864 = vmatmul.bf16.gmra.mxu2 %v3895_v17  ;;  %v3976_v17 = vor.u32 %v3501_v8, %v3117_v10  ;;  %v3351_v10 = vld [vmem:[#allocation9 + $0x78] sm:$0xf] }
  0xd1   :  { %953 = vmatmul.bf16.gmra.mxu3 %v3959_v1  ;;  %v3352_v18 = vor.u32 %v3561_v16, %v3351_v10  ;;  %v3555_v10 = vld [vmem:[#allocation9 + $0x50] sm:$0xf0] }
  0xd3   :  { %v3964_v4 = vpop.f32.mrf.mxu2  ;;  %1672 = vmatpush.bf16.msrb.mxu0 %v3352_v18  ;;  %v3554_v18 = vld [vmem:[#allocation9 + $0x4c] sm:$0xf] }
  0xd4   :  { %v3966_v5 = vpop.f32.mrf.mxu3  ;;  %v3968_v6 = vpop.f32.mrf.mxu1 }
  0xd7   :  { %1673 = vmatpush.bf16.msrb.mxu0 %v3340_v45 }
  0xdb   :  { %v3970_v11 = vpop.f32.mrf.mxu2 }
  0xdc   :  { %v3972_v12 = vpop.f32.mrf.mxu3  ;;  %v3974_v49 = vpop.f32.mrf.mxu1 }
  0xdf   :  { %745 = vmatmul.bf16.gmra.mxu1 %v3915_v61  ;;  %v3582_v61 = vld [vmem:[#allocation9 + $0x128] sm:$0xf0] }
  0xe0   :  { %869 = vmatmul.bf16.gmra.mxu2 %v3901_v35  ;;  %v3435_v35 = vld [vmem:[#allocation9 + $0x120] sm:$0xf] }
  0xe1   :  { %958 = vmatmul.bf16.gmra.mxu3 %v3976_v17  ;;  %v3436_v26 = vor.u32 %v3582_v61, %v3435_v35  ;;  %v3560_v35 = vld [vmem:[#allocation9 + $0x7c] sm:$0xf]  ;;  %v3353_v61 = vld [vmem:[#allocation9 + $0x84] sm:$0xf0] }
  0xe3   :  { %v3981_v13 = vpop.f32.mrf.mxu2  ;;  %1762 = vmatpush.bf16.msra.mxu1 %v3436_v26  ;;  %v3584_v26 = vld [vmem:[#allocation9 + $0x13c] sm:$0xf] }
  0xe4   :  { %v3983_v14 = vpop.f32.mrf.mxu3  ;;  %v3985_v15 = vpop.f32.mrf.mxu1 }
  0xeb   :  { %v3987_v19 = vpop.f32.mrf.mxu2 }
  0xec   :  { %v3989_v22 = vpop.f32.mrf.mxu3  ;;  %v3991_v24 = vpop.f32.mrf.mxu1 }
  0xef   :  { %750 = vmatmul.bf16.gmra.mxu1 %v3921_v9 }
  0xf0   :  { %874 = vmatmul.bf16.gmra.mxu2 %v3907_v47  ;;  %v4010_v47 = vor.u32 %v3505_v30, %v3133_v31  ;;  %v3356_v30 = vor.u32 %v3560_v35, %v3353_v61  ;;  %v3449_v31 = vld [vmem:[#allocation9 + $0x144] sm:$0xf0]  ;;  %v3329_v35 = vld [vmem:[#allocation9 + $0x54] sm:$0xf0] }
  0xf1   :  { %963 = vmatmul.bf16.gmra.mxu3 %v3993_v25  ;;  %v3452_v38 = vor.u32 %v3584_v26, %v3449_v31  ;;  %v3332_v61 = vor.u32 %v3554_v18, %v3329_v35  ;;  %v3578_v26 = vld [vmem:[#allocation9 + $0x10c] sm:$0xf]  ;;  %v3549_v18 = vld [vmem:[#allocation9 + $0x20] sm:$0xf0] }
  0xf3   :  { %v3998_v27 = vpop.f32.mrf.mxu2 }
  0xf4   :  { %v4000_v28 = vpop.f32.mrf.mxu3  ;;  %v4002_v29 = vpop.f32.mrf.mxu1 }
  0xfb   :  { %v4004_v32 = vpop.f32.mrf.mxu2 }
  0xfc   :  { %v4006_v34 = vpop.f32.mrf.mxu3  ;;  %v4008_v9 = vpop.f32.mrf.mxu1 }
  0xff   :  { %755 = vmatmul.bf16.gmra.mxu1 %v3927_v23  ;;  %v3368_v23 = vor.u32 %v3563_v54, %v3365_v58  ;;  %v3344_v54 = vor.u32 %v3557_v46, %v3341_v48  ;;  %v3437_v58 = vld [vmem:[#allocation9 + $0x12c] sm:$0xf0]  ;;  %v3317_v48 = vld [vmem:[#allocation9 + $0x3c] sm:$0xf0] }
 0x100   :  { %879 = vmatmul.bf16.gmra.mxu2 %v3913_v59  ;;  %v3464_v59 = vor.u32 %v3587_v60, %v3461_v3  ;;  %v3440_v3 = vor.u32 %v3581_v50, %v3437_v58  ;;  %v3575_v50 = vld [vmem:[#allocation9 + $0xf4] sm:$0xf] }
 0x101   :  { %968 = vmatmul.bf16.gmra.mxu3 %v4010_v47  ;;  %1849 = vmatpush.bf16.msrb.mxu2 %v3368_v23  ;;  %v4029_v23 = vor.u32 %v3507_v42, %v3141_v44  ;;  %v3579_v42 = vld [vmem:[#allocation9 + $0x110] sm:$0xf0]  ;;  %v4034_v44 = vpop.f32.mrf.mxu0 }
 0x102   :  { %1938 = vmatpush.bf16.msrb.mxu3 %v3464_v59  ;;  %v3327_v59 = vld [vmem:[#allocation9 + $0x48] sm:$0xf]  ;;  %v3424_v46 = vor.u32 %v3579_v42, %v3423_v41  ;;  %v3291_v41 = vld [vmem:[#allocation9] sm:$0xf]  ;;  %v3546_v42 = vld [vmem:[#allocation9 + $0x8] sm:$0xf0] }
 0x103   :  { %v4015_v37 = vpop.f32.mrf.mxu2  ;;  %v3328_v16 = vor.u32 %v3555_v10, %v3327_v59 }
 0x104   :  { %v4017_v2 = vpop.f32.mrf.mxu3  ;;  %v4019_v8 = vpop.f32.mrf.mxu1  ;;  %1763 = vmatpush.bf16.msra.mxu1 %v3424_v46 }
 0x105   :  { %1850 = vmatpush.bf16.msrb.mxu2 %v3356_v30  ;;  %1674 = vmatpush.bf16.msrb.mxu0 %v3328_v16  ;;  %v3425_v30 = vld [vmem:[#allocation9 + $0x114] sm:$0xf0] }
 0x106   :  { %1939 = vmatpush.bf16.msrb.mxu3 %v3452_v38  ;;  %v3428_v31 = vor.u32 %v3578_v26, %v3425_v30  ;;  %v3315_v38 = vld [vmem:[#allocation9 + $0x30] sm:$0xf]  ;;  %v3303_v16 = vld [vmem:[#allocation9 + $0x18] sm:$0xf]  ;;  %v3305_v26 = vld [vmem:[#allocation9 + $0x24] sm:$0xf0] }
 0x107   :  { %v3316_v45 = vor.u32 %v3552_v40, %v3315_v38  ;;  %v3304_v35 = vor.u32 %v3549_v18, %v3303_v16  ;;  %v3572_v30 = vld [vmem:[#allocation9 + $0xdc] sm:$0xf]  ;;  %v3401_v38 = vld [vmem:[#allocation9 + $0xe4] sm:$0xf0] }
 0x108   :  { %v3404_v40 = vor.u32 %v3572_v30, %v3401_v38 }
 0x109   :  { %1851 = vmatpush.bf16.msrb.mxu2 %v3344_v54  ;;  %1675 = vmatpush.bf16.msrb.mxu0 %v3316_v45  ;;  %v3509_v45 = vld [vmem:[#allocation3 + $0xe4] sm:$0xf]  ;;  %v4042_v46 = vpop.f32.mrf.mxu0 }
 0x10a   :  { %1940 = vmatpush.bf16.msrb.mxu3 %v3440_v3  ;;  %v3413_v3 = vld [vmem:[#allocation9 + $0xfc] sm:$0xf0] }
 0x10b   :  { %v4023_v51 = vpop.f32.mrf.mxu2  ;;  %v3416_v10 = vor.u32 %v3575_v50, %v3413_v3  ;;  %v3545_v50 = vld [vmem:[#allocation9 + $0x4] sm:$0xf] }
 0x10c   :  { %v4025_v52 = vpop.f32.mrf.mxu3  ;;  %v4027_v60 = vpop.f32.mrf.mxu1  ;;  %v3569_v3 = vld [vmem:[#allocation9 + $0xc4] sm:$0xf] }
 0x10d   :  { %5112 = vst [vmem:[#allocation23_spill] sm:$0xff] %v4027_v60  ;;  %1852 = vmatpush.bf16.msrb.mxu2 %v3332_v61  ;;  %v3548_v61 = vld [vmem:[#allocation9 + $0x1c] sm:$0xf]  ;;  %1676 = vmatpush.bf16.msrb.mxu0 %v3304_v35  ;;  %v3389_v35 = vld [vmem:[#allocation9 + $0xcc] sm:$0xf0] }
 0x10e   :  { %1941 = vmatpush.bf16.msrb.mxu3 %v3428_v31  ;;  %v3308_v31 = vor.u32 %v3548_v61, %v3305_v26  ;;  %v3392_v30 = vor.u32 %v3569_v3, %v3389_v35  ;;  %v910_v3 = vadd.f32 %v3949_v56, %v3947_v21  ;;  %v912_v35 = vadd.f32 %v3955_v63, %v3953_v62 }
 0x10f   :  { %760 = vmatmul.bf16.gmra.mxu1 %v3933_v36  ;;  %v3551_v36 = vld [vmem:[#allocation9 + $0x34] sm:$0xf] }
 0x110   :  { %884 = vmatmul.bf16.gmra.mxu2 %v3919_v7  ;;  %v3320_v7 = vor.u32 %v3551_v36, %v3317_v48  ;;  %v3149_v36 = vld [vmem:[#allocation3 + $0xe8] sm:$0xf0]  ;;  %v3292_v48 = vor.u32 %v3546_v42, %v3291_v41  ;;  %v3511_v42 = vld [vmem:[#allocation3 + $0xf4] sm:$0xf] }
 0x111   :  { %973 = vmatmul.bf16.gmra.mxu3 %v4029_v23  ;;  %v4050_v26 = vor.u32 %v3509_v45, %v3149_v36  ;;  %v649_v41 = vpop.f32.mrf.mxu0 }
 0x112   :  { %1853 = vmatpush.bf16.msrb.mxu2 %v3320_v7  ;;  %1942 = vmatpush.bf16.msrb.mxu3 %v3416_v10  ;;  %v3293_v7 = vld [vmem:[#allocation9 + $0xc] sm:$0xf0] }
 0x113   :  { %v4036_v54 = vpop.f32.mrf.mxu2  ;;  %1677 = vmatpush.bf16.msrb.mxu0 %v3292_v48  ;;  %v3296_v18 = vor.u32 %v3545_v50, %v3293_v7  ;;  %v3157_v48 = vld [vmem:[#allocation3 + $0xf8] sm:$0xf0] }
 0x114   :  { %v4038_v58 = vpop.f32.mrf.mxu3  ;;  %v4040_v59 = vpop.f32.mrf.mxu1  ;;  %v4065_v7 = vor.u32 %v3511_v42, %v3157_v48  ;;  %v3411_v48 = vld [vmem:[#allocation9 + $0xf0] sm:$0xf] }
 0x115   :  { %5113 = vst [vmem:[#allocation24_spill] sm:$0xff] %v4040_v59 }
 0x116   :  { %1854 = vmatpush.bf16.msrb.mxu2 %v3308_v31  ;;  %1943 = vmatpush.bf16.msrb.mxu3 %v3404_v40 }
 0x11a   :  { %1855 = vmatpush.bf16.msrb.mxu2 %v3296_v18  ;;  %1944 = vmatpush.bf16.msrb.mxu3 %v3392_v30 }
 0x11b   :  { %v4044_v10 = vpop.f32.mrf.mxu2 }
 0x11c   :  { %v4046_v16 = vpop.f32.mrf.mxu3  ;;  %v4048_v61 = vpop.f32.mrf.mxu1 }
 0x11d   :  { %5114 = vst [vmem:[#allocation25_spill] sm:$0xff] %v4048_v61 }
 0x11f   :  { %765 = vmatmul.bf16.gmra.mxu1 %v3937_v43  ;;  %v1184_v43 = vld [vmem:[#allocation8] sm:$0x3] }
 0x120   :  { %889 = vmatmul.bf16.gmra.mxu2 %v3925_v20  ;;  %v652_v20 = vpop.f32.mrf.mxu0  ;;  %v4070_v18 = vperm.slane %v1184_v43, 1  ;;  %v4077_v42 = vperm.slane %v1184_v43, 0 }
 0x121   :  { %978 = vmatmul.bf16.gmra.mxu3 %v4050_v26 }
 0x122   :  { %v1193_v21 = vadd.f32 %v4070_v18, %v912_v35 }
 0x123   :  { %v4055_v31 = vpop.f32.mrf.mxu2 }
 0x124   :  { %v4057_v38 = vpop.f32.mrf.mxu3  ;;  %v4059_v40 = vpop.f32.mrf.mxu1  ;;  %v1257_v43 = vmax.f32 %v1193_v21, 0.0 }
 0x125   :  { %5115 = vst [vmem:[#allocation26_spill] sm:$0xff] %v4059_v40  ;;  %v3576_v40 = vld [vmem:[#allocation9 + $0xf8] sm:$0xf0] }
 0x126   :  { %v3412_v61 = vor.u32 %v3576_v40, %v3411_v48 }
 0x128   :  { %1764 = vmatpush.bf16.msra.mxu1 %v3412_v61  ;;  %v654_v60 = vpop.f32.mrf.mxu0 }
 0x12b   :  { %v4061_v45 = vpop.f32.mrf.mxu2 }
 0x12c   :  { %v4063_v36 = vpop.f32.mrf.mxu3  ;;  %v731_v50 = vpop.f32.mrf.mxu1 }
 0x12d   :  { %v732_v30 = vadd.f32 %v731_v50, %v4021_v39 }
 0x12f   :  { %770 = vmatmul.bf16.gmra.mxu1 %v3943_v55  ;;  %v1191_v55 = vadd.f32 %v4070_v18, %v910_v3  ;;  %v1190_v59 = vadd.f32 %v4077_v42, %v732_v30 }
 0x130   :  { %894 = vmatmul.bf16.gmra.mxu2 %v3931_v33 }
 0x131   :  { %983 = vmatmul.bf16.gmra.mxu3 %v4065_v7  ;;  %v1255_v50 = vmax.f32 %v1191_v55, 0.0  ;;  %v1254_v40 = vmax.f32 %v1190_v59, 0.0  ;;  %v917_v55 = vadd.f32 %v3972_v12, %v3970_v11 }
 0x133   :  { %v4082_v62 = vpop.f32.mrf.mxu2  ;;  %v4090_v35 = vpack.c.bf16 %v1257_v43, %v1255_v50 }
 0x134   :  { %v733_v56 = vpop.f32.mrf.mxu1  ;;  %v4085_v63 = vpop.f32.mrf.mxu3 }
 0x135   :  { %v734_v33 = vadd.f32 %v733_v56, %v4034_v44  ;;  %v915_v44 = vadd.f32 %v3966_v5, %v3964_v4  ;;  %v657_v56 = vpop.f32.mrf.mxu0 }
 0x137   :  { %v1192_v39 = vadd.f32 %v4077_v42, %v734_v33  ;;  %v1195_v33 = vadd.f32 %v4070_v18, %v915_v44 }
 0x139   :  { %v1256_v48 = vmax.f32 %v1192_v39, 0.0  ;;  %v1197_v39 = vadd.f32 %v4070_v18, %v917_v55  ;;  %v1259_v11 = vmax.f32 %v1195_v33, 0.0 }
 0x13b   :  { %v4088_v3 = vpack.c.bf16 %v1256_v48, %v1254_v40  ;;  %v4093_v30 = vpop.f32.mrf.mxu2  ;;  %v1261_v12 = vmax.f32 %v1197_v39, 0.0  ;;  %v3399_v39 = vld [vmem:[#allocation9 + $0xd8] sm:$0xf] }
 0x13c   :  { %v736_v61 = vpop.f32.mrf.mxu1  ;;  %v4100_v21 = vpop.f32.mrf.mxu3 }
 0x13d   :  { %5116 = vst [vmem:[#allocation27_spill] sm:$0xff] %v4088_v3  ;;  %1678 = vmatmul.bf16.vlgmr.msrb.gmra.mxu0 %v4088_v3  ;;  %v737_v59 = vadd.f32 %v736_v61, %v4042_v46  ;;  %v4115_v44 = vpack.c.bf16 %v1261_v12, %v1259_v11  ;;  %v659_v55 = vpop.f32.mrf.mxu0 }
 0x13f   :  { %775 = vmatmul.bf16.gmra.mxu1 %v3959_v1  ;;  %v1194_v50 = vadd.f32 %v4077_v42, %v737_v59  ;;  %5117 = vst [vmem:[#allocation28_spill] sm:$0xff] %v4115_v44  ;;  %v922_v59 = vadd.f32 %v3989_v22, %v3987_v19 }
 0x140   :  { %1856 = vmatmul.bf16.vlgmr.msrb.gmra.mxu2 %v4088_v3 }
 0x141   :  { %1945 = vmatmul.bf16.vlgmr.msrb.gmra.mxu3 %v4090_v35  ;;  %v1258_v43 = vmax.f32 %v1194_v50, 0.0 }
 0x143   :  { %v4109_v40 = vpop.f32.mrf.mxu2 }
 0x144   :  { %v738_v1 = vpop.f32.mrf.mxu1  ;;  %v4111_v3 = vpop.f32.mrf.mxu3 }
 0x145   :  { %v739_v4 = vadd.f32 %v738_v1, %v649_v41  ;;  %v920_v41 = vadd.f32 %v3983_v14, %v3981_v13  ;;  %v3573_v1 = vld [vmem:[#allocation9 + $0xe0] sm:$0xf0]  ;;  %v662_v22 = vpop.f32.mrf.mxu0 }
 0x146   :  { %v3400_v50 = vor.u32 %v3573_v1, %v3399_v39 }
 0x147   :  { %v1196_v5 = vadd.f32 %v4077_v42, %v739_v4 }
 0x148   :  { %1765 = vmatpush.bf16.msra.mxu1 %v3400_v50 }
 0x149   :  { %v1260_v48 = vmax.f32 %v1196_v5, 0.0  ;;  %v1199_v5 = vadd.f32 %v4070_v18, %v920_v41 }
 0x14b   :  { %v4113_v46 = vpack.c.bf16 %v1260_v48, %v1258_v43  ;;  %v4125_v4 = vpop.f32.mrf.mxu2 }
 0x14c   :  { %v741_v61 = vpop.f32.mrf.mxu1  ;;  %v4129_v11 = vpop.f32.mrf.mxu3 }
 0x14d   :  { %1683 = vmatmul.bf16.gmra.mxu0 %v4113_v46  ;;  %v742_v33 = vadd.f32 %v741_v61, %v652_v20  ;;  %v1263_v20 = vmax.f32 %v1199_v5, 0.0  ;;  %v664_v5 = vpop.f32.mrf.mxu0 }
 0x14f   :  { %780 = vmatmul.bf16.gmra.mxu1 %v3976_v17  ;;  %v1201_v17 = vadd.f32 %v4070_v18, %v922_v59  ;;  %v1198_v14 = vadd.f32 %v4077_v42, %v742_v33  ;;  %v927_v33 = vadd.f32 %v4006_v34, %v4004_v32 }
 0x150   :  { %1861 = vmatmul.bf16.gmra.mxu2 %v4113_v46 }
 0x151   :  { %1950 = vmatmul.bf16.gmra.mxu3 %v4115_v44  ;;  %v1265_v43 = vmax.f32 %v1201_v17, 0.0  ;;  %v1262_v48 = vmax.f32 %v1198_v14, 0.0  ;;  %v1205_v14 = vadd.f32 %v4070_v18, %v927_v33  ;;  %v932_v33 = vadd.f32 %v4025_v52, %v4023_v51 }
 0x153   :  { %v4135_v41 = vpack.c.bf16 %v1265_v43, %v1263_v20  ;;  %v4137_v59 = vpop.f32.mrf.mxu2  ;;  %v1269_v32 = vmax.f32 %v1205_v14, 0.0  ;;  %v3387_v14 = vld [vmem:[#allocation9 + $0xc0] sm:$0xf] }
 0x154   :  { %v743_v13 = vpop.f32.mrf.mxu1  ;;  %v4140_v50 = vpop.f32.mrf.mxu3 }
 0x155   :  { %v744_v19 = vadd.f32 %v743_v13, %v654_v60  ;;  %5118 = vst [vmem:[#allocation29_spill] sm:$0xff] %v4135_v41  ;;  %v925_v60 = vadd.f32 %v4000_v28, %v3998_v27 }
 0x157   :  { %v1200_v12 = vadd.f32 %v4077_v42, %v744_v19  ;;  %v1203_v13 = vadd.f32 %v4070_v18, %v925_v60 }
 0x159   :  { %v1264_v61 = vmax.f32 %v1200_v12, 0.0  ;;  %v1267_v28 = vmax.f32 %v1203_v13, 0.0 }
 0x15b   :  { %v4133_v39 = vpack.c.bf16 %v1264_v61, %v1262_v48  ;;  %v4152_v20 = vpop.f32.mrf.mxu2  ;;  %v667_v61 = vpop.f32.mrf.mxu0  ;;  %v4159_v60 = vpack.c.bf16 %v1269_v32, %v1267_v28 }
 0x15c   :  { %v746_v1 = vpop.f32.mrf.mxu1  ;;  %v4155_v34 = vpop.f32.mrf.mxu3 }
 0x15d   :  { %1688 = vmatmul.bf16.gmra.mxu0 %v4133_v39  ;;  %v747_v17 = vadd.f32 %v746_v1, %v657_v56  ;;  %5120 = vst [vmem:[#allocation31_spill] sm:$0xff] %v4159_v60 }
 0x15f   :  { %785 = vmatmul.bf16.gmra.mxu1 %v3993_v25  ;;  %v1202_v12 = vadd.f32 %v4077_v42, %v747_v17 }
 0x160   :  { %1866 = vmatmul.bf16.gmra.mxu2 %v4133_v39 }
 0x161   :  { %1955 = vmatmul.bf16.gmra.mxu3 %v4135_v41  ;;  %v1266_v43 = vmax.f32 %v1202_v12, 0.0 }
 0x163   :  { %v4169_v17 = vpop.f32.mrf.mxu2 }
 0x164   :  { %v748_v19 = vpop.f32.mrf.mxu1  ;;  %v4171_v12 = vpop.f32.mrf.mxu3 }
 0x165   :  { %v749_v25 = vadd.f32 %v748_v19, %v659_v55  ;;  %v930_v55 = vadd.f32 %v4017_v2, %v4015_v37  ;;  %v3570_v19 = vld [vmem:[#allocation9 + $0xc8] sm:$0xf0]  ;;  %v669_v2 = vpop.f32.mrf.mxu0 }
 0x167   :  { %v1204_v27 = vadd.f32 %v4077_v42, %v749_v25  ;;  %v3388_v25 = vor.u32 %v3570_v19, %v3387_v14 }
 0x169   :  { %v1268_v48 = vmax.f32 %v1204_v27, 0.0  ;;  %v1209_v27 = vadd.f32 %v4070_v18, %v932_v33  ;;  %1766 = vmatpush.bf16.msra.mxu1 %v3388_v25 }
 0x16b   :  { %v4157_v56 = vpack.c.bf16 %v1268_v48, %v1266_v43  ;;  %v1273_v43 = vmax.f32 %v1209_v27, 0.0 }
 0x16c   :  { %v751_v1 = vpop.f32.mrf.mxu1  ;;  %v4181_v14 = vpop.f32.mrf.mxu3 }
 0x16d   :  { %5119 = vst [vmem:[#allocation30_spill] sm:$0xff] %v4157_v56  ;;  %1693 = vmatmul.bf16.gmra.mxu0 %v4157_v56  ;;  %v752_v13 = vadd.f32 %v751_v1, %v662_v22  ;;  %v4177_v1 = vpop.f32.mrf.mxu2  ;;  %v672_v19 = vpop.f32.mrf.mxu0 }
 0x16f   :  { %790 = vmatmul.bf16.gmra.mxu1 %v4010_v47  ;;  %v1207_v47 = vadd.f32 %v4070_v18, %v930_v55  ;;  %v1206_v51 = vadd.f32 %v4077_v42, %v752_v13  ;;  %v937_v13 = vadd.f32 %v4046_v16, %v4044_v10 }
 0x170   :  { %1871 = vmatmul.bf16.gmra.mxu2 %v4157_v56 }
 0x171   :  { %1960 = vmatmul.bf16.gmra.mxu3 %v4159_v60  ;;  %v1271_v32 = vmax.f32 %v1207_v47, 0.0  ;;  %v1270_v22 = vmax.f32 %v1206_v51, 0.0  ;;  %v1213_v27 = vadd.f32 %v4070_v18, %v937_v13 }
 0x173   :  { %v4183_v33 = vpack.c.bf16 %v1273_v43, %v1271_v32  ;;  %v1277_v10 = vmax.f32 %v1213_v27, 0.0  ;;  %v3568_v27 = vld [vmem:[#allocation9 + $0xb8] sm:$0xf0] }
 0x174   :  { %v753_v37 = vpop.f32.mrf.mxu1 }
 0x175   :  { %v754_v52 = vadd.f32 %v753_v37, %v664_v5  ;;  %5121 = vst [vmem:[#allocation32_spill] sm:$0xff] %v4183_v33  ;;  %v935_v5 = vadd.f32 %v4038_v58, %v4036_v54  ;;  %v4195_v51 = vpop.f32.mrf.mxu2  ;;  %v674_v16 = vpop.f32.mrf.mxu0 }
 0x177   :  { %v1208_v28 = vadd.f32 %v4077_v42, %v754_v52  ;;  %v1211_v47 = vadd.f32 %v4070_v18, %v935_v5  ;;  %v942_v5 = vadd.f32 %v4063_v36, %v4061_v45 }
 0x179   :  { %v1272_v48 = vmax.f32 %v1208_v28, 0.0  ;;  %v4198_v28 = vpop.f32.mrf.mxu3  ;;  %v1275_v58 = vmax.f32 %v1211_v47, 0.0  ;;  %v3383_v47 = vld [vmem:[#allocation9 + $0xb0] sm:$0xf] }
 0x17b   :  { %v4179_v56 = vpack.c.bf16 %v1272_v48, %v1270_v22  ;;  %v4203_v48 = vpack.c.bf16 %v1277_v10, %v1275_v58 }
 0x17c   :  { %v756_v55 = vpop.f32.mrf.mxu1 }
 0x17d   :  { %1698 = vmatmul.bf16.gmra.mxu0 %v4179_v56  ;;  %v757_v25 = vadd.f32 %v756_v55, %v667_v61  ;;  %5122 = vst [vmem:[#allocation33_spill] sm:$0xff] %v4203_v48  ;;  %v4206_v55 = vpop.f32.mrf.mxu2 }
 0x17f   :  { %795 = vmatmul.bf16.gmra.mxu1 %v4029_v23  ;;  %v1210_v23 = vadd.f32 %v4077_v42, %v757_v25 }
 0x180   :  { %1876 = vmatmul.bf16.gmra.mxu2 %v4179_v56 }
 0x181   :  { %1965 = vmatmul.bf16.gmra.mxu3 %v4183_v33  ;;  %v1274_v32 = vmax.f32 %v1210_v23, 0.0  ;;  %v4213_v13 = vpop.f32.mrf.mxu3  ;;  %v3384_v23 = vor.u32 %v3568_v27, %v3383_v47 }
 0x183   :  { %2026 = vmatpush.bf16.msra.mxu0 %v3384_v23 }
 0x184   :  { %v758_v37 = vpop.f32.mrf.mxu1 }
 0x185   :  { %v759_v52 = vadd.f32 %v758_v37, %v669_v2  ;;  %v940_v2 = vadd.f32 %v4057_v38, %v4055_v31  ;;  %v677_v37 = vpop.f32.mrf.mxu0  ;;  %v1217_v31 = vadd.f32 %v4070_v18, %v942_v5 }
 0x187   :  { %v1212_v54 = vadd.f32 %v4077_v42, %v759_v52  ;;  %v3479_v52 = vld [vmem:[#allocation9 + $0x170] sm:$0xf]  ;;  %v1215_v58 = vadd.f32 %v4070_v18, %v940_v2 }
 0x189   :  { %v1276_v43 = vmax.f32 %v1212_v54, 0.0  ;;  %v3592_v54 = vld [vmem:[#allocation9 + $0x178] sm:$0xf0]  ;;  %v4223_v27 = vpop.f32.mrf.mxu3 }
 0x18b   :  { %v4201_v61 = vpack.c.bf16 %v1276_v43, %v1274_v32  ;;  %v1281_v32 = vmax.f32 %v1217_v31, 0.0  ;;  %v4221_v43 = vpop.f32.mrf.mxu2 }
 0x18c   :  { %v761_v22 = vpop.f32.mrf.mxu1 }
 0x18d   :  { %1703 = vmatmul.bf16.gmra.mxu0 %v4201_v61  ;;  %v762_v25 = vadd.f32 %v761_v22, %v672_v19  ;;  %v1279_v19 = vmax.f32 %v1215_v58, 0.0  ;;  %v679_v23 = vpop.f32.mrf.mxu0 }
 0x18f   :  { %800 = vmatmul.bf16.gmra.mxu1 %v4050_v26  ;;  %v3480_v26 = vor.u32 %v3592_v54, %v3479_v52  ;;  %v1214_v45 = vadd.f32 %v4077_v42, %v762_v25  ;;  %v4227_v5 = vpack.c.bf16 %v1281_v32, %v1279_v19  ;;  %v947_v25 = vadd.f32 %v4100_v21, %v4093_v30 }
 0x190   :  { %1881 = vmatmul.bf16.gmra.mxu2 %v4201_v61 }
 0x191   :  { %1970 = vmatmul.bf16.gmra.mxu3 %v4203_v48  ;;  %2115 = vmatpush.bf16.msrb.mxu1 %v3480_v26  ;;  %v1278_v22 = vmax.f32 %v1214_v45, 0.0  ;;  %5123 = vst [vmem:[#allocation34_spill] sm:$0xff] %v4227_v5  ;;  %v1221_v31 = vadd.f32 %v4070_v18, %v947_v25 }
 0x193   :  { %v4237_v26 = vpop.f32.mrf.mxu2 }
 0x194   :  { %v763_v38 = vpop.f32.mrf.mxu1 }
 0x195   :  { %v764_v36 = vadd.f32 %v763_v38, %v674_v16  ;;  %v945_v16 = vadd.f32 %v4085_v63, %v4082_v62  ;;  %v4241_v38 = vpop.f32.mrf.mxu3  ;;  %v682_v63 = vpop.f32.mrf.mxu0 }
 0x197   :  { %v1216_v10 = vadd.f32 %v4077_v42, %v764_v36  ;;  %v1219_v58 = vadd.f32 %v4070_v18, %v945_v16  ;;  %v1285_v36 = vmax.f32 %v1221_v31, 0.0  ;;  %v952_v16 = vadd.f32 %v4129_v11, %v4125_v4  ;;  %v3565_v31 = vld [vmem:[#allocation9 + $0xa0] sm:$0xf0] }
 0x199   :  { %v1280_v47 = vmax.f32 %v1216_v10, 0.0  ;;  %v1283_v21 = vmax.f32 %v1219_v58, 0.0  ;;  %v3371_v58 = vld [vmem:[#allocation9 + $0x98] sm:$0xf] }
 0x19b   :  { %v4225_v52 = vpack.c.bf16 %v1280_v47, %v1278_v22  ;;  %v4247_v22 = vpack.c.bf16 %v1285_v36, %v1283_v21  ;;  %v4249_v47 = vpop.f32.mrf.mxu2  ;;  %v1225_v36 = vadd.f32 %v4070_v18, %v952_v16 }
 0x19c   :  { %v766_v2 = vpop.f32.mrf.mxu1 }
 0x19d   :  { %1708 = vmatmul.bf16.gmra.mxu0 %v4225_v52  ;;  %v767_v54 = vadd.f32 %v766_v2, %v677_v37  ;;  %v4252_v2 = vpop.f32.mrf.mxu3  ;;  %v684_v25 = vpop.f32.mrf.mxu0 }
 0x19f   :  { %805 = vmatmul.bf16.gmra.mxu1 %v4065_v7  ;;  %v1218_v45 = vadd.f32 %v4077_v42, %v767_v54 }
 0x1a0   :  { %1886 = vmatmul.bf16.gmra.mxu2 %v4225_v52 }
 0x1a1   :  { %1975 = vmatmul.bf16.gmra.mxu3 %v4227_v5  ;;  %v1282_v10 = vmax.f32 %v1218_v45, 0.0  ;;  %v3467_v45 = vld [vmem:[#allocation9 + $0x158] sm:$0xf] }
 0x1a3   :  { %v4264_v11 = vpop.f32.mrf.mxu2 }
 0x1a4   :  { %v768_v7 = vpop.f32.mrf.mxu1 }
 0x1a5   :  { %v769_v62 = vadd.f32 %v768_v7, %v679_v23  ;;  %v950_v23 = vadd.f32 %v4111_v3, %v4109_v40  ;;  %v3372_v7 = vor.u32 %v3565_v31, %v3371_v58 }
 0x1a7   :  { %v1220_v30 = vadd.f32 %v4077_v42, %v769_v62  ;;  %v3589_v62 = vld [vmem:[#allocation9 + $0x160] sm:$0xf0]  ;;  %v1223_v21 = vadd.f32 %v4070_v18, %v950_v23  ;;  %2027 = vmatpush.bf16.msra.mxu0 %v3372_v7 }
 0x1a9   :  { %v1284_v19 = vmax.f32 %v1220_v30, 0.0  ;;  %v3468_v30 = vor.u32 %v3589_v62, %v3467_v45 }
 0x1ab   :  { %v4245_v37 = vpack.c.bf16 %v1284_v19, %v1282_v10  ;;  %2116 = vmatpush.bf16.msrb.mxu1 %v3468_v30  ;;  %v1287_v10 = vmax.f32 %v1223_v21, 0.0  ;;  %v1289_v19 = vmax.f32 %v1225_v36, 0.0  ;;  %v4283_v62 = vpop.f32.mrf.mxu2 }
 0x1ac   :  { %v771_v32 = vpop.f32.mrf.mxu1 }
 0x1ad   :  { %1713 = vmatmul.bf16.gmra.mxu0 %v4245_v37  ;;  %v772_v54 = vadd.f32 %v771_v32, %v682_v63  ;;  %v4267_v32 = vpop.f32.mrf.mxu3  ;;  %v4273_v7 = vpack.c.bf16 %v1289_v19, %v1287_v10 }
 0x1af   :  { %1767 = vmatmul.bf16.vlgmr.msra.gmra.mxu1 %v4090_v35  ;;  %v1222_v40 = vadd.f32 %v4077_v42, %v772_v54  ;;  %v957_v54 = vadd.f32 %v4155_v34, %v4152_v20 }
 0x1b0   :  { %1891 = vmatmul.bf16.gmra.mxu2 %v4245_v37 }
 0x1b1   :  { %1980 = vmatmul.bf16.gmra.mxu3 %v4247_v22  ;;  %v1286_v58 = vmax.f32 %v1222_v40, 0.0  ;;  %v1229_v40 = vadd.f32 %v4070_v18, %v957_v54 }
 0x1b4   :  { %v773_v3 = vpop.f32.mrf.mxu1 }
 0x1b5   :  { %v774_v4 = vadd.f32 %v773_v3, %v684_v25  ;;  %v955_v25 = vadd.f32 %v4140_v50, %v4137_v59  ;;  %v4286_v21 = vpop.f32.mrf.mxu3 }
 0x1b7   :  { %v1224_v63 = vadd.f32 %v4077_v42, %v774_v4  ;;  %v1227_v3 = vadd.f32 %v4070_v18, %v955_v25 }
 0x1b9   :  { %v1288_v31 = vmax.f32 %v1224_v63, 0.0  ;;  %v1291_v4 = vmax.f32 %v1227_v3, 0.0  ;;  %v1293_v63 = vmax.f32 %v1229_v40, 0.0  ;;  %v3359_v40 = vld [vmem:[#allocation9 + $0x80] sm:$0xf] }
 0x1ba   :  { %v4269_v45 = vpop.f32.mrf.mxu0 }
 0x1bb   :  { %v4271_v23 = vpack.c.bf16 %v1288_v31, %v1286_v58  ;;  %v4297_v58 = vpop.f32.mrf.mxu2  ;;  %v4303_v54 = vpack.c.bf16 %v1293_v63, %v1291_v4  ;;  %v3586_v4 = vld [vmem:[#allocation9 + $0x148] sm:$0xf0] }
 0x1bc   :  { %v776_v16 = vpop.f32.mrf.mxu1 }
 0x1bd   :  { %1718 = vmatmul.bf16.gmra.mxu0 %v4271_v23  ;;  %v777_v30 = vadd.f32 %v776_v16, %v3941_v53  ;;  %v4301_v16 = vpop.f32.mrf.mxu3 }
 0x1bf   :  { %1772 = vmatmul.bf16.gmra.mxu1 %v4115_v44  ;;  %v1226_v50 = vadd.f32 %v4077_v42, %v777_v30  ;;  %v962_v30 = vadd.f32 %v4181_v14, %v4177_v1 }
 0x1c0   :  { %1896 = vmatmul.bf16.gmra.mxu2 %v4271_v23 }
 0x1c1   :  { %1985 = vmatmul.bf16.gmra.mxu3 %v4273_v7  ;;  %v1290_v10 = vmax.f32 %v1226_v50, 0.0 }
 0x1c2   :  { %v4288_v36 = vpop.f32.mrf.mxu0 }
 0x1c3   :  { %v4318_v1 = vpop.f32.mrf.mxu2 }
 0x1c4   :  { %v778_v59 = vpop.f32.mrf.mxu1 }
 0x1c5   :  { %v779_v20 = vadd.f32 %v778_v59, %v3951_v57  ;;  %v960_v57 = vadd.f32 %v4171_v12, %v4169_v17  ;;  %v3562_v59 = vld [vmem:[#allocation9 + $0x88] sm:$0xf0]  ;;  %v1233_v17 = vadd.f32 %v4070_v18, %v962_v30 }
 0x1c7   :  { %v1228_v34 = vadd.f32 %v4077_v42, %v779_v20  ;;  %v3360_v20 = vor.u32 %v3562_v59, %v3359_v40  ;;  %v1297_v59 = vmax.f32 %v1233_v17, 0.0 }
 0x1c9   :  { %v1292_v19 = vmax.f32 %v1228_v34, 0.0  ;;  %v3455_v34 = vld [vmem:[#allocation9 + $0x140] sm:$0xf]  ;;  %2028 = vmatpush.bf16.msra.mxu0 %v3360_v20 }
 0x1ca   :  { %v4295_v53 = vpop.f32.mrf.mxu0  ;;  %v3456_v63 = vor.u32 %v3586_v4, %v3455_v34 }
 0x1cb   :  { %v4299_v31 = vpack.c.bf16 %v1292_v19, %v1290_v10  ;;  %v1231_v10 = vadd.f32 %v4070_v18, %v960_v57  ;;  %v4322_v19 = vpop.f32.mrf.mxu3 }
 0x1cc   :  { %v781_v25 = vpop.f32.mrf.mxu1  ;;  %2117 = vmatpush.bf16.msrb.mxu1 %v3456_v63  ;;  %v967_v63 = vadd.f32 %v4213_v13, %v4206_v55 }
 0x1cd   :  { %5124 = vst [vmem:[#allocation35_spill] sm:$0xff] %v4299_v31  ;;  %1723 = vmatmul.bf16.gmra.mxu0 %v4299_v31  ;;  %v782_v3 = vadd.f32 %v781_v25, %v3957_v0  ;;  %v1295_v40 = vmax.f32 %v1231_v10, 0.0 }
 0x1cf   :  { %1777 = vmatmul.bf16.gmra.mxu1 %v4135_v41  ;;  %v1230_v14 = vadd.f32 %v4077_v42, %v782_v3  ;;  %v4329_v41 = vpack.c.bf16 %v1297_v59, %v1295_v40  ;;  %v4332_v3 = vpop.f32.mrf.mxu2 }
 0x1d0   :  { %1901 = vmatmul.bf16.gmra.mxu2 %v4299_v31 }
 0x1d1   :  { %1990 = vmatmul.bf16.gmra.mxu3 %v4303_v54  ;;  %v1294_v34 = vmax.f32 %v1230_v14, 0.0 }
 0x1d2   :  { %v4314_v50 = vpop.f32.mrf.mxu0 }
 0x1d3   :  { %v4339_v10 = vpop.f32.mrf.mxu3 }
 0x1d4   :  { %v783_v12 = vpop.f32.mrf.mxu1 }
 0x1d5   :  { %v784_v0 = vadd.f32 %v783_v12, %v3968_v6  ;;  %v965_v6 = vadd.f32 %v4198_v28, %v4195_v51 }
 0x1d7   :  { %v1232_v25 = vadd.f32 %v4077_v42, %v784_v0  ;;  %v1235_v14 = vadd.f32 %v4070_v18, %v965_v6  ;;  %v1237_v0 = vadd.f32 %v4070_v18, %v967_v63  ;;  %v4351_v59 = vpop.f32.mrf.mxu2 }
 0x1d9   :  { %v1296_v4 = vmax.f32 %v1232_v25, 0.0  ;;  %v1299_v13 = vmax.f32 %v1235_v14, 0.0  ;;  %v1301_v40 = vmax.f32 %v1237_v0, 0.0  ;;  %v3347_v0 = vld [vmem:[#allocation9 + $0x68] sm:$0xf] }
 0x1da   :  { %v4325_v57 = vpop.f32.mrf.mxu0 }
 0x1db   :  { %v4327_v30 = vpack.c.bf16 %v1296_v4, %v1294_v34 }
 0x1dc   :  { %v786_v20 = vpop.f32.mrf.mxu1 }
 0x1dd   :  { %5125 = vst [vmem:[#allocation36_spill] sm:$0xff] %v4327_v30  ;;  %1728 = vmatmul.bf16.gmra.mxu0 %v4327_v30  ;;  %v787_v17 = vadd.f32 %v786_v20, %v3974_v49  ;;  %v4353_v49 = vpop.f32.mrf.mxu3 }
 0x1df   :  { %1782 = vmatmul.bf16.gmra.mxu1 %v4159_v60  ;;  %v1234_v51 = vadd.f32 %v4077_v42, %v787_v17  ;;  %v4359_v60 = vpack.c.bf16 %v1301_v40, %v1299_v13  ;;  %v972_v17 = vadd.f32 %v4241_v38, %v4237_v26  ;;  %v3583_v13 = vld [vmem:[#allocation9 + $0x130] sm:$0xf0]  ;;  %v4372_v40 = vpop.f32.mrf.mxu2 }
 0x1e0   :  { %1906 = vmatmul.bf16.gmra.mxu2 %v4327_v30 }
 0x1e1   :  { %1995 = vmatmul.bf16.gmra.mxu3 %v4329_v41  ;;  %v1298_v34 = vmax.f32 %v1234_v51, 0.0  ;;  %5127 = vst [vmem:[#allocation38_spill] sm:$0xff] %v4359_v60 }
 0x1e2   :  { %v4344_v12 = vpop.f32.mrf.mxu0 }
 0x1e4   :  { %v788_v25 = vpop.f32.mrf.mxu1 }
 0x1e5   :  { %v789_v28 = vadd.f32 %v788_v25, %v3985_v15  ;;  %v970_v15 = vadd.f32 %v4223_v27, %v4221_v43  ;;  %v3559_v25 = vld [vmem:[#allocation9 + $0x70] sm:$0xf0]  ;;  %v1241_v27 = vadd.f32 %v4070_v18, %v972_v17  ;;  %v4376_v26 = vpop.f32.mrf.mxu3 }
 0x1e7   :  { %v1236_v55 = vadd.f32 %v4077_v42, %v789_v28  ;;  %v3348_v28 = vor.u32 %v3559_v25, %v3347_v0  ;;  %v1239_v43 = vadd.f32 %v4070_v18, %v970_v15  ;;  %v1305_v25 = vmax.f32 %v1241_v27, 0.0  ;;  %v4387_v30 = vpop.f32.mrf.mxu2 }
 0x1e9   :  { %v1300_v4 = vmax.f32 %v1236_v55, 0.0  ;;  %v3443_v55 = vld [vmem:[#allocation9 + $0x128] sm:$0xf]  ;;  %2029 = vmatpush.bf16.msra.mxu0 %v3348_v28  ;;  %v1303_v0 = vmax.f32 %v1239_v43, 0.0  ;;  %v977_v28 = vadd.f32 %v4267_v32, %v4264_v11 }
 0x1ea   :  { %v4355_v20 = vpop.f32.mrf.mxu0 }
 0x1eb   :  { %v4357_v6 = vpack.c.bf16 %v1300_v4, %v1298_v34  ;;  %v3444_v34 = vor.u32 %v3583_v13, %v3443_v55  ;;  %v4385_v13 = vpack.c.bf16 %v1305_v25, %v1303_v0  ;;  %v1245_v43 = vadd.f32 %v4070_v18, %v977_v28  ;;  %v3335_v28 = vld [vmem:[#allocation9 + $0x50] sm:$0xf] }
 0x1ec   :  { %v791_v63 = vpop.f32.mrf.mxu1 }
 0x1ed   :  { %5126 = vst [vmem:[#allocation37_spill] sm:$0xff] %v4357_v6  ;;  %1733 = vmatmul.bf16.gmra.mxu0 %v4357_v6  ;;  %v792_v14 = vadd.f32 %v791_v63, %v3991_v24  ;;  %2118 = vmatpush.bf16.msrb.mxu1 %v3444_v34 }
 0x1ee   :  { %5129 = vst [vmem:[#allocation40_spill] sm:$0xff] %v4385_v13 }
 0x1ef   :  { %1787 = vmatmul.bf16.gmra.mxu1 %v4183_v33  ;;  %v1238_v24 = vadd.f32 %v4077_v42, %v792_v14  ;;  %v4390_v14 = vpop.f32.mrf.mxu3 }
 0x1f0   :  { %1911 = vmatmul.bf16.gmra.mxu2 %v4357_v6 }
 0x1f1   :  { %2000 = vmatmul.bf16.gmra.mxu3 %v4359_v60  ;;  %v1302_v33 = vmax.f32 %v1238_v24, 0.0  ;;  %v1309_v24 = vmax.f32 %v1245_v43, 0.0  ;;  %v982_v43 = vadd.f32 %v4301_v16, %v4297_v58 }
 0x1f2   :  { %v4370_v51 = vpop.f32.mrf.mxu0 }
 0x1f3   :  { %v1249_v58 = vadd.f32 %v4070_v18, %v982_v43 }
 0x1f4   :  { %v793_v38 = vpop.f32.mrf.mxu1 }
 0x1f5   :  { %v794_v4 = vadd.f32 %v793_v38, %v4002_v29  ;;  %v975_v29 = vadd.f32 %v4252_v2, %v4249_v47  ;;  %v4406_v2 = vpop.f32.mrf.mxu2 }
 0x1f7   :  { %v1240_v63 = vadd.f32 %v4077_v42, %v794_v4  ;;  %v1243_v34 = vadd.f32 %v4070_v18, %v975_v29  ;;  %v4409_v4 = vpop.f32.mrf.mxu3 }
 0x1f9   :  { %v1304_v6 = vmax.f32 %v1240_v63, 0.0  ;;  %v1307_v32 = vmax.f32 %v1243_v34, 0.0  ;;  %v980_v34 = vadd.f32 %v4286_v21, %v4283_v62 }
 0x1fa   :  { %v4381_v55 = vpop.f32.mrf.mxu0 }
 0x1fb   :  { %v4383_v15 = vpack.c.bf16 %v1304_v6, %v1302_v33  ;;  %v4415_v29 = vpack.c.bf16 %v1309_v24, %v1307_v32  ;;  %v3431_v24 = vld [vmem:[#allocation9 + $0x110] sm:$0xf]  ;;  %v1247_v21 = vadd.f32 %v4070_v18, %v980_v34 }
 0x1fc   :  { %v796_v17 = vpop.f32.mrf.mxu1 }
 0x1fd   :  { %5128 = vst [vmem:[#allocation39_spill] sm:$0xff] %v4383_v15  ;;  %1738 = vmatmul.bf16.gmra.mxu0 %v4383_v15  ;;  %v797_v33 = vadd.f32 %v796_v17, %v4008_v9 }
 0x1ff   :  { %1792 = vmatmul.bf16.gmra.mxu1 %v4203_v48  ;;  %v1242_v38 = vadd.f32 %v4077_v42, %v797_v33  ;;  %v3556_v33 = vld [vmem:[#allocation9 + $0x58] sm:$0xf0] }
 0x200   :  { %1916 = vmatmul.bf16.gmra.mxu2 %v4383_v15  ;;  %v1313_v15 = vmax.f32 %v1249_v58, 0.0 }
 0x201   :  { %2005 = vmatmul.bf16.gmra.mxu3 %v4385_v13  ;;  %v1306_v9 = vmax.f32 %v1242_v38, 0.0  ;;  %v3553_v38 = vld [vmem:[#allocation9 + $0x40] sm:$0xf0] }
 0x202   :  { %v4400_v6 = vpop.f32.mrf.mxu0 }
 0x204   :  { %v798_v27 = vpop.f32.mrf.mxu1 }
 0x205   :  { %v799_v47 = vadd.f32 %v798_v27, %v4019_v8  ;;  %v3336_v8 = vor.u32 %v3556_v33, %v3335_v28  ;;  %v3323_v27 = vld [vmem:[#allocation9 + $0x38] sm:$0xf]  ;;  %v4428_v28 = vpop.f32.mrf.mxu3 }
 0x207   :  { %v1244_v11 = vadd.f32 %v4077_v42, %v799_v47  ;;  %2030 = vmatpush.bf16.msra.mxu0 %v3336_v8  ;;  %v4425_v47 = vpop.f32.mrf.mxu2  ;;  %v3311_v8 = vld [vmem:[#allocation9 + $0x20] sm:$0xf] }
 0x209   :  { %v1308_v63 = vmax.f32 %v1244_v11, 0.0  ;;  %v5131_v11 = vld [vmem:[#allocation23_spill] sm:$0xff] }
 0x20a   :  { %v4411_v0 = vpop.f32.mrf.mxu0 }
 0x20b   :  { %v4413_v25 = vpack.c.bf16 %v1308_v63, %v1306_v9  ;;  %v3580_v9 = vld [vmem:[#allocation9 + $0x118] sm:$0xf0]  ;;  %v3324_v63 = vor.u32 %v3553_v38, %v3323_v27  ;;  %v1311_v38 = vmax.f32 %v1247_v21, 0.0 }
 0x20c   :  { %v801_v17 = vpop.f32.mrf.mxu1  ;;  %v3432_v62 = vor.u32 %v3580_v9, %v3431_v24  ;;  %v3299_v24 = vld [vmem:[#allocation9 + $0x8] sm:$0xf]  ;;  %v3547_v9 = vld [vmem:[#allocation9 + $0x10] sm:$0xf0] }
 0x20d   :  { %5130 = vst [vmem:[#allocation41_spill] sm:$0xff] %v4413_v25  ;;  %1743 = vmatmul.bf16.gmra.mxu0 %v4413_v25  ;;  %v802_v32 = vadd.f32 %v801_v17, %v5131_v11  ;;  %v5132_v17 = vld [vmem:[#allocation24_spill] sm:$0xff]  ;;  %v3300_v31 = vor.u32 %v3547_v9, %v3299_v24 }
 0x20e   :  { %2031 = vmatpush.bf16.msra.mxu0 %v3324_v63  ;;  %2119 = vmatpush.bf16.msrb.mxu1 %v3432_v62 }
 0x20f   :  { %1797 = vmatmul.bf16.gmra.mxu1 %v4227_v5  ;;  %v3550_v5 = vld [vmem:[#allocation9 + $0x28] sm:$0xf0]  ;;  %v4439_v62 = vpop.f32.mrf.mxu2 }
 0x210   :  { %1921 = vmatmul.bf16.gmra.mxu2 %v4413_v25  ;;  %v1246_v25 = vadd.f32 %v4077_v42, %v802_v32  ;;  %v3312_v48 = vor.u32 %v3550_v5, %v3311_v8  ;;  %v4443_v32 = vpop.f32.mrf.mxu3 }
 0x211   :  { %2010 = vmatmul.bf16.gmra.mxu3 %v4415_v29 }
 0x212   :  { %v4430_v33 = vpop.f32.mrf.mxu0  ;;  %2032 = vmatpush.bf16.msra.mxu0 %v3312_v48  ;;  %v1310_v63 = vmax.f32 %v1246_v25, 0.0  ;;  %v985_v48 = vadd.f32 %v4322_v19, %v4318_v1  ;;  %v987_v25 = vadd.f32 %v4339_v10, %v4332_v3 }
 0x214   :  { %v803_v16 = vpop.f32.mrf.mxu1  ;;  %v1253_v8 = vadd.f32 %v4070_v18, %v987_v25  ;;  %v1947_v25 = vadd.f32 %v4353_v49, %v4351_v59  ;;  %v1949_v49 = vadd.f32 %v4376_v26, %v4372_v40  ;;  %v5136_v26 = vld [vmem:[#allocation27_spill] sm:$0xff] }
 0x215   :  { %v804_v11 = vadd.f32 %v803_v16, %v5132_v17  ;;  %v4445_v16 = vpack.c.bf16 %v1313_v15, %v1311_v38  ;;  %v1251_v15 = vadd.f32 %v4070_v18, %v985_v48 }
 0x216   :  { %2033 = vmatpush.bf16.msra.mxu0 %v3300_v31  ;;  %v5133_v31 = vld [vmem:[#allocation25_spill] sm:$0xff]  ;;  %v1317_v24 = vmax.f32 %v1253_v8, 0.0  ;;  %v3419_v8 = vld [vmem:[#allocation9 + $0xf8] sm:$0xf] }
 0x217   :  { %v1248_v27 = vadd.f32 %v4077_v42, %v804_v11  ;;  %v4462_v19 = vpop.f32.mrf.mxu2  ;;  %v1315_v38 = vmax.f32 %v1251_v15, 0.0 }
 0x218   :  { %v4464_v3 = vpop.f32.mrf.mxu3 }
 0x219   :  { %v1312_v34 = vmax.f32 %v1248_v27, 0.0  ;;  %v5134_v27 = vld [vmem:[#allocation26_spill] sm:$0xff]  ;;  %v4471_v48 = vpack.c.bf16 %v1317_v24, %v1315_v38 }
 0x21a   :  { %v4437_v43 = vpop.f32.mrf.mxu0 }
 0x21b   :  { %v4441_v44 = vpack.c.bf16 %v1312_v34, %v1310_v63  ;;  %5135 = vst [vmem:[#allocation23_spill] sm:$0xff] %v4471_v48 }
 0x21c   :  { %v806_v5 = vpop.f32.mrf.mxu1 }
 0x21d   :  { %1748 = vmatmul.bf16.gmra.mxu0 %v4441_v44  ;;  %v807_v21 = vadd.f32 %v806_v5, %v5133_v31 }
 0x21f   :  { %1802 = vmatmul.bf16.gmra.mxu1 %v4247_v22  ;;  %v1250_v11 = vadd.f32 %v4077_v42, %v807_v21 }
 0x220   :  { %1926 = vmatmul.bf16.gmra.mxu2 %v4441_v44  ;;  %v4480_v15 = vpop.f32.mrf.mxu3 }
 0x221   :  { %2015 = vmatmul.bf16.gmra.mxu3 %v4445_v16  ;;  %v1314_v9 = vmax.f32 %v1250_v11, 0.0 }
 0x222   :  { %v4456_v58 = vpop.f32.mrf.mxu0 }
 0x224   :  { %v808_v17 = vpop.f32.mrf.mxu1 }
 0x225   :  { %v809_v1 = vadd.f32 %v808_v17, %v5134_v27  ;;  %v3577_v17 = vld [vmem:[#allocation9 + $0x100] sm:$0xf0] }
 0x226   :  { %v3420_v59 = vor.u32 %v3577_v17, %v3419_v8 }
 0x227   :  { %v1252_v10 = vadd.f32 %v4077_v42, %v809_v1  ;;  %v4478_v42 = vpop.f32.mrf.mxu2 }
 0x228   :  { %2120 = vmatpush.bf16.msrb.mxu1 %v3420_v59  ;;  %v4497_v8 = vpop.f32.mrf.mxu3 }
 0x229   :  { %v1316_v63 = vmax.f32 %v1252_v10, 0.0 }
 0x22a   :  { %v4467_v34 = vpop.f32.mrf.mxu0 }
 0x22b   :  { %v4469_v5 = vpack.c.bf16 %v1316_v63, %v1314_v9 }
 0x22c   :  { %v1768_v18 = vpop.f32.mrf.mxu1 }
 0x22d   :  { %v1769_v31 = vadd.f32 %v1768_v18, %v4269_v45  ;;  %1753 = vmatmul.bf16.gmra.mxu0 %v4469_v5 }
 0x22f   :  { %v2204_v21 = vpack.c.bf16 %v1947_v25, %v1769_v31  ;;  %1807 = vmatmul.bf16.gmra.mxu1 %v4273_v7  ;;  %v4491_v18 = vpop.f32.mrf.mxu2 }
 0x230   :  { %1931 = vmatmul.bf16.gmra.mxu2 %v4469_v5 }
 0x231   :  { %2020 = vmatmul.bf16.gmra.mxu3 %v4471_v48  ;;  %2268 = vst [vmem:[#allocation14] sm:$0xff] %v2204_v21  ;;  %v2405_v10 = vunpack.c.l.b16 %v2204_v21  ;;  %v2406_v24 = vunpack.c.h.b16 %v2204_v21 }
 0x232   :  { %v4484_v11 = vpop.f32.mrf.mxu0 }
 0x234   :  { %v1770_v45 = vpop.f32.mrf.mxu1 }
 0x235   :  { %v1771_v27 = vadd.f32 %v1770_v45, %v4288_v36  ;;  %v1952_v36 = vadd.f32 %v4390_v14, %v4387_v30 }
 0x237   :  { %v2206_v1 = vpack.c.bf16 %v1949_v49, %v1771_v27  ;;  %v1954_v49 = vadd.f32 %v4409_v4, %v4406_v2  ;;  %v4508_v27 = vpop.f32.mrf.mxu2  ;;  %v1957_v2 = vadd.f32 %v4428_v28, %v4425_v47 }
 0x239   :  { %2270 = vst [vmem:[#allocation14 + $0xc] sm:$0xff] %v2206_v1  ;;  %v2408_v38 = vunpack.c.l.b16 %v2206_v1  ;;  %v2409_v9 = vunpack.c.h.b16 %v2206_v1 }
 0x23a   :  { %v4489_v63 = vpop.f32.mrf.mxu0 }
 0x23b   :  { %v4493_v25 = vpack.c.b16 %v2408_v38, %v2405_v10  ;;  %v4495_v31 = vpack.c.b16 %v2409_v9, %v2406_v24  ;;  %v4511_v10 = vpop.f32.mrf.mxu3 }
 0x23c   :  { %v1773_v17 = vpop.f32.mrf.mxu1 }
 0x23d   :  { %v1774_v40 = vadd.f32 %v1773_v17, %v4295_v53  ;;  %2034 = vmatmul.bf16.vlgmr.msra.gmra.mxu0 %v5136_v26 }
 0x23f   :  { %v2208_v21 = vpack.c.bf16 %v1952_v36, %v1774_v40  ;;  %1812 = vmatmul.bf16.gmra.mxu1 %v4303_v54  ;;  %v4523_v4 = vpop.f32.mrf.mxu2 }
 0x241   :  { %2272 = vst [vmem:[#allocation14 + $0x18] sm:$0xff] %v2208_v21  ;;  %v2411_v53 = vunpack.c.l.b16 %v2208_v21  ;;  %v2412_v38 = vunpack.c.h.b16 %v2208_v21 }
 0x242   :  { %v4504_v59 = vpop.f32.mrf.mxu0 }
 0x243   :  { %v4526_v21 = vpop.f32.mrf.mxu3 }
 0x244   :  { %v1775_v45 = vpop.f32.mrf.mxu1 }
 0x245   :  { %v1776_v1 = vadd.f32 %v1775_v45, %v4314_v50  ;;  %v3407_v45 = vld [vmem:[#allocation9 + $0xe0] sm:$0xf] }
 0x247   :  { %v2210_v30 = vpack.c.bf16 %v1954_v49, %v1776_v1  ;;  %v3574_v49 = vld [vmem:[#allocation9 + $0xe8] sm:$0xf0]  ;;  %v4533_v28 = vpop.f32.mrf.mxu2 }
 0x249   :  { %2274 = vst [vmem:[#allocation14 + $0x24] sm:$0xff] %v2210_v30  ;;  %v2414_v14 = vunpack.c.l.b16 %v2210_v30  ;;  %v2415_v24 = vunpack.c.h.b16 %v2210_v30  ;;  %v3408_v30 = vor.u32 %v3574_v49, %v3407_v45 }
 0x24a   :  { %v4513_v9 = vpop.f32.mrf.mxu0 }
 0x24b   :  { %v4515_v17 = vpack.c.b16 %v2414_v14, %v2411_v53  ;;  %v4517_v36 = vpack.c.b16 %v2415_v24, %v2412_v38  ;;  %2121 = vmatpush.bf16.msrb.mxu1 %v3408_v30 }
 0x24c   :  { %v1778_v40 = vpop.f32.mrf.mxu1 }
 0x24d   :  { %v1779_v50 = vadd.f32 %v1778_v40, %v4325_v57  ;;  %2039 = vmatmul.bf16.gmra.mxu0 %v4113_v46  ;;  %v1959_v57 = vadd.f32 %v4443_v32, %v4439_v62 }
 0x24f   :  { %v2212_v26 = vpack.c.bf16 %v1957_v2, %v1779_v50  ;;  %1817 = vmatmul.bf16.gmra.mxu1 %v4329_v41  ;;  %v4535_v2 = vpop.f32.mrf.mxu3 }
 0x251   :  { %2276 = vst [vmem:[#allocation14 + $0x30] sm:$0xff] %v2212_v26  ;;  %v2417_v14 = vunpack.c.l.b16 %v2212_v26  ;;  %v2418_v24 = vunpack.c.h.b16 %v2212_v26 }
 0x252   :  { %v4528_v1 = vpop.f32.mrf.mxu0 }
 0x254   :  { %v1780_v53 = vpop.f32.mrf.mxu1 }
 0x255   :  { %v1781_v46 = vadd.f32 %v1780_v53, %v4344_v12  ;;  %v1962_v12 = vadd.f32 %v4464_v3, %v4462_v19  ;;  %v1887_v53 = vpop.f32.mrf.mxu2 }
 0x257   :  { %v2214_v47 = vpack.c.bf16 %v1959_v57, %v1781_v46  ;;  %v1976_v57 = vpop.f32.mrf.mxu3 }
 0x259   :  { %2278 = vst [vmem:[#allocation14 + $0x3c] sm:$0xff] %v2214_v47  ;;  %v2420_v38 = vunpack.c.l.b16 %v2214_v47  ;;  %v2421_v40 = vunpack.c.h.b16 %v2214_v47  ;;  %v1964_v47 = vadd.f32 %v4480_v15, %v4478_v42 }
 0x25a   :  { %v4537_v50 = vpop.f32.mrf.mxu0 }
 0x25b   :  { %v4539_v45 = vpack.c.b16 %v2420_v38, %v2417_v14  ;;  %v4541_v49 = vpack.c.b16 %v2421_v40, %v2418_v24 }
 0x25c   :  { %v1783_v30 = vpop.f32.mrf.mxu1 }
 0x25d   :  { %5137 = vst [vmem:[#allocation24_spill] sm:$0xff] %v4541_v49  ;;  %v1784_v62 = vadd.f32 %v1783_v30, %v4355_v20  ;;  %2044 = vmatmul.bf16.gmra.mxu0 %v4133_v39 }
 0x25f   :  { %v2216_v32 = vpack.c.bf16 %v1962_v12, %v1784_v62  ;;  %1822 = vmatmul.bf16.gmra.mxu1 %v4359_v60  ;;  %v1967_v62 = vadd.f32 %v4497_v8, %v4491_v18  ;;  %v1889_v60 = vpop.f32.mrf.mxu2  ;;  %v1978_v15 = vpop.f32.mrf.mxu3  ;;  %v1969_v18 = vadd.f32 %v4511_v10, %v4508_v27  ;;  %v1972_v27 = vadd.f32 %v4526_v21, %v4523_v4 }
 0x261   :  { %2280 = vst [vmem:[#allocation14 + $0x48] sm:$0xff] %v2216_v32  ;;  %v2423_v19 = vunpack.c.l.b16 %v2216_v32  ;;  %v2424_v3 = vunpack.c.h.b16 %v2216_v32  ;;  %v3395_v32 = vld [vmem:[#allocation9 + $0xc8] sm:$0xf] }
 0x262   :  { %v4548_v26 = vpop.f32.mrf.mxu0 }
 0x264   :  { %v1785_v46 = vpop.f32.mrf.mxu1 }
 0x265   :  { %v1786_v14 = vadd.f32 %v1785_v46, %v4370_v51  ;;  %v5139_v51 = vld [vmem:[#allocation30_spill] sm:$0xff] }
 0x267   :  { %v2218_v38 = vpack.c.bf16 %v1964_v47, %v1786_v14  ;;  %v3571_v47 = vld [vmem:[#allocation9 + $0xd0] sm:$0xf0] }
 0x269   :  { %2282 = vst [vmem:[#allocation14 + $0x54] sm:$0xff] %v2218_v38  ;;  %v2426_v20 = vunpack.c.l.b16 %v2218_v38  ;;  %v2427_v39 = vunpack.c.h.b16 %v2218_v38  ;;  %v3396_v38 = vor.u32 %v3571_v47, %v3395_v32 }
 0x26a   :  { %v4553_v24 = vpop.f32.mrf.mxu0 }
 0x26b   :  { %v4555_v40 = vpack.c.b16 %v2426_v20, %v2423_v19  ;;  %v4557_v30 = vpack.c.b16 %v2427_v39, %v2424_v3  ;;  %2122 = vmatpush.bf16.msrb.mxu1 %v3396_v38  ;;  %v1981_v3 = vpop.f32.mrf.mxu3 }
 0x26c   :  { %v1788_v12 = vpop.f32.mrf.mxu1 }
 0x26d   :  { %5138 = vst [vmem:[#allocation25_spill] sm:$0xff] %v4557_v30  ;;  %v1789_v42 = vadd.f32 %v1788_v12, %v4381_v55  ;;  %2049 = vmatmul.bf16.gmra.mxu0 %v5139_v51  ;;  %v1892_v55 = vpop.f32.mrf.mxu2 }
 0x26f   :  { %v2220_v46 = vpack.c.bf16 %v1967_v62, %v1789_v42  ;;  %1827 = vmatmul.bf16.gmra.mxu1 %v4385_v13 }
 0x271   :  { %2284 = vst [vmem:[#allocation14 + $0x60] sm:$0xff] %v2220_v46  ;;  %v2429_v39 = vunpack.c.l.b16 %v2220_v46  ;;  %v2430_v62 = vunpack.c.h.b16 %v2220_v46 }
 0x272   :  { %v4564_v14 = vpop.f32.mrf.mxu0 }
 0x273   :  { %v1983_v38 = vpop.f32.mrf.mxu3 }
 0x274   :  { %v1790_v19 = vpop.f32.mrf.mxu1 }
 0x275   :  { %v1791_v8 = vadd.f32 %v1790_v19, %v4400_v6  ;;  %v1894_v46 = vpop.f32.mrf.mxu2 }
 0x277   :  { %v2222_v20 = vpack.c.bf16 %v1969_v18, %v1791_v8  ;;  %v1974_v8 = vadd.f32 %v4535_v2, %v4533_v28  ;;  %v1979_v2 = vadd.f32 %v1978_v15, %v1889_v60  ;;  %v1984_v15 = vadd.f32 %v1983_v38, %v1894_v46 }
 0x279   :  { %2286 = vst [vmem:[#allocation14 + $0x6c] sm:$0xff] %v2222_v20  ;;  %v2432_v12 = vunpack.c.l.b16 %v2222_v20  ;;  %v2433_v42 = vunpack.c.h.b16 %v2222_v20 }
 0x27a   :  { %v4569_v51 = vpop.f32.mrf.mxu0 }
 0x27b   :  { %v4571_v13 = vpack.c.b16 %v2432_v12, %v2429_v39  ;;  %v4573_v32 = vpack.c.b16 %v2433_v42, %v2430_v62  ;;  %v1986_v20 = vpop.f32.mrf.mxu3  ;;  %v1977_v12 = vadd.f32 %v1976_v57, %v1887_v53 }
 0x27c   :  { %v1793_v47 = vpop.f32.mrf.mxu1 }
 0x27d   :  { %5140 = vst [vmem:[#allocation26_spill] sm:$0xff] %v4573_v32  ;;  %v1794_v6 = vadd.f32 %v1793_v47, %v4411_v0  ;;  %2054 = vmatmul.bf16.gmra.mxu0 %v4179_v56  ;;  %v1897_v0 = vpop.f32.mrf.mxu2 }
 0x27f   :  { %v4579_v10 = vpack.c.bf16 %v1972_v27, %v1794_v6  ;;  %1832 = vmatmul.bf16.gmra.mxu1 %v4415_v29 }
 0x281   :  { %2288 = vst [vmem:[#allocation14 + $0x78] sm:$0xff] %v4579_v10 }
 0x282   :  { %v4583_v19 = vpop.f32.mrf.mxu0 }
 0x283   :  { %v1988_v6 = vpop.f32.mrf.mxu3 }
 0x284   :  { %v1795_v18 = vpop.f32.mrf.mxu1 }
 0x285   :  { %v1796_v4 = vadd.f32 %v1795_v18, %v4430_v33  ;;  %v1899_v47 = vpop.f32.mrf.mxu2 }
 0x287   :  { %v4588_v21 = vpack.c.bf16 %v1974_v8, %v1796_v4 }
 0x289   :  { %2290 = vst [vmem:[#allocation14 + $0x84] sm:$0xff] %v4588_v21 }
 0x28a   :  { %v4591_v56 = vpop.f32.mrf.mxu0 }
 0x28c   :  { %v1798_v39 = vpop.f32.mrf.mxu1 }
 0x28d   :  { %v1799_v62 = vadd.f32 %v1798_v39, %v4437_v43  ;;  %2059 = vmatmul.bf16.gmra.mxu0 %v4201_v61  ;;  %v1982_v43 = vadd.f32 %v1981_v3, %v1892_v55  ;;  %v1902_v57 = vpop.f32.mrf.mxu2  ;;  %v1991_v39 = vpop.f32.mrf.mxu3 }
 0x28f   :  { %v2228_v42 = vpack.c.bf16 %v1977_v12, %v1799_v62  ;;  %1837 = vmatmul.bf16.gmra.mxu1 %v4445_v16 }
 0x291   :  { %2292 = vst [vmem:[#allocation14 + $0x90] sm:$0xff] %v2228_v42 }
 0x292   :  { %v4596_v28 = vpop.f32.mrf.mxu0 }
 0x294   :  { %v1800_v33 = vpop.f32.mrf.mxu1 }
 0x295   :  { %v1801_v27 = vadd.f32 %v1800_v33, %v4456_v58  ;;  %v1904_v33 = vpop.f32.mrf.mxu2 }
 0x297   :  { %v2230_v18 = vpack.c.bf16 %v1979_v2, %v1801_v27 }
 0x299   :  { %2294 = vst [vmem:[#allocation14 + $0x9c] sm:$0xff] %v2230_v18  ;;  %v2444_v38 = vunpack.c.l.b16 %v2230_v18 }
 0x29a   :  { %v4599_v8 = vpop.f32.mrf.mxu0 }
 0x29c   :  { %v1803_v53 = vpop.f32.mrf.mxu1 }
 0x29d   :  { %v1804_v61 = vadd.f32 %v1803_v53, %v4467_v34  ;;  %2064 = vmatmul.bf16.gmra.mxu0 %v4225_v52  ;;  %v1993_v52 = vpop.f32.mrf.mxu3 }
 0x29f   :  { %v2232_v4 = vpack.c.bf16 %v1982_v43, %v1804_v61  ;;  %1842 = vmatmul.bf16.gmra.mxu1 %v4471_v48  ;;  %v1987_v48 = vadd.f32 %v1986_v20, %v1897_v0 }
 0x2a1   :  { %2296 = vst [vmem:[#allocation14 + $0xa8] sm:$0xff] %v2232_v4  ;;  %v2447_v2 = vunpack.c.l.b16 %v2232_v4  ;;  %v2448_v55 = vunpack.c.h.b16 %v2232_v4  ;;  %v2445_v4 = vunpack.c.h.b16 %v2230_v18  ;;  %v2435_v18 = vunpack.c.l.b16 %v4579_v10 }
 0x2a2   :  { %v4604_v60 = vpop.f32.mrf.mxu0 }
 0x2a4   :  { %v1805_v58 = vpop.f32.mrf.mxu1 }
 0x2a5   :  { %v1806_v12 = vadd.f32 %v1805_v58, %v4484_v11  ;;  %v2441_v58 = vunpack.c.l.b16 %v2228_v42 }
 0x2a7   :  { %v2234_v62 = vpack.c.bf16 %v1984_v15, %v1806_v12  ;;  %v2442_v12 = vunpack.c.h.b16 %v2228_v42  ;;  %v4620_v0 = vpack.c.b16 %v2444_v38, %v2441_v58  ;;  %v2439_v42 = vunpack.c.h.b16 %v4588_v21 }
 0x2a9   :  { %2298 = vst [vmem:[#allocation14 + $0xb4] sm:$0xff] %v2234_v62  ;;  %v2450_v34 = vunpack.c.l.b16 %v2234_v62  ;;  %v2451_v3 = vunpack.c.h.b16 %v2234_v62  ;;  %v1907_v62 = vpop.f32.mrf.mxu2 }
 0x2aa   :  { %v4607_v27 = vpop.f32.mrf.mxu0  ;;  %5143 = vst [vmem:[#allocation42_spill] sm:$0xff] %v4620_v0 }
 0x2ab   :  { %v4609_v53 = vpack.c.b16 %v2450_v34, %v2447_v2  ;;  %v4611_v43 = vpack.c.b16 %v2451_v3, %v2448_v55  ;;  %v1989_v2 = vadd.f32 %v1988_v6, %v1899_v47 }
 0x2ac   :  { %v1808_v61 = vpop.f32.mrf.mxu1 }
 0x2ad   :  { %5141 = vst [vmem:[#allocation27_spill] sm:$0xff] %v4609_v53  ;;  %v1809_v46 = vadd.f32 %v1808_v61, %v4489_v63  ;;  %2069 = vmatmul.bf16.gmra.mxu0 %v4245_v37  ;;  %2597 = vmatpush.bf16.xpose.msra.mxu2 %v4609_v53  ;;  %v1996_v63 = vpop.f32.mrf.mxu3  ;;  %v4622_v37 = vpack.c.b16 %v2445_v4, %v2442_v12 }
 0x2ae   :  { %5142 = vst [vmem:[#allocation30_spill] sm:$0xff] %v4611_v43  ;;  %2610 = vmatpush.bf16.xpose.msra.mxu3 %v4611_v43 }
 0x2af   :  { %v2236_v11 = vpack.c.bf16 %v1987_v48, %v1809_v46  ;;  %2123 = vmatmul.bf16.vlgmr.msrb.gmra.mxu1 %v4090_v35  ;;  %5144 = vst [vmem:[#allocation43_spill] sm:$0xff] %v4622_v37  ;;  %v2438_v48 = vunpack.c.l.b16 %v4588_v21 }
 0x2b1   :  { %2300 = vst [vmem:[#allocation14 + $0xc0] sm:$0xff] %v2236_v11  ;;  %v2453_v34 = vunpack.c.l.b16 %v2236_v11  ;;  %v2454_v61 = vunpack.c.h.b16 %v2236_v11  ;;  %v4633_v47 = vpack.c.b16 %v2438_v48, %v2435_v18  ;;  %v1909_v21 = vpop.f32.mrf.mxu2  ;;  %v1994_v18 = vadd.f32 %v1993_v52, %v1904_v33 }
 0x2b2   :  { %v4618_v15 = vpop.f32.mrf.mxu0 }
 0x2b4   :  { %v1810_v20 = vpop.f32.mrf.mxu1 }
 0x2b5   :  { %v1811_v55 = vadd.f32 %v1810_v20, %v4504_v59  ;;  %2598 = vmatpush.bf16.xpose.msra.mxu2 %v4620_v0  ;;  %v2436_v59 = vunpack.c.h.b16 %v4579_v10  ;;  %v1992_v20 = vadd.f32 %v1991_v39, %v1902_v57  ;;  %v1998_v11 = vpop.f32.mrf.mxu3 }
 0x2b6   :  { %2611 = vmatpush.bf16.xpose.msra.mxu3 %v4622_v37 }
 0x2b7   :  { %v2238_v35 = vpack.c.bf16 %v1989_v2, %v1811_v55  ;;  %v4639_v12 = vpack.c.b16 %v2439_v42, %v2436_v59  ;;  %v5146_v55 = vld [vmem:[#allocation28_spill] sm:$0xff] }
 0x2b9   :  { %2302 = vst [vmem:[#allocation14 + $0xcc] sm:$0xff] %v2238_v35  ;;  %v2456_v3 = vunpack.c.l.b16 %v2238_v35  ;;  %v2457_v46 = vunpack.c.h.b16 %v2238_v35 }
 0x2ba   :  { %v4630_v38 = vpop.f32.mrf.mxu0  ;;  %5145 = vst [vmem:[#allocation44_spill] sm:$0xff] %v4639_v12 }
 0x2bb   :  { %v4635_v6 = vpack.c.b16 %v2456_v3, %v2453_v34  ;;  %v4637_v4 = vpack.c.b16 %v2457_v46, %v2454_v61 }
 0x2bc   :  { %v1813_v58 = vpop.f32.mrf.mxu1 }
 0x2bd   :  { %v1814_v2 = vadd.f32 %v1813_v58, %v4513_v9  ;;  %2074 = vmatmul.bf16.gmra.mxu0 %v4271_v23  ;;  %2599 = vmatpush.bf16.xpose.msra.mxu2 %v4633_v47  ;;  %v1912_v23 = vpop.f32.mrf.mxu2  ;;  %v2001_v39 = vpop.f32.mrf.mxu3 }
 0x2be   :  { %2612 = vmatpush.bf16.xpose.msra.mxu3 %v4639_v12 }
 0x2bf   :  { %v2240_v10 = vpack.c.bf16 %v1992_v20, %v1814_v2  ;;  %2128 = vmatmul.bf16.gmra.mxu1 %v5146_v55  ;;  %v5147_v20 = vld [vmem:[#allocation35_spill] sm:$0xff]  ;;  %v5148_v55 = vld [vmem:[#allocation29_spill] sm:$0xff] }
 0x2c1   :  { %2304 = vst [vmem:[#allocation14 + $0xd8] sm:$0xff] %v2240_v10  ;;  %v2459_v42 = vunpack.c.l.b16 %v2240_v10  ;;  %v2460_v3 = vunpack.c.h.b16 %v2240_v10 }
 0x2c2   :  { %v4646_v35 = vpop.f32.mrf.mxu0 }
 0x2c4   :  { %v1815_v48 = vpop.f32.mrf.mxu1 }
 0x2c5   :  { %v1816_v57 = vadd.f32 %v1815_v48, %v4528_v1  ;;  %2600 = vmatpush.bf16.xpose.msra.mxu2 %v4571_v13  ;;  %v1997_v1 = vadd.f32 %v1996_v63, %v1907_v62  ;;  %v1914_v10 = vpop.f32.mrf.mxu2  ;;  %v2003_v48 = vpop.f32.mrf.mxu3 }
 0x2c6   :  { %2613 = vmatpush.bf16.xpose.msra.mxu3 %v4573_v32  ;;  %v2682_v32 = vld [vmem:[#allocation12] sm:$0x3f] }
 0x2c7   :  { %v2242_v9 = vpack.c.bf16 %v1994_v18, %v1816_v57 }
 0x2c9   :  { %2306 = vst [vmem:[#allocation14 + $0xe4] sm:$0xff] %v2242_v9  ;;  %v2462_v34 = vunpack.c.l.b16 %v2242_v9  ;;  %v2463_v61 = vunpack.c.h.b16 %v2242_v9  ;;  %v1999_v9 = vadd.f32 %v1998_v11, %v1909_v21 }
 0x2ca   :  { %v4651_v46 = vpop.f32.mrf.mxu0 }
 0x2cb   :  { %v4653_v59 = vpack.c.b16 %v2462_v34, %v2459_v42  ;;  %v4655_v58 = vpack.c.b16 %v2463_v61, %v2460_v3 }
 0x2cc   :  { %v1818_v33 = vpop.f32.mrf.mxu1 }
 0x2cd   :  { %v1819_v52 = vadd.f32 %v1818_v33, %v4537_v50  ;;  %2079 = vmatmul.bf16.gmra.mxu0 %v5147_v20  ;;  %2601 = vmatpush.bf16.xpose.msra.mxu2 %v4555_v40  ;;  %v1917_v33 = vpop.f32.mrf.mxu2  ;;  %v2006_v21 = vpop.f32.mrf.mxu3 }
 0x2ce   :  { %2614 = vmatpush.bf16.xpose.msra.mxu3 %v4557_v30 }
 0x2cf   :  { %v2244_v2 = vpack.c.bf16 %v1997_v1, %v1819_v52  ;;  %2133 = vmatmul.bf16.gmra.mxu1 %v5148_v55  ;;  %v5149_v55 = vld [vmem:[#allocation36_spill] sm:$0xff] }
 0x2d1   :  { %2308 = vst [vmem:[#allocation14 + $0xf0] sm:$0xff] %v2244_v2  ;;  %v2465_v63 = vunpack.c.l.b16 %v2244_v2  ;;  %v2466_v34 = vunpack.c.h.b16 %v2244_v2 }
 0x2d2   :  { %v4662_v18 = vpop.f32.mrf.mxu0 }
 0x2d4   :  { %v1820_v57 = vpop.f32.mrf.mxu1 }
 0x2d5   :  { %v1821_v62 = vadd.f32 %v1820_v57, %v4548_v26  ;;  %2602 = vmatpush.bf16.xpose.msra.mxu2 %v4539_v45  ;;  %v2002_v26 = vadd.f32 %v2001_v39, %v1912_v23  ;;  %v5150_v57 = vld [vmem:[#allocation31_spill] sm:$0xff] }
 0x2d6   :  { %2615 = vmatpush.bf16.xpose.msra.mxu3 %v4541_v49 }
 0x2d7   :  { %v2246_v50 = vpack.c.bf16 %v1999_v9, %v1821_v62 }
 0x2d9   :  { %2310 = vst [vmem:[#allocation14 + $0xfc] sm:$0xff] %v2246_v50  ;;  %v2468_v42 = vunpack.c.l.b16 %v2246_v50  ;;  %v2469_v3 = vunpack.c.h.b16 %v2246_v50  ;;  %v2004_v50 = vadd.f32 %v2003_v48, %v1914_v10  ;;  %v2007_v48 = vadd.f32 %v2006_v21, %v1917_v33 }
 0x2da   :  { %v4667_v61 = vpop.f32.mrf.mxu0 }
 0x2db   :  { %v4669_v1 = vpack.c.b16 %v2468_v42, %v2465_v63  ;;  %v4671_v52 = vpack.c.b16 %v2469_v3, %v2466_v34  ;;  %v1919_v63 = vpop.f32.mrf.mxu2 }
 0x2dc   :  { %v1823_v11 = vpop.f32.mrf.mxu1 }
 0x2dd   :  { %v1824_v20 = vadd.f32 %v1823_v11, %v4553_v24  ;;  %2084 = vmatmul.bf16.gmra.mxu0 %v5149_v55  ;;  %2603 = vmatpush.bf16.xpose.msra.mxu2 %v4515_v17  ;;  %v2008_v24 = vpop.f32.mrf.mxu3 }
 0x2de   :  { %2616 = vmatpush.bf16.xpose.msra.mxu3 %v4517_v36  ;;  %v2009_v37 = vadd.f32 %v2008_v24, %v1919_v63  ;;  %v5153_v24 = vld [vmem:[#allocation39_spill] sm:$0xff] }
 0x2df   :  { %v2248_v2 = vpack.c.bf16 %v2002_v26, %v1824_v20  ;;  %2138 = vmatmul.bf16.gmra.mxu1 %v5150_v57  ;;  %v5151_v57 = vld [vmem:[#allocation37_spill] sm:$0xff] }
 0x2e1   :  { %2312 = vst [vmem:[#allocation14 + $0x108] sm:$0xff] %v2248_v2  ;;  %v2471_v39 = vunpack.c.l.b16 %v2248_v2  ;;  %v2472_v3 = vunpack.c.h.b16 %v2248_v2 }
 0x2e2   :  { %v4678_v9 = vpop.f32.mrf.mxu0 }
 0x2e4   :  { %v1825_v62 = vpop.f32.mrf.mxu1 }
 0x2e5   :  { %v1826_v42 = vadd.f32 %v1825_v62, %v4564_v14  ;;  %2604 = vmatpush.bf16.xpose.msra.mxu2 %v4493_v25  ;;  %v1922_v62 = vpop.f32.mrf.mxu2 }
 0x2e6   :  { %2617 = vmatpush.bf16.xpose.msra.mxu3 %v4495_v31 }
 0x2e7   :  { %v2250_v23 = vpack.c.bf16 %v2004_v50, %v1826_v42  ;;  %v5152_v50 = vld [vmem:[#allocation32_spill] sm:$0xff]  ;;  %v2011_v42 = vpop.f32.mrf.mxu3 }
 0x2e8   :  { %v2012_v12 = vadd.f32 %v2011_v42, %v1922_v62 }
 0x2e9   :  { %2314 = vst [vmem:[#allocation14 + $0x114] sm:$0xff] %v2250_v23  ;;  %v2474_v34 = vunpack.c.l.b16 %v2250_v23  ;;  %v2475_v11 = vunpack.c.h.b16 %v2250_v23 }
 0x2ea   :  { %v4683_v26 = vpop.f32.mrf.mxu0 }
 0x2eb   :  { %v4685_v20 = vpack.c.b16 %v2474_v34, %v2471_v39  ;;  %v4687_v55 = vpack.c.b16 %v2475_v11, %v2472_v3 }
 0x2ec   :  { %v1828_v10 = vpop.f32.mrf.mxu1 }
 0x2ed   :  { %v1829_v14 = vadd.f32 %v1828_v10, %v4569_v51  ;;  %2089 = vmatmul.bf16.gmra.mxu0 %v5151_v57  ;;  %v1924_v3 = vpop.f32.mrf.mxu2 }
 0x2ef   :  { %v2252_v43 = vpack.c.bf16 %v2007_v48, %v1829_v14  ;;  %2143 = vmatmul.bf16.gmra.mxu1 %v5152_v50  ;;  %v2013_v10 = vpop.f32.mrf.mxu3 }
 0x2f1   :  { %2316 = vst [vmem:[#allocation14 + $0x120] sm:$0xff] %v2252_v43  ;;  %v2477_v33 = vunpack.c.l.b16 %v2252_v43  ;;  %v2478_v51 = vunpack.c.h.b16 %v2252_v43 }
 0x2f2   :  { %v4692_v2 = vpop.f32.mrf.mxu0 }
 0x2f4   :  { %v1830_v23 = vpop.f32.mrf.mxu1 }
 0x2f5   :  { %v1831_v39 = vadd.f32 %v1830_v23, %v4583_v19  ;;  %v1927_v23 = vpop.f32.mrf.mxu2 }
 0x2f7   :  { %v2254_v34 = vpack.c.bf16 %v2009_v37, %v1831_v39  ;;  %v5154_v37 = vld [vmem:[#allocation33_spill] sm:$0xff]  ;;  %v2016_v39 = vpop.f32.mrf.mxu3 }
 0x2f9   :  { %2318 = vst [vmem:[#allocation14 + $0x12c] sm:$0xff] %v2254_v34  ;;  %v2480_v21 = vunpack.c.l.b16 %v2254_v34  ;;  %v2481_v11 = vunpack.c.h.b16 %v2254_v34 }
 0x2fa   :  { %v4695_v57 = vpop.f32.mrf.mxu0 }
 0x2fb   :  { %v4697_v48 = vpack.c.b16 %v2480_v21, %v2477_v33  ;;  %v4699_v14 = vpack.c.b16 %v2481_v11, %v2478_v51  ;;  %v2014_v33 = vadd.f32 %v2013_v10, %v1924_v3  ;;  %v2332_v51 = vld [vmem:[#allocation11] sm:$0x3f] }
 0x2fc   :  { %v1833_v50 = vpop.f32.mrf.mxu1  ;;  %2334 = vst [vmem:[#allocation1] ss:$4 sm:$0xff] %v2332_v51  ;;  %v5155_v10 = vld [vmem:[#allocation41_spill] sm:$0xff] }
 0x2fd   :  { %v1834_v63 = vadd.f32 %v1833_v50, %v4591_v56  ;;  %2094 = vmatmul.bf16.gmra.mxu0 %v5153_v24 }
 0x2ff   :  { %v4703_v19 = vpack.c.bf16 %v2012_v12, %v1834_v63  ;;  %2148 = vmatmul.bf16.gmra.mxu1 %v5154_v37  ;;  %v2017_v63 = vadd.f32 %v2016_v39, %v1927_v23  ;;  %v2018_v24 = vpop.f32.mrf.mxu3 }
 0x301   :  { %2320 = vst [vmem:[#allocation14 + $0x138] sm:$0xff] %v4703_v19  ;;  %v2484_v56 = vunpack.c.h.b16 %v4703_v19 }
 0x302   :  { %v4707_v43 = vpop.f32.mrf.mxu0 }
 0x303   :  { %v4721_v37 = vld.sshfl [vmem:[#allocation1] sm:$0xff pattern:$0x73625140]  ;;  %v4726_v51 = vld.sshfl [vmem:[#allocation1 + $0x10] sm:$0xff pattern:$0x73625140] }
 0x304   :  { %v1835_v34 = vpop.f32.mrf.mxu1  ;;  %2605 = vmatmul.bf16.vlgmr.msra.gmra.mxu2 %v4721_v37 }
 0x305   :  { %v1836_v21 = vadd.f32 %v1835_v34, %v4596_v28  ;;  %v1929_v28 = vpop.f32.mrf.mxu2  ;;  %v4723_v34 = vld.sshfl [vmem:[#allocation1 + $0x8] sm:$0xff pattern:$0x73625140] }
 0x306   :  { %2684 = vst [vmem:[#allocation1] ss:$4 sm:$0xff] %v2682_v32  ;;  %2618 = vmatmul.bf16.vlgmr.msra.gmra.mxu3 %v4723_v34  ;;  %v2019_v23 = vadd.f32 %v2018_v24, %v1929_v28 }
 0x307   :  { %v4710_v62 = vpack.c.bf16 %v2014_v33, %v1836_v21  ;;  %v5156_v21 = vld [vmem:[#allocation34_spill] sm:$0xff] }
 0x309   :  { %2322 = vst [vmem:[#allocation14 + $0x144] sm:$0xff] %v4710_v62  ;;  %v2487_v12 = vunpack.c.h.b16 %v4710_v62 }
 0x30a   :  { %v4715_v42 = vpop.f32.mrf.mxu0 }
 0x30b   :  { %v4717_v11 = vpack.c.b16 %v2487_v12, %v2484_v56 }
 0x30c   :  { %v1838_v50 = vpop.f32.mrf.mxu1 }
 0x30d   :  { %v1839_v3 = vadd.f32 %v1838_v50, %v4599_v8  ;;  %2099 = vmatmul.bf16.gmra.mxu0 %v5155_v10  ;;  %v2687_v50 = vld.sshfl [vmem:[#allocation1 + $0x10] sm:$0xff pattern:$0x73625140] }
 0x30e   :  { %2876 = vmatpush.bf16.xpose.msrb.mxu0 %v2687_v50 }
 0x30f   :  { %v2260_v33 = vpack.c.bf16 %v2017_v63, %v1839_v3  ;;  %2153 = vmatmul.bf16.gmra.mxu1 %v5156_v21  ;;  %v1932_v63 = vpop.f32.mrf.mxu2  ;;  %v2021_v3 = vpop.f32.mrf.mxu3 }
 0x310   :  { %v2022_v53 = vadd.f32 %v2021_v3, %v1932_v63 }
 0x311   :  { %2324 = vst [vmem:[#allocation14 + $0x150] sm:$0xff] %v2260_v33  ;;  %v2490_v10 = vunpack.c.h.b16 %v2260_v33 }
 0x312   :  { %v4730_v39 = vpop.f32.mrf.mxu0 }
 0x314   :  { %v1840_v8 = vpop.f32.mrf.mxu1 }
 0x315   :  { %v1841_v56 = vadd.f32 %v1840_v8, %v4604_v60 }
 0x317   :  { %v2262_v12 = vpack.c.bf16 %v2019_v23, %v1841_v56  ;;  %v1934_v60 = vpop.f32.mrf.mxu2  ;;  %v2023_v8 = vpop.f32.mrf.mxu3 }
 0x318   :  { %v2024_v56 = vadd.f32 %v2023_v8, %v1934_v60 }
 0x319   :  { %2326 = vst [vmem:[#allocation14 + $0x15c] sm:$0xff] %v2262_v12  ;;  %v2493_v21 = vunpack.c.h.b16 %v2262_v12 }
 0x31a   :  { %v4737_v28 = vpop.f32.mrf.mxu0 }
 0x31b   :  { %v4733_v30 = vpack.c.b16 %v2493_v21, %v2490_v10 }
 0x31c   :  { %v1843_v32 = vpop.f32.mrf.mxu1 }
 0x31d   :  { %v1844_v49 = vadd.f32 %v1843_v32, %v4607_v27  ;;  %2104 = vmatmul.bf16.gmra.mxu0 %v4441_v44  ;;  %v2492_v32 = vunpack.c.l.b16 %v2262_v12 }
 0x31f   :  { %v2264_v24 = vpack.c.bf16 %v2022_v53, %v1844_v49  ;;  %2158 = vmatmul.bf16.gmra.mxu1 %v4247_v22 }
 0x321   :  { %2328 = vst [vmem:[#allocation14 + $0x168] sm:$0xff] %v2264_v24  ;;  %v2495_v21 = vunpack.c.l.b16 %v2264_v24  ;;  %v2496_v0 = vunpack.c.h.b16 %v2264_v24  ;;  %v2489_v24 = vunpack.c.l.b16 %v2260_v33 }
 0x322   :  { %v4741_v63 = vpop.f32.mrf.mxu0 }
 0x323   :  { %v4753_v8 = vpack.c.b16 %v2492_v32, %v2489_v24 }
 0x324   :  { %v1845_v23 = vpop.f32.mrf.mxu1 }
 0x325   :  { %v1846_v50 = vadd.f32 %v1845_v23, %v4618_v15 }
 0x327   :  { %v2266_v10 = vpack.c.bf16 %v2024_v56, %v1846_v50 }
 0x329   :  { %2330 = vst [vmem:[#allocation14 + $0x174] sm:$0xff] %v2266_v10  ;;  %v2498_v27 = vunpack.c.l.b16 %v2266_v10  ;;  %v2499_v44 = vunpack.c.h.b16 %v2266_v10 }
 0x32a   :  { %v4751_v60 = vpop.f32.mrf.mxu0 }
 0x32b   :  { %v4743_v3 = vpack.c.b16 %v2498_v27, %v2495_v21  ;;  %v4745_v49 = vpack.c.b16 %v2499_v44, %v2496_v0 }
 0x32c   :  { %v2124_v22 = vpop.f32.mrf.mxu1 }
 0x32d   :  { %v2125_v53 = vadd.f32 %v2124_v22, %v4630_v38  ;;  %2109 = vmatmul.bf16.gmra.mxu0 %v4469_v5  ;;  %2636 = vmatpush.bf16.xpose.msrb.mxu3 %v4743_v3  ;;  %v2486_v5 = vunpack.c.l.b16 %v4710_v62 }
 0x32f   :  { %v2205_v15 = vpack.c.bf16 %v2125_v53, %v2125_v53  ;;  %2163 = vmatmul.bf16.gmra.mxu1 %v4273_v7  ;;  %v2483_v7 = vunpack.c.l.b16 %v4703_v19 }
 0x331   :  { %2269 = vst [vmem:[#allocation14 + $0x8] sm:$0xf] %v2205_v15  ;;  %v2407_v56 = vunpack.c.l.b16 %v2205_v15  ;;  %v4761_v33 = vpack.c.b16 %v2486_v5, %v2483_v7 }
 0x332   :  { %v4763_v21 = vpop.f32.mrf.mxu0 }
 0x334   :  { %v2126_v23 = vpop.f32.mrf.mxu1 }
 0x335   :  { %v2127_v0 = vadd.f32 %v2126_v23, %v4646_v35  ;;  %2637 = vmatpush.bf16.xpose.msrb.mxu3 %v4753_v8 }
 0x337   :  { %v2207_v38 = vpack.c.bf16 %v2127_v0, %v2127_v0 }
 0x339   :  { %2271 = vst [vmem:[#allocation14 + $0x14] sm:$0xf] %v2207_v38  ;;  %v2410_v50 = vunpack.c.l.b16 %v2207_v38 }
 0x33a   :  { %v4771_v44 = vpop.f32.mrf.mxu0 }
 0x33b   :  { %v4759_v12 = vpack.c.b16 %v2410_v50, %v2407_v56 }
 0x33c   :  { %v2129_v10 = vpop.f32.mrf.mxu1 }
 0x33d   :  { %v2130_v27 = vadd.f32 %v2129_v10, %v4651_v46  ;;  %2638 = vmatpush.bf16.xpose.msrb.mxu3 %v4761_v33  ;;  %2877 = vmatmul.bf16.vlgmr.msrb.gmra.mxu0 %v4759_v12 }
 0x33f   :  { %v2209_v35 = vpack.c.bf16 %v2130_v27, %v2130_v27  ;;  %2168 = vmatmul.bf16.gmra.mxu1 %v4303_v54  ;;  %v5157_v27 = vld [vmem:[#allocation38_spill] sm:$0xff] }
 0x341   :  { %2273 = vst [vmem:[#allocation14 + $0x20] sm:$0xf] %v2209_v35  ;;  %v2413_v53 = vunpack.c.l.b16 %v2209_v35 }
 0x344   :  { %v2131_v62 = vpop.f32.mrf.mxu1 }
 0x345   :  { %v2132_v19 = vadd.f32 %v2131_v62, %v4662_v18  ;;  %2639 = vmatpush.bf16.xpose.msrb.mxu3 %v4697_v48  ;;  %v4779_v18 = vpop.f32.mrf.mxu0 }
 0x347   :  { %v2211_v22 = vpack.c.bf16 %v2132_v19, %v2132_v19 }
 0x349   :  { %2275 = vst [vmem:[#allocation14 + $0x2c] sm:$0xf] %v2211_v22  ;;  %v2416_v15 = vunpack.c.l.b16 %v2211_v22 }
 0x34b   :  { %v4773_v46 = vpack.c.b16 %v2416_v15, %v2413_v53 }
 0x34c   :  { %v2134_v32 = vpop.f32.mrf.mxu1 }
 0x34d   :  { %v2135_v24 = vadd.f32 %v2134_v32, %v4667_v61  ;;  %2640 = vmatpush.bf16.xpose.msrb.mxu3 %v4685_v20  ;;  %2882 = vmatmul.bf16.gmra.mxu0 %v4773_v46  ;;  %v4783_v61 = vpop.f32.mrf.mxu0 }
 0x34f   :  { %v2213_v54 = vpack.c.bf16 %v2135_v24, %v2135_v24  ;;  %2173 = vmatmul.bf16.gmra.mxu1 %v4329_v41 }
 0x351   :  { %2277 = vst [vmem:[#allocation14 + $0x38] sm:$0xf] %v2213_v54  ;;  %v2419_v5 = vunpack.c.l.b16 %v2213_v54 }
 0x354   :  { %v2136_v23 = vpop.f32.mrf.mxu1 }
 0x355   :  { %v2137_v0 = vadd.f32 %v2136_v23, %v4678_v9  ;;  %2641 = vmatpush.bf16.xpose.msrb.mxu3 %v4669_v1  ;;  %v4791_v35 = vpop.f32.mrf.mxu0  ;;  %v5158_v23 = vld [vmem:[#allocation40_spill] sm:$0xff] }
 0x357   :  { %v2215_v38 = vpack.c.bf16 %v2137_v0, %v2137_v0 }
 0x359   :  { %2279 = vst [vmem:[#allocation14 + $0x44] sm:$0xf] %v2215_v38  ;;  %v2422_v56 = vunpack.c.l.b16 %v2215_v38 }
 0x35b   :  { %v4785_v50 = vpack.c.b16 %v2422_v56, %v2419_v5 }
 0x35c   :  { %v2139_v7 = vpop.f32.mrf.mxu1 }
 0x35d   :  { %v2140_v10 = vadd.f32 %v2139_v7, %v4683_v26  ;;  %2642 = vmatpush.bf16.xpose.msrb.mxu3 %v4653_v59  ;;  %2887 = vmatmul.bf16.gmra.mxu0 %v4785_v50  ;;  %v4800_v24 = vpop.f32.mrf.mxu0 }
 0x35f   :  { %v2217_v41 = vpack.c.bf16 %v2140_v10, %v2140_v10  ;;  %2178 = vmatmul.bf16.gmra.mxu1 %v5157_v27 }
 0x361   :  { %2281 = vst [vmem:[#allocation14 + $0x50] sm:$0xf] %v2217_v41  ;;  %v2425_v22 = vunpack.c.l.b16 %v2217_v41 }
 0x364   :  { %v2141_v9 = vpop.f32.mrf.mxu1 }
 0x365   :  { %v2142_v62 = vadd.f32 %v2141_v9, %v4692_v2  ;;  %2643 = vmatpush.bf16.xpose.msrb.mxu3 %v4635_v6  ;;  %v4804_v5 = vpop.f32.mrf.mxu0 }
 0x367   :  { %v2219_v19 = vpack.c.bf16 %v2142_v62, %v2142_v62 }
 0x369   :  { %2283 = vst [vmem:[#allocation14 + $0x5c] sm:$0xf] %v2219_v19  ;;  %v2428_v53 = vunpack.c.l.b16 %v2219_v19 }
 0x36b   :  { %v4795_v26 = vpack.c.b16 %v2428_v53, %v2425_v22 }
 0x36c   :  { %v2144_v15 = vpop.f32.mrf.mxu1  ;;  %2644 = vmatmul.bf16.vlgmr.msrb.gmra.mxu3 %v4721_v37 }
 0x36d   :  { %v2145_v32 = vadd.f32 %v2144_v15, %v4695_v57  ;;  %2892 = vmatmul.bf16.gmra.mxu0 %v4795_v26  ;;  %v4811_v27 = vpop.f32.mrf.mxu0 }
 0x36f   :  { %v2221_v54 = vpack.c.bf16 %v2145_v32, %v2145_v32  ;;  %2183 = vmatmul.bf16.gmra.mxu1 %v5158_v23 }
 0x371   :  { %2285 = vst [vmem:[#allocation14 + $0x68] sm:$0xf] %v2221_v54  ;;  %v2431_v56 = vunpack.c.l.b16 %v2221_v54 }
 0x374   :  { %v2146_v2 = vpop.f32.mrf.mxu1 }
 0x375   :  { %v2147_v0 = vadd.f32 %v2146_v2, %v4707_v43  ;;  %v4814_v32 = vpop.f32.mrf.mxu0 }
 0x377   :  { %v2223_v38 = vpack.c.bf16 %v2147_v0, %v2147_v0 }
 0x379   :  { %2287 = vst [vmem:[#allocation14 + $0x74] sm:$0xf] %v2223_v38  ;;  %v2434_v7 = vunpack.c.l.b16 %v2223_v38 }
 0x37b   :  { %v4806_v37 = vpack.c.b16 %v2434_v7, %v2431_v56 }
 0x37c   :  { %v2149_v57 = vpop.f32.mrf.mxu1 }
 0x37d   :  { %v2150_v10 = vadd.f32 %v2149_v57, %v4715_v42  ;;  %2897 = vmatmul.bf16.gmra.mxu0 %v4806_v37  ;;  %v4819_v2 = vpop.f32.mrf.mxu0 }
 0x37f   :  { %v2225_v41 = vpack.c.bf16 %v2150_v10, %v2150_v10  ;;  %2188 = vmatmul.bf16.gmra.mxu1 %v4415_v29  ;;  %v5159_v10 = vld [vmem:[#allocation23_spill] sm:$0xff] }
 0x381   :  { %2289 = vst [vmem:[#allocation14 + $0x80] sm:$0xf] %v2225_v41  ;;  %v2437_v19 = vunpack.c.l.b16 %v2225_v41 }
 0x384   :  { %v2151_v43 = vpop.f32.mrf.mxu1 }
 0x385   :  { %v2152_v9 = vadd.f32 %v2151_v43, %v4730_v39  ;;  %v4823_v41 = vpop.f32.mrf.mxu0 }
 0x387   :  { %v2227_v62 = vpack.c.bf16 %v2152_v9, %v2152_v9 }
 0x389   :  { %2291 = vst [vmem:[#allocation14 + $0x8c] sm:$0xf] %v2227_v62  ;;  %v2440_v22 = vunpack.c.l.b16 %v2227_v62 }
 0x38b   :  { %v2518_v53 = vpack.c.b16 %v2440_v22, %v2437_v19 }
 0x38c   :  { %v2154_v15 = vpop.f32.mrf.mxu1 }
 0x38d   :  { %v2155_v42 = vadd.f32 %v2154_v15, %v4737_v28  ;;  %2902 = vmatmul.bf16.gmra.mxu0 %v2518_v53  ;;  %v4826_v19 = vpop.f32.mrf.mxu0 }
 0x38f   :  { %v2229_v54 = vpack.c.bf16 %v2155_v42, %v2155_v42  ;;  %2193 = vmatmul.bf16.gmra.mxu1 %v4445_v16 }
 0x391   :  { %2293 = vst [vmem:[#allocation14 + $0x98] sm:$0xf] %v2229_v54  ;;  %v2443_v0 = vunpack.c.l.b16 %v2229_v54 }
 0x394   :  { %v2156_v29 = vpop.f32.mrf.mxu1 }
 0x395   :  { %v2157_v23 = vadd.f32 %v2156_v29, %v4741_v63  ;;  %v4829_v29 = vpop.f32.mrf.mxu0 }
 0x397   :  { %v2231_v39 = vpack.c.bf16 %v2157_v23, %v2157_v23 }
 0x399   :  { %2295 = vst [vmem:[#allocation14 + $0xa4] sm:$0xf] %v2231_v39  ;;  %v2446_v38 = vunpack.c.l.b16 %v2231_v39 }
 0x39b   :  { %v2521_v56 = vpack.c.b16 %v2446_v38, %v2443_v0 }
 0x39c   :  { %v2159_v7 = vpop.f32.mrf.mxu1 }
 0x39d   :  { %v2160_v57 = vadd.f32 %v2159_v7, %v4751_v60  ;;  %2907 = vmatmul.bf16.gmra.mxu0 %v2521_v56 }
 0x39f   :  { %v2233_v28 = vpack.c.bf16 %v2160_v57, %v2160_v57  ;;  %2198 = vmatmul.bf16.gmra.mxu1 %v5159_v10 }
 0x3a1   :  { %2297 = vst [vmem:[#allocation14 + $0xb0] sm:$0xf] %v2233_v28  ;;  %v2449_v9 = vunpack.c.l.b16 %v2233_v28 }
 0x3a4   :  { %v2161_v16 = vpop.f32.mrf.mxu1 }
 0x3a5   :  { %v2162_v63 = vadd.f32 %v2161_v16, %v4763_v21 }
 0x3a7   :  { %v2235_v43 = vpack.c.bf16 %v2162_v63, %v2162_v63 }
 0x3a9   :  { %2299 = vst [vmem:[#allocation14 + $0xbc] sm:$0xf] %v2235_v43  ;;  %v2452_v62 = vunpack.c.l.b16 %v2235_v43 }
 0x3ab   :  { %v2524_v22 = vpack.c.b16 %v2452_v62, %v2449_v9 }
 0x3ac   :  { %v2164_v15 = vpop.f32.mrf.mxu1 }
 0x3ad   :  { %v2165_v60 = vadd.f32 %v2164_v15, %v4771_v44  ;;  %2623 = vmatpush.bf16.xpose.msrb.mxu2 %v2524_v22  ;;  %2912 = vmatmul.bf16.gmra.mxu0 %v2524_v22  ;;  %v4836_v44 = vpop.f32.mrf.mxu0 }
 0x3af   :  { %v2237_v42 = vpack.c.bf16 %v2165_v60, %v2165_v60 }
 0x3b1   :  { %2301 = vst [vmem:[#allocation14 + $0xc8] sm:$0xf] %v2237_v42  ;;  %v2455_v39 = vunpack.c.l.b16 %v2237_v42 }
 0x3b4   :  { %v2166_v54 = vpop.f32.mrf.mxu1 }
 0x3b5   :  { %v2167_v23 = vadd.f32 %v2166_v54, %v4779_v18  ;;  %2624 = vmatpush.bf16.xpose.msrb.mxu2 %v2521_v56  ;;  %v4840_v16 = vpop.f32.mrf.mxu0 }
 0x3b7   :  { %v2239_v21 = vpack.c.bf16 %v2167_v23, %v2167_v23 }
 0x3b9   :  { %2303 = vst [vmem:[#allocation14 + $0xd4] sm:$0xf] %v2239_v21  ;;  %v2458_v0 = vunpack.c.l.b16 %v2239_v21 }
 0x3bb   :  { %v4832_v38 = vpack.c.b16 %v2458_v0, %v2455_v39 }
 0x3bc   :  { %v2169_v7 = vpop.f32.mrf.mxu1 }
 0x3bd   :  { %v2170_v57 = vadd.f32 %v2169_v7, %v4783_v61  ;;  %2625 = vmatpush.bf16.xpose.msrb.mxu2 %v2518_v53  ;;  %2917 = vmatmul.bf16.gmra.mxu0 %v4832_v38 }
 0x3bf   :  { %v2241_v28 = vpack.c.bf16 %v2170_v57, %v2170_v57 }
 0x3c1   :  { %2305 = vst [vmem:[#allocation14 + $0xe0] sm:$0xf] %v2241_v28  ;;  %v2461_v63 = vunpack.c.l.b16 %v2241_v28 }
 0x3c4   :  { %v2171_v10 = vpop.f32.mrf.mxu1 }
 0x3c5   :  { %v2172_v18 = vadd.f32 %v2171_v10, %v4791_v35  ;;  %2626 = vmatpush.bf16.xpose.msrb.mxu2 %v4806_v37  ;;  %v4847_v35 = vpop.f32.mrf.mxu0 }
 0x3c7   :  { %v2243_v56 = vpack.c.bf16 %v2172_v18, %v2172_v18 }
 0x3c9   :  { %2307 = vst [vmem:[#allocation14 + $0xec] sm:$0xf] %v2243_v56  ;;  %v2464_v43 = vunpack.c.l.b16 %v2243_v56 }
 0x3cb   :  { %v4842_v9 = vpack.c.b16 %v2464_v43, %v2461_v63 }
 0x3cc   :  { %v2174_v61 = vpop.f32.mrf.mxu1 }
 0x3cd   :  { %v2175_v53 = vadd.f32 %v2174_v61, %v4800_v24  ;;  %2627 = vmatpush.bf16.xpose.msrb.mxu2 %v4795_v26  ;;  %2922 = vmatmul.bf16.gmra.mxu0 %v4842_v9  ;;  %v4853_v23 = vpop.f32.mrf.mxu0 }
 0x3cf   :  { %v2245_v62 = vpack.c.bf16 %v2175_v53, %v2175_v53 }
 0x3d1   :  { %2309 = vst [vmem:[#allocation14 + $0xf8] sm:$0xf] %v2245_v62  ;;  %v2467_v60 = vunpack.c.l.b16 %v2245_v62 }
 0x3d4   :  { %v2176_v37 = vpop.f32.mrf.mxu1 }
 0x3d5   :  { %v2177_v22 = vadd.f32 %v2176_v37, %v4804_v5  ;;  %2628 = vmatpush.bf16.xpose.msrb.mxu2 %v4785_v50  ;;  %v4861_v39 = vpop.f32.mrf.mxu0 }
 0x3d7   :  { %v2247_v15 = vpack.c.bf16 %v2177_v22, %v2177_v22 }
 0x3d9   :  { %2311 = vst [vmem:[#allocation14 + $0x104] sm:$0xf] %v2247_v15  ;;  %v2470_v42 = vunpack.c.l.b16 %v2247_v15 }
 0x3db   :  { %v4851_v54 = vpack.c.b16 %v2470_v42, %v2467_v60 }
 0x3dc   :  { %v2179_v24 = vpop.f32.mrf.mxu1 }
 0x3dd   :  { %v2180_v26 = vadd.f32 %v2179_v24, %v4811_v27  ;;  %2629 = vmatpush.bf16.xpose.msrb.mxu2 %v4773_v46  ;;  %2927 = vmatmul.bf16.gmra.mxu0 %v4851_v54 }
 0x3df   :  { %v2249_v21 = vpack.c.bf16 %v2180_v26, %v2180_v26 }
 0x3e1   :  { %2313 = vst [vmem:[#allocation14 + $0x110] sm:$0xf] %v2249_v21  ;;  %v2473_v7 = vunpack.c.l.b16 %v2249_v21 }
 0x3e4   :  { %v2181_v5 = vpop.f32.mrf.mxu1 }
 0x3e5   :  { %v2182_v50 = vadd.f32 %v2181_v5, %v4814_v32  ;;  %2630 = vmatpush.bf16.xpose.msrb.mxu2 %v4759_v12  ;;  %v4869_v32 = vpop.f32.mrf.mxu0 }
 0x3e7   :  { %v2251_v0 = vpack.c.bf16 %v2182_v50, %v2182_v50 }
 0x3e9   :  { %2315 = vst [vmem:[#allocation14 + $0x11c] sm:$0xf] %v2251_v0  ;;  %v2476_v57 = vunpack.c.l.b16 %v2251_v0 }
 0x3eb   :  { %v4863_v27 = vpack.c.b16 %v2476_v57, %v2473_v7 }
 0x3ec   :  { %v2184_v46 = vpop.f32.mrf.mxu1  ;;  %2631 = vmatmul.bf16.vlgmr.msrb.gmra.mxu2 %v4726_v51 }
 0x3ed   :  { %2649 = vmatpush.bf16.xpose.msra.mxu2 %v4745_v49  ;;  %v2185_v28 = vadd.f32 %v2184_v46, %v4819_v2  ;;  %2932 = vmatmul.bf16.gmra.mxu0 %v4863_v27  ;;  %v4873_v61 = vpop.f32.mrf.mxu0 }
 0x3ef   :  { %v2253_v12 = vpack.c.bf16 %v2185_v28, %v2185_v28 }
 0x3f1   :  { %2317 = vst [vmem:[#allocation14 + $0x128] sm:$0xf] %v2253_v12  ;;  %v2479_v63 = vunpack.c.l.b16 %v2253_v12 }
 0x3f4   :  { %v2186_v10 = vpop.f32.mrf.mxu1 }
 0x3f5   :  { %2650 = vmatpush.bf16.xpose.msra.mxu2 %v4733_v30  ;;  %v2187_v18 = vadd.f32 %v2186_v10, %v4823_v41  ;;  %v4877_v15 = vpop.f32.mrf.mxu0  ;;  %v2685_v10 = vld.sshfl [vmem:[#allocation1] sm:$0xff pattern:$0x73625140] }
 0x3f7   :  { %v2255_v56 = vpack.c.bf16 %v2187_v18, %v2187_v18 }
 0x3f9   :  { %2319 = vst [vmem:[#allocation14 + $0x134] sm:$0xf] %v2255_v56  ;;  %v2482_v43 = vunpack.c.l.b16 %v2255_v56 }
 0x3fb   :  { %v2539_v2 = vpack.c.b16 %v2482_v43, %v2479_v63 }
 0x3fc   :  { %v2189_v53 = vpop.f32.mrf.mxu1 }
 0x3fd   :  { %2651 = vmatpush.bf16.xpose.msra.mxu2 %v4717_v11  ;;  %v2190_v62 = vadd.f32 %v2189_v53, %v4826_v19  ;;  %2937 = vmatmul.bf16.gmra.mxu0 %v2539_v2  ;;  %v4883_v5 = vpop.f32.mrf.mxu0 }
 0x3ff   :  { %v2257_v37 = vpack.c.bf16 %v2190_v62, %v2190_v62 }
 0x401   :  { %2321 = vst [vmem:[#allocation14 + $0x140] sm:$0xf] %v2257_v37  ;;  %v2485_v42 = vunpack.c.l.b16 %v2257_v37 }
 0x404   :  { %v2191_v22 = vpop.f32.mrf.mxu1 }
 0x405   :  { %2652 = vmatpush.bf16.xpose.msra.mxu2 %v4699_v14  ;;  %v2192_v41 = vadd.f32 %v2191_v22, %v4829_v29  ;;  %v4887_v57 = vpop.f32.mrf.mxu0 }
 0x407   :  { %v2259_v60 = vpack.c.bf16 %v2192_v41, %v2192_v41 }
 0x409   :  { %2323 = vst [vmem:[#allocation14 + $0x14c] sm:$0xf] %v2259_v60  ;;  %v2488_v24 = vunpack.c.l.b16 %v2259_v60 }
 0x40b   :  { %v2542_v26 = vpack.c.b16 %v2488_v24, %v2485_v42 }
 0x40c   :  { %v2194_v21 = vpop.f32.mrf.mxu1 }
 0x40d   :  { %2653 = vmatpush.bf16.xpose.msra.mxu2 %v4687_v55  ;;  %v2195_v19 = vadd.f32 %v2194_v21, %v4836_v44  ;;  %2942 = vmatmul.bf16.gmra.mxu0 %v2542_v26 }
 0x40f   :  { %v2261_v50 = vpack.c.bf16 %v2195_v19, %v2195_v19  ;;  %v5166_v19 = vld [vmem:[#allocation43_spill] sm:$0xff] }
 0x411   :  { %2325 = vst [vmem:[#allocation14 + $0x158] sm:$0xf] %v2261_v50  ;;  %v2491_v46 = vunpack.c.l.b16 %v2261_v50 }
 0x414   :  { %v2196_v0 = vpop.f32.mrf.mxu1 }
 0x415   :  { %2654 = vmatpush.bf16.xpose.msra.mxu2 %v4671_v52  ;;  %v2197_v29 = vadd.f32 %v2196_v0, %v4840_v16  ;;  %v4891_v16 = vpop.f32.mrf.mxu0 }
 0x417   :  { %v2263_v7 = vpack.c.bf16 %v2197_v29, %v2197_v29 }
 0x419   :  { %2327 = vst [vmem:[#allocation14 + $0x164] sm:$0xf] %v2263_v7  ;;  %v2494_v28 = vunpack.c.l.b16 %v2263_v7 }
 0x41b   :  { %v2545_v12 = vpack.c.b16 %v2494_v28, %v2491_v46 }
 0x41c   :  { %v2199_v44 = vpop.f32.mrf.mxu1 }
 0x41d   :  { %2655 = vmatpush.bf16.xpose.msra.mxu2 %v4655_v58  ;;  %v2200_v18 = vadd.f32 %v2199_v44, %v4847_v35  ;;  %2947 = vmatmul.bf16.gmra.mxu0 %v2545_v12  ;;  %v4895_v41 = vpop.f32.mrf.mxu0  ;;  %v2606_v35 = vpop.f32.mrf.mxu2 }
 0x41f   :  { %v2265_v56 = vpack.c.bf16 %v2200_v18, %v2200_v18 }
 0x421   :  { %2329 = vst [vmem:[#allocation14 + $0x170] sm:$0xf] %v2265_v56  ;;  %v2497_v62 = vunpack.c.l.b16 %v2265_v56 }
 0x424   :  { %v2201_v63 = vpop.f32.mrf.mxu1 }
 0x425   :  { %2656 = vmatpush.bf16.xpose.msra.mxu2 %v4637_v4  ;;  %v2202_v43 = vadd.f32 %v2201_v63, %v4853_v23 }
 0x427   :  { %v2267_v53 = vpack.c.bf16 %v2202_v43, %v2202_v43 }
 0x429   :  { %2331 = vst [vmem:[#allocation14 + $0x17c] sm:$0xf] %v2267_v53  ;;  %v2500_v37 = vunpack.c.l.b16 %v2267_v53 }
 0x42a   :  { %3003 = dma.vmem_to_hbm [thread:$0]  %s2996_s16, 6144, %s2998_s20, [#allocation5], %s3821_s17, %s3821_s17, %s3822_s18  }
 0x42b   :  { %v2548_v22 = vpack.c.b16 %v2500_v37, %v2497_v62  ;;  %v2898_v37 = vpop.f32.mrf.mxu0 }
 0x42c   :  { %2657 = vmatmul.bf16.vlgmr.msra.gmra.mxu2 %v4723_v34  ;;  %v2686_v34 = vld.sshfl [vmem:[#allocation1 + $0x8] sm:$0xff pattern:$0x73625140] }
 0x42d   :  { %2698 = vmatpush.bf16.xpose.msrb.mxu2 %v2685_v10  ;;  %2662 = vmatpush.bf16.xpose.msra.mxu3 %v2548_v22 }
 0x42e   :  { %2952 = vmatmul.bf16.gmra.mxu0 %v2548_v22 }
 0x435   :  { %2663 = vmatpush.bf16.xpose.msra.mxu3 %v2545_v12 }
 0x43c   :  { %2699 = vmatmul.bf16.vlgmr.msrb.gmra.mxu2 %v4493_v25  ;;  %v2608_v25 = vpop.f32.mrf.mxu2 }
 0x43d   :  { %2664 = vmatpush.bf16.xpose.msra.mxu3 %v2542_v26  ;;  %v5165_v26 = vld [vmem:[#allocation44_spill] sm:$0xff] }
 0x445   :  { %2665 = vmatpush.bf16.xpose.msra.mxu3 %v2539_v2 }
 0x44c   :  { %2704 = vmatmul.bf16.gmra.mxu2 %v4515_v17 }
 0x44d   :  { %2666 = vmatpush.bf16.xpose.msra.mxu3 %v4863_v27  ;;  %v5161_v27 = vld [vmem:[#allocation24_spill] sm:$0xff] }
 0x455   :  { %2667 = vmatpush.bf16.xpose.msra.mxu3 %v4851_v54 }
 0x45c   :  { %2709 = vmatmul.bf16.gmra.mxu2 %v4539_v45  ;;  %v2619_v45 = vpop.f32.mrf.mxu3 }
 0x45d   :  { %2668 = vmatpush.bf16.xpose.msra.mxu3 %v4842_v9  ;;  %v2620_v9 = vadd.f32 %v2619_v45, %v2606_v35 }
 0x465   :  { %2669 = vmatpush.bf16.xpose.msra.mxu3 %v4832_v38  ;;  %v2621_v38 = vpop.f32.mrf.mxu3 }
 0x46c   :  { %2714 = vmatmul.bf16.gmra.mxu2 %v4555_v40  ;;  %2670 = vmatmul.bf16.vlgmr.msra.gmra.mxu3 %v4726_v51  ;;  %v5160_v40 = vld [vmem:[#allocation42_spill] sm:$0xff]  ;;  %v5162_v51 = vld [vmem:[#allocation27_spill] sm:$0xff] }
 0x46d   :  { %2787 = vmatpush.bf16.xpose.msrb.mxu3 %v2686_v34 }
 0x46f   :  { %v2632_v17 = vpop.f32.mrf.mxu2 }
 0x470   :  { %v2633_v23 = vadd.f32 %v2632_v17, %v2620_v9 }
 0x477   :  { %v2634_v54 = vpop.f32.mrf.mxu2 }
 0x47c   :  { %2719 = vmatmul.bf16.gmra.mxu2 %v4571_v13  ;;  %2788 = vmatmul.bf16.vlgmr.msrb.gmra.mxu3 %v4495_v31  ;;  %v5163_v13 = vld [vmem:[#allocation25_spill] sm:$0xff]  ;;  %v2645_v31 = vpop.f32.mrf.mxu3 }
 0x484   :  { %v2647_v42 = vpop.f32.mrf.mxu3 }
 0x48c   :  { %2724 = vmatmul.bf16.gmra.mxu2 %v4633_v47  ;;  %2793 = vmatmul.bf16.gmra.mxu3 %v4517_v36  ;;  %v5164_v47 = vld [vmem:[#allocation26_spill] sm:$0xff] }
 0x49c   :  { %2729 = vmatmul.bf16.gmra.mxu2 %v5160_v40  ;;  %2798 = vmatmul.bf16.gmra.mxu3 %v5161_v27 }
 0x4ac   :  { %2734 = vmatmul.bf16.gmra.mxu2 %v5162_v51  ;;  %2803 = vmatmul.bf16.gmra.mxu3 %v5163_v13 }
 0x4af   :  { %v2658_v2 = vpop.f32.mrf.mxu2 }
 0x4b0   :  { %v2659_v29 = vadd.f32 %v2658_v2, %v2645_v31 }
 0x4b7   :  { %v2660_v60 = vpop.f32.mrf.mxu2 }
 0x4bc   :  { %2739 = vmatmul.bf16.gmra.mxu2 %v4635_v6  ;;  %2808 = vmatmul.bf16.gmra.mxu3 %v5164_v47  ;;  %v5167_v6 = vld [vmem:[#allocation30_spill] sm:$0xff] }
 0x4bf   :  { %v2700_v24 = vpop.f32.mrf.mxu2 }
 0x4c7   :  { %v2702_v36 = vpop.f32.mrf.mxu2 }
 0x4cc   :  { %2744 = vmatmul.bf16.gmra.mxu2 %v4653_v59  ;;  %2813 = vmatmul.bf16.gmra.mxu3 %v5165_v26 }
 0x4cf   :  { %v2705_v21 = vpop.f32.mrf.mxu2 }
 0x4d7   :  { %v2707_v50 = vpop.f32.mrf.mxu2 }
 0x4dc   :  { %2749 = vmatmul.bf16.gmra.mxu2 %v4669_v1  ;;  %2818 = vmatmul.bf16.gmra.mxu3 %v5166_v19 }
 0x4df   :  { %v2710_v0 = vpop.f32.mrf.mxu2 }
 0x4e7   :  { %v2712_v59 = vpop.f32.mrf.mxu2 }
 0x4ec   :  { %2754 = vmatmul.bf16.gmra.mxu2 %v4685_v20  ;;  %2823 = vmatmul.bf16.gmra.mxu3 %v5167_v6 }
 0x4ef   :  { %v2671_v7 = vpop.f32.mrf.mxu3  ;;  %v2715_v1 = vpop.f32.mrf.mxu2 }
 0x4f0   :  { %v2672_v46 = vadd.f32 %v2671_v7, %v2659_v29 }
 0x4f2   :  { %v2677_v28 = vrot.slane %v2672_v46, 4 }
 0x4f4   :  { %v2679_v12 = vsel %vm2678_vm0, %v2633_v23, %v2677_v28 }
 0x4f5   :  { %2681 = vst [vmem:[#allocation15] sm:$0x77] %v2679_v12 }
 0x4f6   :  { %3014 = dma.vmem_to_hbm [thread:$0]  %s3010_s23, 128, %s3012_s26, [#allocation16]  }
 0x4f7   :  { %v2673_v44 = vpop.f32.mrf.mxu3  ;;  %v2717_v56 = vpop.f32.mrf.mxu2 }
 0x4fc   :  { %2759 = vmatmul.bf16.gmra.mxu2 %v4697_v48  ;;  %2828 = vmatmul.bf16.gmra.mxu3 %v4637_v4 }
 0x4ff   :  { %v2789_v10 = vpop.f32.mrf.mxu3  ;;  %v2720_v53 = vpop.f32.mrf.mxu2 }
 0x500   :  { %v2790_v18 = vadd.f32 %v2789_v10, %v2700_v24 }
 0x502   :  { %v2879_v20 = vadd.f32 %v4861_v39, %v2790_v18 }
 0x504   :  { %2959 = vst.msk [vmem:[%s5087_s8] sm:$0xff] %vm2958_vm1, %v2879_v20 }
 0x507   :  { %v2791_v63 = vpop.f32.mrf.mxu3  ;;  %v2722_v34 = vpop.f32.mrf.mxu2 }
 0x508   :  { %v2792_v48 = vadd.f32 %v2791_v63, %v2702_v36 }
 0x50a   :  { %v2881_v43 = vadd.f32 %v4869_v32, %v2792_v48 }
 0x50c   :  { %2764 = vmatmul.bf16.gmra.mxu2 %v4761_v33  ;;  %2960 = vst.msk [vmem:[%s5087_s8 + $0x8] sm:$0xff] %vm2958_vm1, %v2881_v43  ;;  %2833 = vmatmul.bf16.gmra.mxu3 %v4655_v58  ;;  %v2900_v58 = vpop.f32.mrf.mxu0 }
 0x50f   :  { %v2794_v4 = vpop.f32.mrf.mxu3 }
 0x510   :  { %v2795_v39 = vadd.f32 %v2794_v4, %v2705_v21 }
 0x512   :  { %v2884_v62 = vadd.f32 %v4873_v61, %v2795_v39 }
 0x514   :  { %2961 = vst.msk [vmem:[%s5087_s8 + $0x10] sm:$0xff] %vm2958_vm1, %v2884_v62 }
 0x517   :  { %v2796_v33 = vpop.f32.mrf.mxu3 }
 0x518   :  { %v2797_v32 = vadd.f32 %v2796_v33, %v2707_v50 }
 0x51a   :  { %v2886_v22 = vadd.f32 %v4877_v15, %v2797_v32  ;;  %v2903_v15 = vpop.f32.mrf.mxu0 }
 0x51c   :  { %2769 = vmatmul.bf16.gmra.mxu2 %v4753_v8  ;;  %2962 = vst.msk [vmem:[%s5087_s8 + $0x18] sm:$0xff] %vm2958_vm1, %v2886_v22  ;;  %2838 = vmatmul.bf16.gmra.mxu3 %v4671_v52  ;;  %v2725_v8 = vpop.f32.mrf.mxu2 }
 0x51f   :  { %v2799_v61 = vpop.f32.mrf.mxu3 }
 0x520   :  { %v2800_v35 = vadd.f32 %v2799_v61, %v2710_v0 }
 0x522   :  { %v2889_v25 = vadd.f32 %v4883_v5, %v2800_v35  ;;  %v2905_v23 = vpop.f32.mrf.mxu0 }
 0x524   :  { %2963 = vst.msk [vmem:[%s5087_s8 + $0x20] sm:$0xff] %vm2958_vm1, %v2889_v25  ;;  %v2727_v52 = vpop.f32.mrf.mxu2 }
 0x527   :  { %v2801_v17 = vpop.f32.mrf.mxu3 }
 0x528   :  { %v2802_v54 = vadd.f32 %v2801_v17, %v2712_v59 }
 0x52a   :  { %v2891_v45 = vadd.f32 %v4887_v57, %v2802_v54  ;;  %v2908_v51 = vpop.f32.mrf.mxu0 }
 0x52c   :  { %2774 = vmatmul.bf16.gmra.mxu2 %v4743_v3  ;;  %2964 = vst.msk [vmem:[%s5087_s8 + $0x28] sm:$0xff] %vm2958_vm1, %v2891_v45  ;;  %2843 = vmatmul.bf16.gmra.mxu3 %v4687_v55  ;;  %v2730_v40 = vpop.f32.mrf.mxu2 }
 0x52f   :  { %v2804_v5 = vpop.f32.mrf.mxu3 }
 0x530   :  { %v2805_v9 = vadd.f32 %v2804_v5, %v2715_v1 }
 0x532   :  { %v2894_v38 = vadd.f32 %v4891_v16, %v2805_v9  ;;  %v2910_v60 = vpop.f32.mrf.mxu0 }
 0x534   :  { %2965 = vst.msk [vmem:[%s5087_s8 + $0x30] sm:$0xff] %vm2958_vm1, %v2894_v38  ;;  %v2732_v13 = vpop.f32.mrf.mxu2 }
 0x537   :  { %v2806_v3 = vpop.f32.mrf.mxu3 }
 0x538   :  { %v2807_v57 = vadd.f32 %v2806_v3, %v2717_v56 }
 0x53a   :  { %v2896_v27 = vadd.f32 %v4895_v41, %v2807_v57  ;;  %v2913_v42 = vpop.f32.mrf.mxu0 }
 0x53c   :  { %2966 = vst.msk [vmem:[%s5087_s8 + $0x38] sm:$0xff] %vm2958_vm1, %v2896_v27  ;;  %2848 = vmatmul.bf16.gmra.mxu3 %v4699_v14  ;;  %v2735_v14 = vpop.f32.mrf.mxu2 }
 0x53f   :  { %v2809_v55 = vpop.f32.mrf.mxu3 }
 0x540   :  { %v2810_v16 = vadd.f32 %v2809_v55, %v2720_v53 }
 0x542   :  { %v2899_v2 = vadd.f32 %v2898_v37, %v2810_v16  ;;  %v2915_v0 = vpop.f32.mrf.mxu0 }
 0x544   :  { %2967 = vst.msk [vmem:[%s5087_s8 + $0x40] sm:$0xff] %vm2958_vm1, %v2899_v2  ;;  %v2737_v21 = vpop.f32.mrf.mxu2 }
 0x547   :  { %v2811_v31 = vpop.f32.mrf.mxu3 }
 0x548   :  { %v2812_v41 = vadd.f32 %v2811_v31, %v2722_v34 }
 0x54a   :  { %v2901_v47 = vadd.f32 %v2900_v58, %v2812_v41  ;;  %v2918_v28 = vpop.f32.mrf.mxu0 }
 0x54c   :  { %2968 = vst.msk [vmem:[%s5087_s8 + $0x48] sm:$0xff] %vm2958_vm1, %v2901_v47  ;;  %2853 = vmatmul.bf16.gmra.mxu3 %v4717_v11  ;;  %v2740_v7 = vpop.f32.mrf.mxu2 }
 0x54f   :  { %v2814_v24 = vpop.f32.mrf.mxu3 }
 0x550   :  { %v2815_v36 = vadd.f32 %v2814_v24, %v2725_v8 }
 0x552   :  { %v2904_v26 = vadd.f32 %v2903_v15, %v2815_v36 }
 0x554   :  { %2969 = vst.msk [vmem:[%s5087_s8 + $0x50] sm:$0xff] %vm2958_vm1, %v2904_v26  ;;  %v2742_v1 = vpop.f32.mrf.mxu2 }
 0x557   :  { %v2816_v19 = vpop.f32.mrf.mxu3 }
 0x558   :  { %v2817_v50 = vadd.f32 %v2816_v19, %v2727_v52 }
 0x55a   :  { %v2906_v6 = vadd.f32 %v2905_v23, %v2817_v50 }
 0x55c   :  { %2970 = vst.msk [vmem:[%s5087_s8 + $0x58] sm:$0xff] %vm2958_vm1, %v2906_v6  ;;  %2858 = vmatmul.bf16.gmra.mxu3 %v4733_v30  ;;  %v2920_v30 = vpop.f32.mrf.mxu0  ;;  %v2745_v56 = vpop.f32.mrf.mxu2 }
 0x55f   :  { %v2819_v11 = vpop.f32.mrf.mxu3 }
 0x560   :  { %v2820_v29 = vadd.f32 %v2819_v11, %v2730_v40 }
 0x562   :  { %v2909_v46 = vadd.f32 %v2908_v51, %v2820_v29 }
 0x564   :  { %2971 = vst.msk [vmem:[%s5087_s8 + $0x60] sm:$0xff] %vm2958_vm1, %v2909_v46  ;;  %v2923_v63 = vpop.f32.mrf.mxu0 }
 0x567   :  { %v2821_v59 = vpop.f32.mrf.mxu3 }
 0x568   :  { %v2822_v12 = vadd.f32 %v2821_v59, %v2732_v13 }
 0x56a   :  { %v2911_v44 = vadd.f32 %v2910_v60, %v2822_v12 }
 0x56c   :  { %2972 = vst.msk [vmem:[%s5087_s8 + $0x68] sm:$0xff] %vm2958_vm1, %v2911_v44  ;;  %2863 = vmatmul.bf16.gmra.mxu3 %v4745_v49  ;;  %v2747_v49 = vpop.f32.mrf.mxu2  ;;  %v2925_v62 = vpop.f32.mrf.mxu0 }
 0x56f   :  { %v2824_v10 = vpop.f32.mrf.mxu3 }
 0x570   :  { %v2825_v18 = vadd.f32 %v2824_v10, %v2735_v14 }
 0x572   :  { %v2914_v20 = vadd.f32 %v2913_v42, %v2825_v18 }
 0x574   :  { %2973 = vst.msk [vmem:[%s5087_s8 + $0x70] sm:$0xff] %vm2958_vm1, %v2914_v20  ;;  %v2750_v22 = vpop.f32.mrf.mxu2  ;;  %v2928_v58 = vpop.f32.mrf.mxu0 }
 0x577   :  { %v2826_v48 = vpop.f32.mrf.mxu3 }
 0x578   :  { %v2827_v43 = vadd.f32 %v2826_v48, %v2737_v21 }
 0x57a   :  { %v2916_v4 = vadd.f32 %v2915_v0, %v2827_v43 }
 0x57c   :  { %2974 = vst.msk [vmem:[%s5087_s8 + $0x78] sm:$0xff] %vm2958_vm1, %v2916_v4  ;;  %v2752_v8 = vpop.f32.mrf.mxu2  ;;  %v2930_v15 = vpop.f32.mrf.mxu0 }
 0x57f   :  { %v2829_v39 = vpop.f32.mrf.mxu3 }
 0x580   :  { %v2830_v53 = vadd.f32 %v2829_v39, %v2740_v7 }
 0x582   :  { %v2919_v37 = vadd.f32 %v2918_v28, %v2830_v53 }
 0x584   :  { %2975 = vst.msk [vmem:[%s5087_s8 + $0x80] sm:$0xff] %vm2958_vm1, %v2919_v37  ;;  %v2755_v52 = vpop.f32.mrf.mxu2  ;;  %v2933_v5 = vpop.f32.mrf.mxu0 }
 0x587   :  { %v2831_v33 = vpop.f32.mrf.mxu3 }
 0x588   :  { %v2832_v32 = vadd.f32 %v2831_v33, %v2742_v1 }
 0x58a   :  { %v2921_v34 = vadd.f32 %v2920_v30, %v2832_v32 }
 0x58c   :  { %2976 = vst.msk [vmem:[%s5087_s8 + $0x88] sm:$0xff] %vm2958_vm1, %v2921_v34  ;;  %v2757_v3 = vpop.f32.mrf.mxu2  ;;  %v2935_v27 = vpop.f32.mrf.mxu0 }
 0x58f   :  { %v2834_v61 = vpop.f32.mrf.mxu3 }
 0x590   :  { %v2835_v35 = vadd.f32 %v2834_v61, %v2745_v56 }
 0x592   :  { %v2924_v25 = vadd.f32 %v2923_v63, %v2835_v35 }
 0x594   :  { %2977 = vst.msk [vmem:[%s5087_s8 + $0x90] sm:$0xff] %vm2958_vm1, %v2924_v25  ;;  %v2760_v2 = vpop.f32.mrf.mxu2  ;;  %v2938_v60 = vpop.f32.mrf.mxu0 }
 0x597   :  { %v2836_v17 = vpop.f32.mrf.mxu3 }
 0x598   :  { %v2837_v54 = vadd.f32 %v2836_v17, %v2747_v49 }
 0x59a   :  { %v2926_v45 = vadd.f32 %v2925_v62, %v2837_v54 }
 0x59c   :  { %2978 = vst.msk [vmem:[%s5087_s8 + $0x98] sm:$0xff] %vm2958_vm1, %v2926_v45  ;;  %v2762_v14 = vpop.f32.mrf.mxu2  ;;  %v2940_v42 = vpop.f32.mrf.mxu0 }
 0x59f   :  { %v2839_v9 = vpop.f32.mrf.mxu3 }
 0x5a0   :  { %v2840_v23 = vadd.f32 %v2839_v9, %v2750_v22 }
 0x5a2   :  { %v2929_v38 = vadd.f32 %v2928_v58, %v2840_v23 }
 0x5a4   :  { %2979 = vst.msk [vmem:[%s5087_s8 + $0xa0] sm:$0xff] %vm2958_vm1, %v2929_v38  ;;  %v2765_v21 = vpop.f32.mrf.mxu2  ;;  %v2943_v19 = vpop.f32.mrf.mxu0 }
 0x5a7   :  { %v2841_v57 = vpop.f32.mrf.mxu3 }
 0x5a8   :  { %v2842_v40 = vadd.f32 %v2841_v57, %v2752_v8 }
 0x5aa   :  { %v2931_v51 = vadd.f32 %v2930_v15, %v2842_v40 }
 0x5ac   :  { %2980 = vst.msk [vmem:[%s5087_s8 + $0xa8] sm:$0xff] %vm2958_vm1, %v2931_v51  ;;  %v2767_v11 = vpop.f32.mrf.mxu2  ;;  %v2945_v46 = vpop.f32.mrf.mxu0 }
 0x5af   :  { %v2844_v55 = vpop.f32.mrf.mxu3 }
 0x5b0   :  { %v2845_v16 = vadd.f32 %v2844_v55, %v2755_v52 }
 0x5b2   :  { %v2934_v13 = vadd.f32 %v2933_v5, %v2845_v16 }
 0x5b4   :  { %2981 = vst.msk [vmem:[%s5087_s8 + $0xb0] sm:$0xff] %vm2958_vm1, %v2934_v13  ;;  %v2770_v44 = vpop.f32.mrf.mxu2  ;;  %v2948_v30 = vpop.f32.mrf.mxu0 }
 0x5b7   :  { %v2846_v31 = vpop.f32.mrf.mxu3 }
 0x5b8   :  { %v2847_v41 = vadd.f32 %v2846_v31, %v2757_v3 }
 0x5ba   :  { %v2936_v47 = vadd.f32 %v2935_v27, %v2847_v41 }
 0x5bc   :  { %2982 = vst.msk [vmem:[%s5087_s8 + $0xb8] sm:$0xff] %vm2958_vm1, %v2936_v47  ;;  %v2772_v56 = vpop.f32.mrf.mxu2  ;;  %v2950_v63 = vpop.f32.mrf.mxu0 }
 0x5bf   :  { %v2849_v24 = vpop.f32.mrf.mxu3 }
 0x5c0   :  { %v2850_v36 = vadd.f32 %v2849_v24, %v2760_v2 }
 0x5c2   :  { %v2939_v26 = vadd.f32 %v2938_v60, %v2850_v36 }
 0x5c4   :  { %2983 = vst.msk [vmem:[%s5087_s8 + $0xc0] sm:$0xff] %vm2958_vm1, %v2939_v26  ;;  %v2775_v49 = vpop.f32.mrf.mxu2  ;;  %v2953_v39 = vpop.f32.mrf.mxu0 }
 0x5c7   :  { %v2851_v50 = vpop.f32.mrf.mxu3 }
 0x5c8   :  { %v2852_v0 = vadd.f32 %v2851_v50, %v2762_v14 }
 0x5ca   :  { %v2941_v6 = vadd.f32 %v2940_v42, %v2852_v0 }
 0x5cc   :  { %2984 = vst.msk [vmem:[%s5087_s8 + $0xc8] sm:$0xff] %vm2958_vm1, %v2941_v6  ;;  %v2777_v33 = vpop.f32.mrf.mxu2  ;;  %v2955_v34 = vpop.f32.mrf.mxu0 }
 0x5cf   :  { %v2854_v29 = vpop.f32.mrf.mxu3 }
 0x5d0   :  { %v2855_v7 = vadd.f32 %v2854_v29, %v2765_v21 }
 0x5d2   :  { %v2944_v28 = vadd.f32 %v2943_v19, %v2855_v7 }
 0x5d4   :  { %2985 = vst.msk [vmem:[%s5087_s8 + $0xd0] sm:$0xff] %vm2958_vm1, %v2944_v28 }
 0x5d7   :  { %v2856_v59 = vpop.f32.mrf.mxu3 }
 0x5d8   :  { %v2857_v12 = vadd.f32 %v2856_v59, %v2767_v11 }
 0x5da   :  { %v2946_v1 = vadd.f32 %v2945_v46, %v2857_v12 }
 0x5dc   :  { %2986 = vst.msk [vmem:[%s5087_s8 + $0xd8] sm:$0xff] %vm2958_vm1, %v2946_v1 }
 0x5df   :  { %v2859_v10 = vpop.f32.mrf.mxu3 }
 0x5e0   :  { %v2860_v18 = vadd.f32 %v2859_v10, %v2770_v44 }
 0x5e2   :  { %v2949_v20 = vadd.f32 %v2948_v30, %v2860_v18 }
 0x5e4   :  { %2987 = vst.msk [vmem:[%s5087_s8 + $0xe0] sm:$0xff] %vm2958_vm1, %v2949_v20 }
 0x5e7   :  { %v2861_v48 = vpop.f32.mrf.mxu3 }
 0x5e8   :  { %v2862_v43 = vadd.f32 %v2861_v48, %v2772_v56 }
 0x5ea   :  { %v2951_v4 = vadd.f32 %v2950_v63, %v2862_v43 }
 0x5ec   :  { %2988 = vst.msk [vmem:[%s5087_s8 + $0xe8] sm:$0xff] %vm2958_vm1, %v2951_v4 }
 0x5ef   :  { %v2864_v53 = vpop.f32.mrf.mxu3 }
 0x5f0   :  { %v2865_v62 = vadd.f32 %v2864_v53, %v2775_v49 }
 0x5f2   :  { %v2954_v37 = vadd.f32 %v2953_v39, %v2865_v62 }
 0x5f4   :  { %2989 = vst.msk [vmem:[%s5087_s8 + $0xf0] sm:$0xff] %vm2958_vm1, %v2954_v37 }
 0x5f7   :  { %v2866_v32 = vpop.f32.mrf.mxu3 }
 0x5f8   :  { %v2867_v22 = vadd.f32 %v2866_v32, %v2777_v33 }
 0x5fa   :  { %v2956_v58 = vadd.f32 %v2955_v34, %v2867_v22 }
 0x5fc   :  { %2990 = vst.msk [vmem:[%s5087_s8 + $0xf8] sm:$0xff] %vm2958_vm1, %v2956_v58 }
 0x5fd   :  { %3813 = dma.done.wait [#allocation5], 6144  }
 0x5fe   :  { %3814 = vsyncadd [#allocation5], 4294961152 }
 0x5ff   :  { %3815 = dma.done.wait [#allocation16], 128  }
 0x600   :  { %3816 = vsyncadd [#allocation16], 4294967168 }
 0x601   :  { %3027 = vsyncpa [#allocation4], 1 }
 0x602   :  { %3028 = vsyncpa [#allocation7], 1 }
 0x603   :  { %3029 = vsyncpa [#allocation10], 1 }
 0x604   :  { %3030 = vsyncpa [#allocation13], 1 }
 0x605   :  { %3031 = vsyncpa [#allocation5], 1 }
 0x606   :  { %3032 = vsyncpa [#allocation16], 1 }

</bundles_post_ra>
